<compile_context>
chip_gen: v7x
topology: tpu7x:2x2x1
jax: 0.10.0
libtpu: 0.0.40
codegen_flags: <defaults>
</compile_context>

<pallas_src>
import functools

import numpy as np

import jax
import jax.numpy as jnp
from jax.experimental import pallas as pl
from jax.experimental.pallas import tpu as pltpu


_LANE = 128
_BLOCK_BYTES_TARGET = 4 * 1024 * 1024   # ~4 MiB g block -> 2 bufs x (g + dx) ~= 16 MiB VMEM
_SMALL_BYTES = 1 * 1024 * 1024          # below this, plain XLA fusion is strictly better
_VMEM_LIMIT_BYTES = 32 * 1024 * 1024    # legal on v5e/v6e/v7x, covers the block budget


# ---------------------------------------------------------------------------
# Backward Pallas kernel: dx = (mask * lambda)[:, None] * g
# ---------------------------------------------------------------------------
def _grad_scale_kernel(mask_ref, g_ref, dx_ref, *, lambda_):
    # Scale computed in f32 (mask tile arrives as f32); only the final product
    # is cast back to the gradient dtype.
    g = g_ref[...]                                        # [tB, tF]
    scale = mask_ref[...] * jnp.float32(lambda_)          # [tB, 1] f32
    dx_ref[...] = (scale * g.astype(jnp.float32)).astype(dx_ref.dtype)


def _sublane_align(dtype) -> int:
    # f32 -> 8, bf16 -> 16, int8/fp8 -> 32 sublane packing.
    itemsize = jnp.dtype(dtype).itemsize
    return {4: 8, 2: 16, 1: 32}.get(itemsize, 8)


def _round_down(x: int, m: int) -> int:
    return max(m, (x // m) * m)


def _choose_tiles(B: int, F: int, dtype):
    """Pick (tB, tF): ~4 MiB lane-dense blocks, >=2 grid steps for mid/large arrays."""
    itemsize = jnp.dtype(dtype).itemsize
    bal = _sublane_align(dtype)

    # Sublane-aligned batch tile (target ~512 rows).
    tB = B if B <= 512 else _round_down(512, bal)
    # Lane-dense feature tile sized from the per-block byte budget.
    tF_target = max(_LANE, _BLOCK_BYTES_TARGET // (tB * itemsize))
    tF = F if F <= tF_target else _round_down(tF_target, _LANE)

    # v7x megacore: if the array is more than a couple of MiB, guarantee >= 2
    # grid steps along a "parallel" axis so both TensorCores get work.
    total_bytes = B * F * itemsize
    if total_bytes > 2 * 1024 * 1024 and pl.cdiv(B, tB) * pl.cdiv(F, tF) < 2:
        if F >= 2 * _LANE:
            tF = _round_down(pl.cdiv(F, 2), _LANE)
        elif B >= 2 * bal:
            tB = _round_down(pl.cdiv(B, 2), bal)
    return tB, tF


def _pallas_grad_scale(mask, g, lambda_):
    orig_shape = g.shape
    if g.ndim != 2:
        # Collapse trailing dims; mask broadcasts per leading row.
        g = g.reshape(g.shape[0], -1)
    B, F = g.shape
    itemsize = jnp.dtype(g.dtype).itemsize
    total_bytes = B * F * itemsize

    # Fast path: tiny tensors or lane-sparse (F < 128) outputs — let XLA fuse.
    if total_bytes < _SMALL_BYTES or F < _LANE:
        dx = (mask.astype(jnp.float32)[:, None] * jnp.float32(lambda_)
              * g.astype(jnp.float32)).astype(g.dtype)
        return dx.reshape(orig_shape)

    mask2d = mask.reshape(B, 1).astype(jnp.float32)
    tB, tF = _choose_tiles(B, F, g.dtype)
    # Keep F (j) innermost so the mask block index is constant across
    # consecutive steps and Pallas skips re-DMAing the tiny mask tile.
    grid = (pl.cdiv(B, tB), pl.cdiv(F, tF))

    kernel = functools.partial(_grad_scale_kernel, lambda_=float(lambda_))
    dx = pl.pallas_call(
        kernel,
        out_shape=jax.ShapeDtypeStruct((B, F), g.dtype),
        grid=grid,
        in_specs=[
            pl.BlockSpec((tB, 1), lambda i, j: (i, 0)),    # mask tile, reused over j
            pl.BlockSpec((tB, tF), lambda i, j: (i, j)),   # upstream grad tile
        ],
        out_specs=pl.BlockSpec((tB, tF), lambda i, j: (i, j)),
        input_output_aliases={1: 0},   # g -> dx in place (XLA copies if g is still live)
        compiler_params=pltpu.CompilerParams(
            dimension_semantics=("parallel", "parallel"),
            vmem_limit_bytes=_VMEM_LIMIT_BYTES,
        ),
    )(mask2d, g)
    return dx.reshape(orig_shape)


# ---------------------------------------------------------------------------
# custom_vjp mirroring GradientReversalFunction
# ---------------------------------------------------------------------------
def _zeros_cotangent(x):
    """Zero cotangent with the dtype custom_vjp expects (float0 for int/bool)."""
    if jnp.issubdtype(x.dtype, jnp.floating) or jnp.issubdtype(x.dtype, jnp.complexfloating):
        return jnp.zeros_like(x)
    return np.zeros(x.shape, dtype=jax.dtypes.float0)


@functools.partial(jax.custom_vjp, nondiff_argnums=(2,))
def gradient_reversal_fn(x, mask, lambda_):
    # Forward is the identity — no kernel, no extra HBM traffic.
    return x


def _grl_fwd(x, mask, lambda_):
    return x, mask


def _grl_bwd(lambda_, mask, g):
    # Faithful to the PyTorch backward: dx = mask[:, None] * lambda * g.
    dx = _pallas_grad_scale(mask, g, lambda_)
    return (dx, _zeros_cotangent(mask))


gradient_reversal_fn.defvjp(_grl_fwd, _grl_bwd)


class GradientReversal:
    """JAX/Pallas equivalent of the PyTorch GradientReversal module."""

    def __init__(self, lambda_=1):
        # TODO(synk): lambda_ must be a static Python scalar (nondiff_argnum);
        # per-example / traced lambda is not supported, matching the reference.
        self.lambda_ = lambda_

    def __call__(self, x):
        # x = (features [B, F], mask [B], extra)
        return (gradient_reversal_fn(x[0], x[1], self.lambda_), x[2])


# ---------------------------------------------------------------------------
# Demo / self-test
# ---------------------------------------------------------------------------
if __name__ == "__main__":
    key = jax.random.PRNGKey(0)
    k1, k2, k3, k4 = jax.random.split(key, 4)

    # ---- 1) Small demo shapes (fast path: XLA fused elementwise) ----
    B, F = 8, 32
    feats = jax.random.normal(k1, (B, F), dtype=jnp.float32)
    mask = (jax.random.uniform(k2, (B,)) > 0.5).astype(jnp.float32)
    extra = jax.random.normal(k3, (B,), dtype=jnp.float32)

    grl = GradientReversal(lambda_=1.0)
    out, passthrough = grl((feats, mask, extra))
    out = jax.block_until_ready(out)
    passthrough = jax.block_until_ready(passthrough)
    assert out.shape == feats.shape and out.dtype == feats.dtype
    assert jnp.allclose(out, feats)
    assert jnp.allclose(passthrough, extra)

    def loss_small(x):
        y, _ = grl((x, mask, extra))
        return jnp.sum(y * 2.0)

    dx_small = jax.block_until_ready(jax.grad(loss_small)(feats))
    assert jnp.allclose(dx_small, mask[:, None] * 1.0 * jnp.full_like(feats, 2.0))

    # ---- 2) Pallas path, f32 (4 MiB grad -> >=2 "parallel" grid steps) ----
    B2, F2 = 512, 2048
    feats2 = jax.random.normal(k1, (B2, F2), dtype=jnp.float32)
    mask2 = (jax.random.uniform(k2, (B2,)) > 0.5).astype(jnp.float32)
    w2 = jax.random.normal(k4, (B2, F2), dtype=jnp.float32)
    grl2 = GradientReversal(lambda_=-0.75)   # negative lambda -> actual reversal

    def loss2(x):
        y, _ = grl2((x, mask2, extra))
        return jnp.sum(y * w2)

    dx2 = jax.block_until_ready(jax.grad(loss2)(feats2))
    expected2 = mask2[:, None] * (-0.75) * w2
    assert dx2.shape == (B2, F2) and dx2.dtype == jnp.float32
    assert jnp.allclose(dx2, expected2, rtol=1e-6, atol=1e-6)

    # ---- 3) Pallas path, bf16 grads + bool mask (float0 cotangent path) ----
    B3, F3 = 512, 2048
    feats3 = jax.random.normal(k1, (B3, F3), dtype=jnp.bfloat16)
    mask3 = jax.random.uniform(k2, (B3,)) > 0.5            # bool mask
    w3 = jax.random.normal(k4, (B3, F3), dtype=jnp.bfloat16)
    grl3 = GradientReversal(lambda_=-0.5)

    def loss3(x):
        y, _ = grl3((x, mask3, extra))
        return jnp.sum((y * w3).astype(jnp.float32))

    dx3 = jax.block_until_ready(jax.grad(loss3)(feats3))
    expected3 = (mask3.astype(jnp.float32)[:, None] * (-0.5)
                 * w3.astype(jnp.float32))
    assert dx3.dtype == jnp.bfloat16
    assert jnp.allclose(dx3.astype(jnp.float32), expected3, rtol=2e-2, atol=2e-2)

    print("KERNEL_OK")
</pallas_src>

<mosaic_0001>
module attributes {stable_mosaic.version = 11 : i64} {
  func.func @_grad_scale_kernel(%arg0: i32, %arg1: i32, %arg2: memref<512x1xf32, #tpu.memory_space<vmem>>, %arg3: memref<512x1024xf32, #tpu.memory_space<vmem>>, %arg4: memref<512x1024xf32, #tpu.memory_space<vmem>>) attributes {dimension_semantics = [#tpu.dimension_semantics<parallel>, #tpu.dimension_semantics<parallel>], iteration_bounds = array<i64: 1, 2>, scalar_prefetch = 0 : i64, scratch_operands = 0 : i64, tpu.core_type = #tpu.core_type<tc>, window_params = [{transform_indices = @transform_0, window_bounds = array<i64: 512, 1>}, {transform_indices = @transform_1, window_bounds = array<i64: 512, 1024>}, {transform_indices = @transform_2, window_bounds = array<i64: 512, 1024>}]} {
    %c0 = arith.constant 0 : index
    %c0_0 = arith.constant 0 : index
    %0 = vector.load %arg3[%c0, %c0_0] : memref<512x1024xf32, #tpu.memory_space<vmem>>, vector<512x1024xf32>
    %c0_1 = arith.constant 0 : index
    %c0_2 = arith.constant 0 : index
    %1 = vector.load %arg2[%c0_1, %c0_2] : memref<512x1xf32, #tpu.memory_space<vmem>>, vector<512x1xf32>
    %cst = arith.constant -7.500000e-01 : f32
    %2 = vector.broadcast %cst : f32 to vector<512x1xf32>
    %3 = arith.mulf %1, %2 : vector<512x1xf32>
    %4 = vector.broadcast %3 : vector<512x1xf32> to vector<512x1024xf32>
    %5 = arith.mulf %4, %0 : vector<512x1024xf32>
    %c0_3 = arith.constant 0 : index
    %c0_4 = arith.constant 0 : index
    %6 = vector.load %arg4[%c0_3, %c0_4] : memref<512x1024xf32, #tpu.memory_space<vmem>>, vector<512x1024xf32>
    tpu.vector_store %arg4[%c0_3, %c0_4], %5 {strides = array<i32>} : memref<512x1024xf32, #tpu.memory_space<vmem>>, vector<512x1024xf32>,
    return
  }
  func.func @transform_0(%arg0: i32, %arg1: i32) -> (i32, i32) {
    %c0_i32 = arith.constant 0 : i32
    %c0_i32_0 = arith.constant 0 : i32
    return %arg0, %c0_i32 : i32, i32
  }
  func.func @transform_1(%arg0: i32, %arg1: i32) -> (i32, i32) {
    %c0_i32 = arith.constant 0 : i32
    return %arg0, %arg1 : i32, i32
  }
  func.func @transform_2(%arg0: i32, %arg1: i32) -> (i32, i32) {
    %c0_i32 = arith.constant 0 : i32
    return %arg0, %arg1 : i32, i32
  }
}

</mosaic_0001>

<bundles_post_ra>
// kernel: tpu_custom_call.1
= control target key start
LH: loop header
LB: loop body
LE: loop exit
PB: predicated region body
PF: predicated region fallthrough
CT: control target
= control target key end

     0   :  { %7 = vsyncpa [#allocation3], 0  ;;  %s3937_s0 = inlined_call_operand.vmem [shape: f32[512,1], index: 0, kind: input, shape index: {}]   ;;  %s3938_s1 = inlined_call_operand.hbm [shape: f32[512,2048], index: 1, kind: input, shape index: {}, may-alias: {1,2}]   ;;  %s3939_s2 = inlined_call_operand.hbm [shape: f32[512,2048], index: 2, kind: output, shape index: {}, may-alias: {1,2}]  }
   0x1   :  { %9 = vsyncpa [#allocation3 + $0x1], 0 }
   0x2   :  { %10 = vsyncpa [#allocation4], 0 }
   0x3   :  { %12 = vsyncpa [#allocation4 + $0x1], 0  ;;  %s2537_s9 = smov 0   ;;  %s2539_s10 = smov 0  }
   0x4   :  { %s2541_s11 = smov 0   ;;  %s2543_s12 = smov 0  }
   0x5   :  { %s2545_s13 = smov 0   ;;  %s2547_s14 = smov 0  }
   0x6 LB: > { %s2310_s15 = sadd.s32 4294967295, %s2511_s14   ;;  %s2311_s16 = sadd.s32 4294967294, %s2511_s14   ;;  %s2511_s14 = sphi %s2547_s14, %s18_s14   ;;  %s2507_s13 = sphi %s2545_s13, %s3953_s13   ;;  %s2503_s12 = sphi %s2543_s12, %s3952_s12   ;;  %s2499_s11 = sphi %s2541_s11, %s3951_s11   ;;  %s2495_s10 = sphi %s2539_s10, %s3950_s10   ;;  %s2491_s9 = sphi %s2537_s9, %s3949_s9  }
   0x7   : > { %s27_s17 = sadd.s32 1, %s2507_s13  ;;  %s65_s18 = sadd.s32 1, %s2499_s11 }
   0x8   : > { %p28_p0 = scmp.ge.s32.totalorder %s27_s17, 2  ;;  %p72_p1 = scmp.ne.s32.totalorder %s2499_s11, %s2495_s10 }
   0x9   : > { %p73_p2 = scmp.eq.s32.totalorder %s2511_s14, 0  ;;  %p78_p3 = scmp.ne.s32.totalorder %s2495_s10, %s2491_s9 }
   0xa   : > { %s3955_s17 = smov (%p28_p0, %s27_s17), 0  ;;  %p79_p5 = scmp.eq.s32.totalorder %s2310_s15, 0 }
   0xb   : > { %p2578_p4 = por %p73_p2, %p72_p1  ;;  %s61_s20 = ssub.s32 %s2507_s13, %s3955_s17 }
   0xc   : > { %p104_p6 = scmp.eq.s32.totalorder %s2310_s15, 1  ;;  %p63_p7 = scmp.eq.s32.totalorder %s61_s20, 0 }
   0xd   : > { %p2584_p8 = por %p79_p5, %p78_p3  ;;  %p110_p10 = scmp.eq.s32.totalorder %s2311_s16, 1 }
   0xe   : > { %p2588_p9 = por %p104_p6, %p72_p1  ;;  %p2340_p13 = scmp.lt.s32.totalorder %s2511_s14, 2 }
   0xf   : > { %s2593_s23 = scalar_select %p63_p7, %s2499_s11, %s65_s18  }
  0x10   : > { %s3943_s22 = scalar_select %p2588_p9, 1, 0 }
  0x11   : > { %p2595_p11 = por %p110_p10, %p78_p3  ;;  %s139_s25 = sand.u32 1, %s2499_s11  }
  0x12   : > { %s2315_s26 = sshll.u32 %s139_s25, 12  ;;  %s2326_s27 = sshll.u32 %s2507_s13, 10 }
  0x13   : > { %s3944_s24 = scalar_select %p2595_p11, 1, 0 }
  0x14   : > { %s2606_s30 = scalar_lea.hbm %s3938_s1, %s2326_s27  ;;  %s143_s3 = scalar_lea.vmem [#allocation2], %s2315_s26 }
  0x15   : > { %s153_s4 = sshll.u32 %s143_s3, 4  ;;  %p2612_p0 = pnand %p2340_p13, %p2578_p4  ;;  %s2608_s4 = int_to_ptr.vmem [resolvable:$true] %s153_s4 }
  0x16   : > { %s2616_s6 = scalar_lea.sflag [#allocation3], %s139_s25  ;;  %s2399_s7 = scalar_lea.hbm %s2606_s30, 65536 }
  0x17   : > { %p2400_p1 = scmp.ne.s32.totalorder %s2606_s30, %s2399_s7  ;;  %p2401_p2 = pneg %p2612_p0 }
  0x18   : > { %s2404_s16 = scalar_lea.hbm %s3938_s1, 131072  ;;  %p2405_p4 = scmp.lt.u32.totalorder %s2606_s30, %s3938_s1 }
  0x19   : > { %p2402_p3 = pnand %p2401_p2, %p2400_p1  ;;  %p2406_p6 = scmp.lt.u32.totalorder %s2404_s16, %s2399_s7 }
  0x1a   : > { %p2408_p10 = scmp.lt.u32.totalorder %s2399_s7, %s2606_s30 }
  0x1b   : > { %p2403_p5 = pneg %p2402_p3  ;;  %p2407_p7 = por %p2406_p6, %p2405_p4 }
  0x1d   : > { %p2409_p13 = por %p2408_p10, %p2407_p7 }
  0x1f   : > { %p2410_p12 = pnand %p2409_p13, %p2403_p5 }
  0x21   : > { %2413 = shalt.err (!%p2410_p12)
}
  0x22   : > { %s2414_s20 = scalar_lea.vmem %s2608_s4, 65536  ;;  %s2513_s25 = smov [#allocation2]  }
  0x23   : > { %p2415_p1 = scmp.ne.s32.totalorder %s2608_s4, %s2414_s20  ;;  %s2419_s26 = sshll.u32 %s2513_s25, 4  ;;  %s2420_s26 = int_to_ptr.vmem [resolvable:$false] %s2419_s26 }
  0x24   : > { %s2421_s27 = scalar_lea.vmem %s2420_s26, 131072  ;;  %p2422_p9 = scmp.lt.s32.totalorder %s2608_s4, %s2420_s26 }
  0x25   : > { %p2417_p3 = pnand %p2415_p1, %p2401_p2  ;;  %p2423_p4 = scmp.lt.s32.totalorder %s2421_s27, %s2414_s20 }
  0x27   : > { %p2418_p11 = pneg %p2417_p3  ;;  %p2424_p6 = por %p2423_p4, %p2422_p9 }
  0x29   : > { %p2425_p7 = pnand %p2424_p6, %p2418_p11 }
  0x2b   : > { %2428 = shalt.err (!%p2425_p7)
}
  0x2c   : > { %s2514_s28 = smov 2048   ;;  %s2515_s29 = smov 1024  }
  0x2d   : > { %s2516_s3 = smov 64   ;;  %p2318_p12 = scmp.ge.s32.totalorder %s2511_s14, 1 }
  0x2e   : > { %2335 = dma.hbm_to_vmem [thread:$0]  (!%p2612_p0), %s2606_s30, 65536, %s2608_s4, %s2616_s6, %s2514_s28, %s2515_s29, %s2516_s3  }
  0x2f   : > { %p161_p2 = scmp.lt.s32.totalorder %s2511_s14, 3 }
  0x31   : > { %p162_p5 = pnand %p2318_p12, %p161_p2 }
  0x32   : > { %s2647_s7 = sand.u32 (!%p162_p5), 1, %s2495_s10  }
  0x33   : > { %165 = sbr.rel (%p162_p5) target bundleno = 463 (0x1cf), region = 28  ;;  %s2319_s8 = sshll.u32 (!%p162_p5), %s2647_s7, 12 }
  0x34   : > { %s168_s15 = scalar_lea.sflag (!%p162_p5), [#allocation3], %s2647_s7  ;;  %s2653_s16 = scalar_lea.vmem (!%p162_p5), [#allocation2], %s2319_s8 }
  0x3a   : > { %2482 = dma.done.wait (%p2584_p8), %s168_s15, 65536  }
  0x3b   : > { %2484 = vsyncadd (%p2584_p8), %s168_s15, 4294901760  ;;  %v2517_v0 = vmov 0   ;;  %v721_v1 = vld [vmem:[%s3937_s0 + $0x10] sm:$0xff]  ;;  %v719_v2 = vld [vmem:[%s3937_s0] sm:$0xff]  ;;  %s2881_s25 = scalar_lea.vmem [#allocation5], %s2319_s8  ;;  %s2327_s8 = sshll.u32 %s2503_s12, 10 }
  0x3c   : > { %2398 = vset.pattern.permute.xlu1 %v2517_v0  ;;  %2397 = vset.pattern.permute.xlu0 %v2517_v0  ;;  %v722_v3 = vld [vmem:[%s3937_s0 + $0x18] sm:$0xff]  ;;  %v785_v4 = vmul.f32 -0.75, %v721_v1  ;;  %v783_v5 = vmul.f32 -0.75, %v719_v2  ;;  %v720_v6 = vld [vmem:[%s3937_s0 + $0x8] sm:$0xff]  ;;  %v723_v10 = vld [vmem:[%s3937_s0 + $0x20] sm:$0xff]  ;;  %s2208_s26 = sshll.u32 %s2881_s25, 4  ;;  %s3870_s29 = scalar_lea.hbm %s3939_s2, %s2327_s8  ;;  %s3876_s26 = int_to_ptr.vmem [resolvable:$true] %s2208_s26 }
  0x3d   : > { %v786_v7 = vmul.f32 -0.75, %v722_v3  ;;  %v784_v8 = vmul.f32 -0.75, %v720_v6  ;;  %v724_v9 = vld [vmem:[%s3937_s0 + $0x28] sm:$0xff]  ;;  %v787_v12 = vmul.f32 -0.75, %v723_v10  ;;  %v726_v13 = vld [vmem:[%s3937_s0 + $0x38] sm:$0xff]  ;;  %v725_v14 = vld [vmem:[%s3937_s0 + $0x30] sm:$0xff] }
  0x3e   : > { %859 = vperm.xlu1 %2398, %v785_v4   ;;  %849 = vperm.xlu0 %2397, %v783_v5   ;;  %v788_v11 = vmul.f32 -0.75, %v724_v9  ;;  %v790_v15 = vmul.f32 -0.75, %v726_v13  ;;  %v789_v16 = vmul.f32 -0.75, %v725_v14  ;;  %v728_v17 = vld [vmem:[%s3937_s0 + $0x48] sm:$0xff]  ;;  %v727_v18 = vld [vmem:[%s3937_s0 + $0x40] sm:$0xff]  ;;  %v730_v21 = vld [vmem:[%s3937_s0 + $0x58] sm:$0xff] }
  0x3f   : > { %v792_v19 = vmul.f32 -0.75, %v728_v17  ;;  %v791_v20 = vmul.f32 -0.75, %v727_v18  ;;  %v729_v22 = vld [vmem:[%s3937_s0 + $0x50] sm:$0xff]  ;;  %v794_v23 = vmul.f32 -0.75, %v730_v21  ;;  %v732_v25 = vld [vmem:[%s3937_s0 + $0x68] sm:$0xff]  ;;  %v731_v26 = vld [vmem:[%s3937_s0 + $0x60] sm:$0xff] }
  0x40   : > { %v793_v24 = vmul.f32 -0.75, %v729_v22  ;;  %v796_v27 = vmul.f32 -0.75, %v732_v25  ;;  %v795_v28 = vmul.f32 -0.75, %v731_v26  ;;  %v734_v29 = vld [vmem:[%s3937_s0 + $0x78] sm:$0xff]  ;;  %v733_v30 = vld [vmem:[%s3937_s0 + $0x70] sm:$0xff]  ;;  %v736_v33 = vld [vmem:[%s3937_s0 + $0x88] sm:$0xff] }
  0x41   : > { %v798_v31 = vmul.f32 -0.75, %v734_v29  ;;  %v797_v32 = vmul.f32 -0.75, %v733_v30  ;;  %v735_v34 = vld [vmem:[%s3937_s0 + $0x80] sm:$0xff]  ;;  %v800_v35 = vmul.f32 -0.75, %v736_v33  ;;  %v738_v37 = vld [vmem:[%s3937_s0 + $0x98] sm:$0xff]  ;;  %v737_v38 = vld [vmem:[%s3937_s0 + $0x90] sm:$0xff] }
  0x42   : > { %864 = vperm.xlu1 %2398, %v786_v7   ;;  %854 = vperm.xlu0 %2397, %v784_v8   ;;  %v799_v36 = vmul.f32 -0.75, %v735_v34  ;;  %v802_v39 = vmul.f32 -0.75, %v738_v37  ;;  %v801_v40 = vmul.f32 -0.75, %v737_v38  ;;  %v740_v41 = vld [vmem:[%s3937_s0 + $0xa8] sm:$0xff]  ;;  %v739_v42 = vld [vmem:[%s3937_s0 + $0xa0] sm:$0xff]  ;;  %v742_v45 = vld [vmem:[%s3937_s0 + $0xb8] sm:$0xff] }
  0x43   : > { %v804_v43 = vmul.f32 -0.75, %v740_v41  ;;  %v803_v44 = vmul.f32 -0.75, %v739_v42  ;;  %v741_v46 = vld [vmem:[%s3937_s0 + $0xb0] sm:$0xff]  ;;  %v806_v47 = vmul.f32 -0.75, %v742_v45  ;;  %v744_v49 = vld [vmem:[%s3937_s0 + $0xc8] sm:$0xff]  ;;  %v743_v50 = vld [vmem:[%s3937_s0 + $0xc0] sm:$0xff] }
  0x44   : > { %v805_v48 = vmul.f32 -0.75, %v741_v46  ;;  %v808_v51 = vmul.f32 -0.75, %v744_v49  ;;  %v807_v52 = vmul.f32 -0.75, %v743_v50  ;;  %v746_v53 = vld [vmem:[%s3937_s0 + $0xd8] sm:$0xff]  ;;  %v745_v54 = vld [vmem:[%s3937_s0 + $0xd0] sm:$0xff]  ;;  %v748_v57 = vld [vmem:[%s3937_s0 + $0xe8] sm:$0xff] }
  0x45   : > { %v810_v55 = vmul.f32 -0.75, %v746_v53  ;;  %v809_v56 = vmul.f32 -0.75, %v745_v54  ;;  %v747_v58 = vld [vmem:[%s3937_s0 + $0xe0] sm:$0xff]  ;;  %v812_v59 = vmul.f32 -0.75, %v748_v57  ;;  %v750_v61 = vld [vmem:[%s3937_s0 + $0xf8] sm:$0xff]  ;;  %v749_v62 = vld [vmem:[%s3937_s0 + $0xf0] sm:$0xff] }
  0x46   : > { %874 = vperm.xlu1 %2398, %v788_v11   ;;  %869 = vperm.xlu0 %2397, %v787_v12   ;;  %v811_v60 = vmul.f32 -0.75, %v747_v58  ;;  %v814_v63 = vmul.f32 -0.75, %v750_v61  ;;  %v813_v0 = vmul.f32 -0.75, %v749_v62  ;;  %v752_v1 = vld [vmem:[%s3937_s0 + $0x108] sm:$0xff]  ;;  %v751_v2 = vld [vmem:[%s3937_s0 + $0x100] sm:$0xff]  ;;  %v754_v5 = vld [vmem:[%s3937_s0 + $0x118] sm:$0xff] }
  0x47   : > { %v816_v3 = vmul.f32 -0.75, %v752_v1  ;;  %v815_v4 = vmul.f32 -0.75, %v751_v2  ;;  %v753_v6 = vld [vmem:[%s3937_s0 + $0x110] sm:$0xff]  ;;  %v818_v7 = vmul.f32 -0.75, %v754_v5  ;;  %v756_v9 = vld [vmem:[%s3937_s0 + $0x128] sm:$0xff]  ;;  %v755_v10 = vld [vmem:[%s3937_s0 + $0x120] sm:$0xff] }
  0x48   : > { %v817_v8 = vmul.f32 -0.75, %v753_v6  ;;  %v820_v11 = vmul.f32 -0.75, %v756_v9  ;;  %v819_v12 = vmul.f32 -0.75, %v755_v10  ;;  %v758_v13 = vld [vmem:[%s3937_s0 + $0x138] sm:$0xff]  ;;  %v757_v14 = vld [vmem:[%s3937_s0 + $0x130] sm:$0xff]  ;;  %v760_v17 = vld [vmem:[%s3937_s0 + $0x148] sm:$0xff] }
  0x49   : > { %v759_v18 = vld [vmem:[%s3937_s0 + $0x140] sm:$0xff]  ;;  %v762_v21 = vld [vmem:[%s3937_s0 + $0x158] sm:$0xff]  ;;  %v761_v22 = vld [vmem:[%s3937_s0 + $0x150] sm:$0xff]  ;;  %s2192_s12 = scalar_lea.sflag [#allocation4], %s2647_s7  ;;  %p3946_p9 = scmp.ne.s32.totalorder %s3943_s22, 0 }
  0x4a   : > { %884 = vperm.xlu1 %2398, %v790_v15   ;;  %879 = vperm.xlu0 %2397, %v789_v16   ;;  %v822_v15 = vmul.f32 -0.75, %v758_v13  ;;  %v821_v16 = vmul.f32 -0.75, %v757_v14  ;;  %v764_v25 = vld [vmem:[%s3937_s0 + $0x168] sm:$0xff]  ;;  %v763_v26 = vld [vmem:[%s3937_s0 + $0x160] sm:$0xff]  ;;  %v766_v29 = vld [vmem:[%s3937_s0 + $0x178] sm:$0xff]  ;;  %s2518_s3 = smov [#allocation5]  }
  0x4b   : > { %v765_v30 = vld [vmem:[%s3937_s0 + $0x170] sm:$0xff]  ;;  %v768_v33 = vld [vmem:[%s3937_s0 + $0x188] sm:$0xff]  ;;  %v767_v34 = vld [vmem:[%s3937_s0 + $0x180] sm:$0xff]  ;;  %s2433_s15 = sshll.u32 %s2518_s3, 4  ;;  %s2434_s15 = int_to_ptr.vmem [resolvable:$false] %s2433_s15 }
  0x4c   : > { %v770_v37 = vld [vmem:[%s3937_s0 + $0x198] sm:$0xff]  ;;  %v769_v38 = vld [vmem:[%s3937_s0 + $0x190] sm:$0xff]  ;;  %v772_v41 = vld [vmem:[%s3937_s0 + $0x1a8] sm:$0xff]  ;;  %s2435_s30 = scalar_lea.vmem %s2434_s15, 131072  ;;  %p2436_p10 = scmp.lt.s32.totalorder %s3876_s26, %s2434_s15 }
  0x4d   : > { %v771_v42 = vld [vmem:[%s3937_s0 + $0x1a0] sm:$0xff]  ;;  %v774_v45 = vld [vmem:[%s3937_s0 + $0x1b8] sm:$0xff]  ;;  %v773_v46 = vld [vmem:[%s3937_s0 + $0x1b0] sm:$0xff] }
  0x4e   : > { %894 = vperm.xlu1 %2398, %v792_v19   ;;  %889 = vperm.xlu0 %2397, %v791_v20   ;;  %v824_v19 = vmul.f32 -0.75, %v760_v17  ;;  %v823_v20 = vmul.f32 -0.75, %v759_v18  ;;  %v776_v49 = vld [vmem:[%s3937_s0 + $0x1c8] sm:$0xff]  ;;  %v775_v50 = vld [vmem:[%s3937_s0 + $0x1c0] sm:$0xff]  ;;  %v778_v53 = vld [vmem:[%s3937_s0 + $0x1d8] sm:$0xff] }
  0x4f   : > { %v777_v54 = vld [vmem:[%s3937_s0 + $0x1d0] sm:$0xff]  ;;  %v780_v57 = vld [vmem:[%s3937_s0 + $0x1e8] sm:$0xff]  ;;  %v779_v58 = vld [vmem:[%s3937_s0 + $0x1e0] sm:$0xff] }
  0x50   : > { %v782_v61 = vld [vmem:[%s3937_s0 + $0x1f8] sm:$0xff]  ;;  %v781_v62 = vld [vmem:[%s3937_s0 + $0x1f0] sm:$0xff]  ;;  %v223_v1 = vld [vmem:[%s2653_s16 + $0x80] sm:$0xff] }
  0x51   : > { %v224_v2 = vld [vmem:[%s2653_s16 + $0x88] sm:$0xff]  ;;  %v227_v5 = vld [vmem:[%s2653_s16 + $0xa0] sm:$0xff] }
  0x52   : > { %904 = vperm.xlu1 %2398, %v794_v23   ;;  %899 = vperm.xlu0 %2397, %v793_v24   ;;  %v826_v23 = vmul.f32 -0.75, %v762_v21  ;;  %v825_v24 = vmul.f32 -0.75, %v761_v22  ;;  %v228_v6 = vld [vmem:[%s2653_s16 + $0xa8] sm:$0xff]  ;;  %v207_v9 = vld [vmem:[%s2653_s16] sm:$0xff]  ;;  %v233_v21 = vld [vmem:[%s2653_s16 + $0xd0] sm:$0xff] }
  0x53   : > { %v208_v10 = vld [vmem:[%s2653_s16 + $0x8] sm:$0xff]  ;;  %v211_v13 = vld [vmem:[%s2653_s16 + $0x20] sm:$0xff]  ;;  %v234_v22 = vld [vmem:[%s2653_s16 + $0xd8] sm:$0xff] }
  0x54   : > { %v212_v14 = vld [vmem:[%s2653_s16 + $0x28] sm:$0xff] }
  0x56   : > { %914 = vperm.xlu1 %2398, %v796_v27   ;;  %909 = vperm.xlu0 %2397, %v795_v28   ;;  %v828_v27 = vmul.f32 -0.75, %v764_v25  ;;  %v827_v28 = vmul.f32 -0.75, %v763_v26 }
  0x5a   : > { %924 = vperm.xlu1 %2398, %v798_v31   ;;  %919 = vperm.xlu0 %2397, %v797_v32   ;;  %v830_v31 = vmul.f32 -0.75, %v766_v29  ;;  %v829_v32 = vmul.f32 -0.75, %v765_v30  ;;  %v237_v29 = vld [vmem:[%s2653_s16 + $0xf0] sm:$0xff]  ;;  %v238_v30 = vld [vmem:[%s2653_s16 + $0xf8] sm:$0xff] }
  0x5e   : > { %934 = vperm.xlu1 %2398, %v800_v35   ;;  %929 = vperm.xlu0 %2397, %v799_v36   ;;  %v832_v35 = vmul.f32 -0.75, %v768_v33  ;;  %v831_v36 = vmul.f32 -0.75, %v767_v34 }
  0x62   : > { %944 = vperm.xlu1 %2398, %v802_v39   ;;  %939 = vperm.xlu0 %2397, %v801_v40   ;;  %v834_v39 = vmul.f32 -0.75, %v770_v37  ;;  %v833_v40 = vmul.f32 -0.75, %v769_v38  ;;  %v217_v37 = vld [vmem:[%s2653_s16 + $0x50] sm:$0xff]  ;;  %v218_v38 = vld [vmem:[%s2653_s16 + $0x58] sm:$0xff] }
  0x66   : > { %954 = vperm.xlu1 %2398, %v804_v43   ;;  %949 = vperm.xlu0 %2397, %v803_v44   ;;  %v836_v43 = vmul.f32 -0.75, %v772_v41  ;;  %v835_v44 = vmul.f32 -0.75, %v771_v42 }
  0x6a   : > { %964 = vperm.xlu1 %2398, %v806_v47   ;;  %959 = vperm.xlu0 %2397, %v805_v48   ;;  %v838_v47 = vmul.f32 -0.75, %v774_v45  ;;  %v837_v48 = vmul.f32 -0.75, %v773_v46  ;;  %v221_v45 = vld [vmem:[%s2653_s16 + $0x70] sm:$0xff]  ;;  %v222_v46 = vld [vmem:[%s2653_s16 + $0x78] sm:$0xff] }
  0x6e   : > { %974 = vperm.xlu1 %2398, %v808_v51   ;;  %969 = vperm.xlu0 %2397, %v807_v52   ;;  %v840_v51 = vmul.f32 -0.75, %v776_v49  ;;  %v839_v52 = vmul.f32 -0.75, %v775_v50 }
  0x72   : > { %984 = vperm.xlu1 %2398, %v810_v55   ;;  %979 = vperm.xlu0 %2397, %v809_v56   ;;  %v842_v55 = vmul.f32 -0.75, %v778_v53  ;;  %v841_v56 = vmul.f32 -0.75, %v777_v54  ;;  %v247_v53 = vld [vmem:[%s2653_s16 + $0x140] sm:$0xff]  ;;  %v248_v54 = vld [vmem:[%s2653_s16 + $0x148] sm:$0xff] }
  0x76   : > { %994 = vperm.xlu1 %2398, %v812_v59   ;;  %989 = vperm.xlu0 %2397, %v811_v60   ;;  %v844_v59 = vmul.f32 -0.75, %v780_v57  ;;  %v843_v60 = vmul.f32 -0.75, %v779_v58 }
  0x7a   : > { %1004 = vperm.xlu1 %2398, %v814_v63   ;;  %999 = vperm.xlu0 %2397, %v813_v0   ;;  %v846_v63 = vmul.f32 -0.75, %v782_v61  ;;  %v845_v0 = vmul.f32 -0.75, %v781_v62  ;;  %v251_v61 = vld [vmem:[%s2653_s16 + $0x160] sm:$0xff]  ;;  %v252_v62 = vld [vmem:[%s2653_s16 + $0x168] sm:$0xff] }
  0x7e   : > { %1014 = vperm.xlu1 %2398, %v816_v3   ;;  %1009 = vperm.xlu0 %2397, %v815_v4   ;;  %v225_v3 = vld [vmem:[%s2653_s16 + $0x90] sm:$0xff]  ;;  %v226_v4 = vld [vmem:[%s2653_s16 + $0x98] sm:$0xff] }
  0x82   : > { %1024 = vperm.xlu1 %2398, %v818_v7   ;;  %1019 = vperm.xlu0 %2397, %v817_v8   ;;  %v229_v7 = vld [vmem:[%s2653_s16 + $0xb0] sm:$0xff]  ;;  %v230_v8 = vld [vmem:[%s2653_s16 + $0xb8] sm:$0xff] }
  0x86   : > { %1034 = vperm.xlu1 %2398, %v820_v11   ;;  %1029 = vperm.xlu0 %2397, %v819_v12   ;;  %v209_v11 = vld [vmem:[%s2653_s16 + $0x10] sm:$0xff]  ;;  %v210_v12 = vld [vmem:[%s2653_s16 + $0x18] sm:$0xff] }
  0x8a   : > { %1044 = vperm.xlu1 %2398, %v822_v15   ;;  %1039 = vperm.xlu0 %2397, %v821_v16   ;;  %v213_v15 = vld [vmem:[%s2653_s16 + $0x30] sm:$0xff]  ;;  %v214_v16 = vld [vmem:[%s2653_s16 + $0x38] sm:$0xff] }
  0x8e   : > { %1054 = vperm.xlu1 %2398, %v824_v19   ;;  %1049 = vperm.xlu0 %2397, %v823_v20   ;;  %v231_v19 = vld [vmem:[%s2653_s16 + $0xc0] sm:$0xff]  ;;  %v232_v20 = vld [vmem:[%s2653_s16 + $0xc8] sm:$0xff] }
  0x92   : > { %1064 = vperm.xlu1 %2398, %v826_v23   ;;  %1059 = vperm.xlu0 %2397, %v825_v24  }
  0x96   : > { %1074 = vperm.xlu1 %2398, %v828_v27   ;;  %1069 = vperm.xlu0 %2397, %v827_v28   ;;  %v235_v27 = vld [vmem:[%s2653_s16 + $0xe0] sm:$0xff]  ;;  %v236_v28 = vld [vmem:[%s2653_s16 + $0xe8] sm:$0xff] }
  0x9a   : > { %1084 = vperm.xlu1 %2398, %v830_v31   ;;  %1079 = vperm.xlu0 %2397, %v829_v32  }
  0x9e   : > { %1094 = vperm.xlu1 %2398, %v832_v35   ;;  %1089 = vperm.xlu0 %2397, %v831_v36   ;;  %v215_v35 = vld [vmem:[%s2653_s16 + $0x40] sm:$0xff]  ;;  %v216_v36 = vld [vmem:[%s2653_s16 + $0x48] sm:$0xff] }
  0xa2   : > { %1104 = vperm.xlu1 %2398, %v834_v39   ;;  %1099 = vperm.xlu0 %2397, %v833_v40  }
  0xa6   : > { %1114 = vperm.xlu1 %2398, %v836_v43   ;;  %1109 = vperm.xlu0 %2397, %v835_v44   ;;  %v219_v43 = vld [vmem:[%s2653_s16 + $0x60] sm:$0xff]  ;;  %v220_v44 = vld [vmem:[%s2653_s16 + $0x68] sm:$0xff] }
  0xaa   : > { %1124 = vperm.xlu1 %2398, %v838_v47   ;;  %1119 = vperm.xlu0 %2397, %v837_v48  }
  0xae   : > { %1134 = vperm.xlu1 %2398, %v840_v51   ;;  %1129 = vperm.xlu0 %2397, %v839_v52  }
  0xb2   : > { %1144 = vperm.xlu1 %2398, %v842_v55   ;;  %1139 = vperm.xlu0 %2397, %v841_v56   ;;  %v249_v55 = vld [vmem:[%s2653_s16 + $0x150] sm:$0xff]  ;;  %v250_v56 = vld [vmem:[%s2653_s16 + $0x158] sm:$0xff] }
  0xb6   : > { %1154 = vperm.xlu1 %2398, %v844_v59   ;;  %1149 = vperm.xlu0 %2397, %v843_v60  }
  0xba   : > { %1164 = vperm.xlu1 %2398, %v846_v63   ;;  %1159 = vperm.xlu0 %2397, %v845_v0   ;;  %v253_v63 = vld [vmem:[%s2653_s16 + $0x170] sm:$0xff]  ;;  %v254_v0 = vld [vmem:[%s2653_s16 + $0x178] sm:$0xff] }
  0xbd   : > { %v860_v17 = vpop.permute.xlu1 %859  ;;  %v850_v18 = vpop.permute.xlu0 %849 }
  0xbe   : > { %v1183_v23 = vmul.f32 %v860_v17, %v223_v1  ;;  %v1184_v24 = vmul.f32 %v860_v17, %v224_v2  ;;  %v1185_v25 = vmul.f32 %v860_v17, %v225_v3  ;;  %v1186_v26 = vmul.f32 %v860_v17, %v226_v4 }
  0xbf   : > { %v1187_v31 = vmul.f32 %v860_v17, %v227_v5  ;;  %v1188_v32 = vmul.f32 %v860_v17, %v228_v6  ;;  %v1189_v33 = vmul.f32 %v860_v17, %v229_v7  ;;  %v1190_v34 = vmul.f32 %v860_v17, %v230_v8  ;;  %v239_v5 = vld [vmem:[%s2653_s16 + $0x100] sm:$0xff]  ;;  %v240_v6 = vld [vmem:[%s2653_s16 + $0x108] sm:$0xff]  ;;  %v241_v7 = vld [vmem:[%s2653_s16 + $0x110] sm:$0xff] }
  0xc0   : > { %1695 = vst [vmem:[%s2881_s25 + $0x80] sm:$0xff] %v1183_v23  ;;  %1696 = vst [vmem:[%s2881_s25 + $0x88] sm:$0xff] %v1184_v24  ;;  %v1167_v39 = vmul.f32 %v850_v18, %v207_v9  ;;  %v1168_v40 = vmul.f32 %v850_v18, %v208_v10  ;;  %v1169_v41 = vmul.f32 %v850_v18, %v209_v11  ;;  %v242_v8 = vld [vmem:[%s2653_s16 + $0x118] sm:$0xff]  ;;  %v263_v23 = vld [vmem:[%s2653_s16 + $0x1c0] sm:$0xff] }
  0xc1   : > { %1697 = vst [vmem:[%s2881_s25 + $0x90] sm:$0xff] %v1185_v25  ;;  %1698 = vst [vmem:[%s2881_s25 + $0x98] sm:$0xff] %v1186_v26  ;;  %v1170_v42 = vmul.f32 %v850_v18, %v210_v12  ;;  %v1171_v47 = vmul.f32 %v850_v18, %v211_v13  ;;  %v1172_v48 = vmul.f32 %v850_v18, %v212_v14  ;;  %v865_v51 = vpop.permute.xlu1 %864  ;;  %v855_v52 = vpop.permute.xlu0 %854  ;;  %v243_v13 = vld [vmem:[%s2653_s16 + $0x120] sm:$0xff]  ;;  %v244_v14 = vld [vmem:[%s2653_s16 + $0x128] sm:$0xff] }
  0xc2   : > { %1699 = vst [vmem:[%s2881_s25 + $0xa0] sm:$0xff] %v1187_v31  ;;  %1700 = vst [vmem:[%s2881_s25 + $0xa8] sm:$0xff] %v1188_v32  ;;  %v1173_v49 = vmul.f32 %v850_v18, %v213_v15  ;;  %v1174_v50 = vmul.f32 %v850_v18, %v214_v16  ;;  %v1191_v57 = vmul.f32 %v865_v51, %v231_v19  ;;  %v245_v15 = vld [vmem:[%s2653_s16 + $0x130] sm:$0xff]  ;;  %v246_v16 = vld [vmem:[%s2653_s16 + $0x138] sm:$0xff] }
  0xc3   : > { %1701 = vst [vmem:[%s2881_s25 + $0xb0] sm:$0xff] %v1189_v33  ;;  %1702 = vst [vmem:[%s2881_s25 + $0xb8] sm:$0xff] %v1190_v34  ;;  %v1192_v58 = vmul.f32 %v865_v51, %v232_v20  ;;  %v1193_v59 = vmul.f32 %v865_v51, %v233_v21  ;;  %v1194_v60 = vmul.f32 %v865_v51, %v234_v22  ;;  %v264_v24 = vld [vmem:[%s2653_s16 + $0x1c8] sm:$0xff]  ;;  %v265_v25 = vld [vmem:[%s2653_s16 + $0x1d0] sm:$0xff] }
  0xc4   : > { %1679 = vst [vmem:[%s2881_s25] sm:$0xff] %v1167_v39  ;;  %1680 = vst [vmem:[%s2881_s25 + $0x8] sm:$0xff] %v1168_v40  ;;  %v1195_v1 = vmul.f32 %v865_v51, %v235_v27  ;;  %v1196_v2 = vmul.f32 %v865_v51, %v236_v28  ;;  %v1197_v3 = vmul.f32 %v865_v51, %v237_v29  ;;  %v266_v26 = vld [vmem:[%s2653_s16 + $0x1d8] sm:$0xff]  ;;  %v267_v31 = vld [vmem:[%s2653_s16 + $0x1e0] sm:$0xff] }
  0xc5   : > { %1681 = vst [vmem:[%s2881_s25 + $0x10] sm:$0xff] %v1169_v41  ;;  %1682 = vst [vmem:[%s2881_s25 + $0x18] sm:$0xff] %v1170_v42  ;;  %v1198_v4 = vmul.f32 %v865_v51, %v238_v30  ;;  %v1175_v9 = vmul.f32 %v855_v52, %v215_v35  ;;  %v1176_v10 = vmul.f32 %v855_v52, %v216_v36  ;;  %v875_v21 = vpop.permute.xlu1 %874  ;;  %v870_v22 = vpop.permute.xlu0 %869  ;;  %v268_v32 = vld [vmem:[%s2653_s16 + $0x1e8] sm:$0xff]  ;;  %v269_v33 = vld [vmem:[%s2653_s16 + $0x1f0] sm:$0xff] }
  0xc6   : > { %1683 = vst [vmem:[%s2881_s25 + $0x20] sm:$0xff] %v1171_v47  ;;  %1684 = vst [vmem:[%s2881_s25 + $0x28] sm:$0xff] %v1172_v48  ;;  %v1177_v11 = vmul.f32 %v855_v52, %v217_v37  ;;  %v1178_v12 = vmul.f32 %v855_v52, %v218_v38  ;;  %v1179_v17 = vmul.f32 %v855_v52, %v219_v43  ;;  %v270_v34 = vld [vmem:[%s2653_s16 + $0x1f8] sm:$0xff]  ;;  %v255_v39 = vld [vmem:[%s2653_s16 + $0x180] sm:$0xff] }
  0xc7   : > { %1685 = vst [vmem:[%s2881_s25 + $0x30] sm:$0xff] %v1173_v49  ;;  %1686 = vst [vmem:[%s2881_s25 + $0x38] sm:$0xff] %v1174_v50  ;;  %v1180_v18 = vmul.f32 %v855_v52, %v220_v44  ;;  %v1181_v19 = vmul.f32 %v855_v52, %v221_v45  ;;  %v1182_v20 = vmul.f32 %v855_v52, %v222_v46  ;;  %v256_v40 = vld [vmem:[%s2653_s16 + $0x188] sm:$0xff]  ;;  %v257_v41 = vld [vmem:[%s2653_s16 + $0x190] sm:$0xff] }
  0xc8   : > { %1703 = vst [vmem:[%s2881_s25 + $0xc0] sm:$0xff] %v1191_v57  ;;  %1704 = vst [vmem:[%s2881_s25 + $0xc8] sm:$0xff] %v1192_v58  ;;  %v1207_v27 = vmul.f32 %v875_v21, %v247_v53  ;;  %v1208_v28 = vmul.f32 %v875_v21, %v248_v54  ;;  %v1209_v29 = vmul.f32 %v875_v21, %v249_v55  ;;  %v258_v42 = vld [vmem:[%s2653_s16 + $0x198] sm:$0xff]  ;;  %v259_v47 = vld [vmem:[%s2653_s16 + $0x1a0] sm:$0xff] }
  0xc9   : > { %1705 = vst [vmem:[%s2881_s25 + $0xd0] sm:$0xff] %v1193_v59  ;;  %1706 = vst [vmem:[%s2881_s25 + $0xd8] sm:$0xff] %v1194_v60  ;;  %v1210_v30 = vmul.f32 %v875_v21, %v250_v56  ;;  %v1211_v35 = vmul.f32 %v875_v21, %v251_v61  ;;  %v1212_v36 = vmul.f32 %v875_v21, %v252_v62  ;;  %v260_v48 = vld [vmem:[%s2653_s16 + $0x1a8] sm:$0xff]  ;;  %v261_v49 = vld [vmem:[%s2653_s16 + $0x1b0] sm:$0xff]  ;;  %v885_v55 = vpop.permute.xlu1 %884  ;;  %v880_v56 = vpop.permute.xlu0 %879 }
  0xca   : > { %1707 = vst [vmem:[%s2881_s25 + $0xe0] sm:$0xff] %v1195_v1  ;;  %1708 = vst [vmem:[%s2881_s25 + $0xe8] sm:$0xff] %v1196_v2  ;;  %v1213_v37 = vmul.f32 %v875_v21, %v253_v63  ;;  %v1214_v38 = vmul.f32 %v875_v21, %v254_v0  ;;  %v1199_v43 = vmul.f32 %v870_v22, %v239_v5  ;;  %v262_v50 = vld [vmem:[%s2653_s16 + $0x1b8] sm:$0xff]  ;;  %v279_v57 = vld [vmem:[%s2653_s16 + $0x240] sm:$0xff] }
  0xcb   : > { %1709 = vst [vmem:[%s2881_s25 + $0xf0] sm:$0xff] %v1197_v3  ;;  %1710 = vst [vmem:[%s2881_s25 + $0xf8] sm:$0xff] %v1198_v4  ;;  %v1200_v44 = vmul.f32 %v870_v22, %v240_v6  ;;  %v1201_v45 = vmul.f32 %v870_v22, %v241_v7  ;;  %v1202_v46 = vmul.f32 %v870_v22, %v242_v8  ;;  %v280_v58 = vld [vmem:[%s2653_s16 + $0x248] sm:$0xff]  ;;  %v281_v59 = vld [vmem:[%s2653_s16 + $0x250] sm:$0xff] }
  0xcc   : > { %1687 = vst [vmem:[%s2881_s25 + $0x40] sm:$0xff] %v1175_v9  ;;  %1688 = vst [vmem:[%s2881_s25 + $0x48] sm:$0xff] %v1176_v10  ;;  %v1203_v51 = vmul.f32 %v870_v22, %v243_v13  ;;  %v1204_v52 = vmul.f32 %v870_v22, %v244_v14  ;;  %v1205_v53 = vmul.f32 %v870_v22, %v245_v15  ;;  %v282_v60 = vld [vmem:[%s2653_s16 + $0x258] sm:$0xff]  ;;  %v283_v1 = vld [vmem:[%s2653_s16 + $0x260] sm:$0xff] }
  0xcd   : > { %1689 = vst [vmem:[%s2881_s25 + $0x50] sm:$0xff] %v1177_v11  ;;  %1690 = vst [vmem:[%s2881_s25 + $0x58] sm:$0xff] %v1178_v12  ;;  %v1206_v54 = vmul.f32 %v870_v22, %v246_v16  ;;  %v1223_v61 = vmul.f32 %v885_v55, %v263_v23  ;;  %v1224_v62 = vmul.f32 %v885_v55, %v264_v24  ;;  %v284_v2 = vld [vmem:[%s2653_s16 + $0x268] sm:$0xff]  ;;  %v285_v3 = vld [vmem:[%s2653_s16 + $0x270] sm:$0xff] }
  0xce   : > { %1691 = vst [vmem:[%s2881_s25 + $0x60] sm:$0xff] %v1179_v17  ;;  %1692 = vst [vmem:[%s2881_s25 + $0x68] sm:$0xff] %v1180_v18  ;;  %v1225_v63 = vmul.f32 %v885_v55, %v265_v25  ;;  %v1226_v0 = vmul.f32 %v885_v55, %v266_v26  ;;  %v286_v4 = vld [vmem:[%s2653_s16 + $0x278] sm:$0xff]  ;;  %v1227_v5 = vmul.f32 %v885_v55, %v267_v31  ;;  %v271_v9 = vld [vmem:[%s2653_s16 + $0x200] sm:$0xff]  ;;  %v895_v25 = vpop.permute.xlu1 %894  ;;  %v890_v26 = vpop.permute.xlu0 %889 }
  0xcf   : > { %1693 = vst [vmem:[%s2881_s25 + $0x70] sm:$0xff] %v1181_v19  ;;  %1694 = vst [vmem:[%s2881_s25 + $0x78] sm:$0xff] %v1182_v20  ;;  %v1228_v6 = vmul.f32 %v885_v55, %v268_v32  ;;  %v1229_v7 = vmul.f32 %v885_v55, %v269_v33  ;;  %v1230_v8 = vmul.f32 %v885_v55, %v270_v34  ;;  %v272_v10 = vld [vmem:[%s2653_s16 + $0x208] sm:$0xff]  ;;  %v273_v11 = vld [vmem:[%s2653_s16 + $0x210] sm:$0xff] }
  0xd0   : > { %1719 = vst [vmem:[%s2881_s25 + $0x140] sm:$0xff] %v1207_v27  ;;  %1720 = vst [vmem:[%s2881_s25 + $0x148] sm:$0xff] %v1208_v28  ;;  %v274_v12 = vld [vmem:[%s2653_s16 + $0x218] sm:$0xff]  ;;  %v1215_v13 = vmul.f32 %v880_v56, %v255_v39  ;;  %v1216_v14 = vmul.f32 %v880_v56, %v256_v40  ;;  %v1217_v15 = vmul.f32 %v880_v56, %v257_v41  ;;  %v275_v17 = vld [vmem:[%s2653_s16 + $0x220] sm:$0xff] }
  0xd1   : > { %1721 = vst [vmem:[%s2881_s25 + $0x150] sm:$0xff] %v1209_v29  ;;  %1722 = vst [vmem:[%s2881_s25 + $0x158] sm:$0xff] %v1210_v30  ;;  %v1218_v16 = vmul.f32 %v880_v56, %v258_v42  ;;  %v276_v18 = vld [vmem:[%s2653_s16 + $0x228] sm:$0xff]  ;;  %v277_v19 = vld [vmem:[%s2653_s16 + $0x230] sm:$0xff]  ;;  %v1219_v21 = vmul.f32 %v880_v56, %v259_v47  ;;  %v1220_v22 = vmul.f32 %v880_v56, %v260_v48 }
  0xd2   : > { %1723 = vst [vmem:[%s2881_s25 + $0x160] sm:$0xff] %v1211_v35  ;;  %1724 = vst [vmem:[%s2881_s25 + $0x168] sm:$0xff] %v1212_v36  ;;  %v278_v20 = vld [vmem:[%s2653_s16 + $0x238] sm:$0xff]  ;;  %v1221_v23 = vmul.f32 %v880_v56, %v261_v49  ;;  %v1222_v24 = vmul.f32 %v880_v56, %v262_v50  ;;  %v295_v27 = vld [vmem:[%s2653_s16 + $0x2c0] sm:$0xff]  ;;  %v1239_v31 = vmul.f32 %v895_v25, %v279_v57 }
  0xd3   : > { %1725 = vst [vmem:[%s2881_s25 + $0x170] sm:$0xff] %v1213_v37  ;;  %1726 = vst [vmem:[%s2881_s25 + $0x178] sm:$0xff] %v1214_v38  ;;  %v296_v28 = vld [vmem:[%s2653_s16 + $0x2c8] sm:$0xff]  ;;  %v297_v29 = vld [vmem:[%s2653_s16 + $0x2d0] sm:$0xff]  ;;  %v1240_v32 = vmul.f32 %v895_v25, %v280_v58  ;;  %v1241_v33 = vmul.f32 %v895_v25, %v281_v59  ;;  %v1242_v34 = vmul.f32 %v895_v25, %v282_v60  ;;  %v905_v59 = vpop.permute.xlu1 %904  ;;  %v900_v60 = vpop.permute.xlu0 %899 }
  0xd4   : > { %1711 = vst [vmem:[%s2881_s25 + $0x100] sm:$0xff] %v1199_v43  ;;  %1712 = vst [vmem:[%s2881_s25 + $0x108] sm:$0xff] %v1200_v44  ;;  %v298_v30 = vld [vmem:[%s2653_s16 + $0x2d8] sm:$0xff]  ;;  %v299_v35 = vld [vmem:[%s2653_s16 + $0x2e0] sm:$0xff]  ;;  %v1243_v39 = vmul.f32 %v895_v25, %v283_v1  ;;  %v1244_v40 = vmul.f32 %v895_v25, %v284_v2  ;;  %v1245_v41 = vmul.f32 %v895_v25, %v285_v3 }
  0xd5   : > { %1713 = vst [vmem:[%s2881_s25 + $0x110] sm:$0xff] %v1201_v45  ;;  %1714 = vst [vmem:[%s2881_s25 + $0x118] sm:$0xff] %v1202_v46  ;;  %v300_v36 = vld [vmem:[%s2653_s16 + $0x2e8] sm:$0xff]  ;;  %v301_v37 = vld [vmem:[%s2653_s16 + $0x2f0] sm:$0xff]  ;;  %v1246_v42 = vmul.f32 %v895_v25, %v286_v4  ;;  %v1231_v47 = vmul.f32 %v890_v26, %v271_v9  ;;  %v1232_v48 = vmul.f32 %v890_v26, %v272_v10 }
  0xd6   : > { %1715 = vst [vmem:[%s2881_s25 + $0x120] sm:$0xff] %v1203_v51  ;;  %1716 = vst [vmem:[%s2881_s25 + $0x128] sm:$0xff] %v1204_v52  ;;  %v302_v38 = vld [vmem:[%s2653_s16 + $0x2f8] sm:$0xff]  ;;  %v287_v43 = vld [vmem:[%s2653_s16 + $0x280] sm:$0xff]  ;;  %v1233_v49 = vmul.f32 %v890_v26, %v273_v11  ;;  %v1234_v50 = vmul.f32 %v890_v26, %v274_v12  ;;  %v1235_v55 = vmul.f32 %v890_v26, %v275_v17 }
  0xd7   : > { %1717 = vst [vmem:[%s2881_s25 + $0x130] sm:$0xff] %v1205_v53  ;;  %1718 = vst [vmem:[%s2881_s25 + $0x138] sm:$0xff] %v1206_v54  ;;  %v288_v44 = vld [vmem:[%s2653_s16 + $0x288] sm:$0xff]  ;;  %v289_v45 = vld [vmem:[%s2653_s16 + $0x290] sm:$0xff]  ;;  %v1236_v56 = vmul.f32 %v890_v26, %v276_v18  ;;  %v1237_v57 = vmul.f32 %v890_v26, %v277_v19  ;;  %v1238_v58 = vmul.f32 %v890_v26, %v278_v20 }
  0xd8   : > { %1735 = vst [vmem:[%s2881_s25 + $0x1c0] sm:$0xff] %v1223_v61  ;;  %1736 = vst [vmem:[%s2881_s25 + $0x1c8] sm:$0xff] %v1224_v62  ;;  %v290_v46 = vld [vmem:[%s2653_s16 + $0x298] sm:$0xff]  ;;  %v291_v51 = vld [vmem:[%s2653_s16 + $0x2a0] sm:$0xff]  ;;  %v1255_v1 = vmul.f32 %v905_v59, %v295_v27  ;;  %v1256_v2 = vmul.f32 %v905_v59, %v296_v28  ;;  %v1257_v3 = vmul.f32 %v905_v59, %v297_v29  ;;  %v915_v29 = vpop.permute.xlu1 %914 }
  0xd9   : > { %1737 = vst [vmem:[%s2881_s25 + $0x1d0] sm:$0xff] %v1225_v63  ;;  %1738 = vst [vmem:[%s2881_s25 + $0x1d8] sm:$0xff] %v1226_v0  ;;  %v292_v52 = vld [vmem:[%s2653_s16 + $0x2a8] sm:$0xff]  ;;  %v293_v53 = vld [vmem:[%s2653_s16 + $0x2b0] sm:$0xff]  ;;  %v1258_v4 = vmul.f32 %v905_v59, %v298_v30  ;;  %v1259_v9 = vmul.f32 %v905_v59, %v299_v35  ;;  %v1260_v10 = vmul.f32 %v905_v59, %v300_v36  ;;  %v910_v30 = vpop.permute.xlu0 %909 }
  0xda   : > { %1739 = vst [vmem:[%s2881_s25 + $0x1e0] sm:$0xff] %v1227_v5  ;;  %1740 = vst [vmem:[%s2881_s25 + $0x1e8] sm:$0xff] %v1228_v6  ;;  %v294_v54 = vld [vmem:[%s2653_s16 + $0x2b8] sm:$0xff]  ;;  %v311_v61 = vld [vmem:[%s2653_s16 + $0x340] sm:$0xff]  ;;  %v1261_v11 = vmul.f32 %v905_v59, %v301_v37  ;;  %v1262_v12 = vmul.f32 %v905_v59, %v302_v38  ;;  %v1247_v17 = vmul.f32 %v900_v60, %v287_v43 }
  0xdb   : > { %1741 = vst [vmem:[%s2881_s25 + $0x1f0] sm:$0xff] %v1229_v7  ;;  %1742 = vst [vmem:[%s2881_s25 + $0x1f8] sm:$0xff] %v1230_v8  ;;  %v312_v62 = vld [vmem:[%s2653_s16 + $0x348] sm:$0xff]  ;;  %v313_v63 = vld [vmem:[%s2653_s16 + $0x350] sm:$0xff]  ;;  %v1248_v18 = vmul.f32 %v900_v60, %v288_v44  ;;  %v1249_v19 = vmul.f32 %v900_v60, %v289_v45  ;;  %v1250_v20 = vmul.f32 %v900_v60, %v290_v46 }
  0xdc   : > { %1727 = vst [vmem:[%s2881_s25 + $0x180] sm:$0xff] %v1215_v13  ;;  %1728 = vst [vmem:[%s2881_s25 + $0x188] sm:$0xff] %v1216_v14  ;;  %v314_v0 = vld [vmem:[%s2653_s16 + $0x358] sm:$0xff]  ;;  %v315_v5 = vld [vmem:[%s2653_s16 + $0x360] sm:$0xff]  ;;  %v1251_v25 = vmul.f32 %v900_v60, %v291_v51  ;;  %v1252_v26 = vmul.f32 %v900_v60, %v292_v52  ;;  %v1253_v27 = vmul.f32 %v900_v60, %v293_v53 }
  0xdd   : > { %1729 = vst [vmem:[%s2881_s25 + $0x190] sm:$0xff] %v1217_v15  ;;  %1730 = vst [vmem:[%s2881_s25 + $0x198] sm:$0xff] %v1218_v16  ;;  %v316_v6 = vld [vmem:[%s2653_s16 + $0x368] sm:$0xff]  ;;  %v317_v7 = vld [vmem:[%s2653_s16 + $0x370] sm:$0xff]  ;;  %v1254_v28 = vmul.f32 %v900_v60, %v294_v54  ;;  %v1271_v35 = vmul.f32 %v915_v29, %v311_v61  ;;  %v1272_v36 = vmul.f32 %v915_v29, %v312_v62 }
  0xde   : > { %1731 = vst [vmem:[%s2881_s25 + $0x1a0] sm:$0xff] %v1219_v21  ;;  %1732 = vst [vmem:[%s2881_s25 + $0x1a8] sm:$0xff] %v1220_v22  ;;  %v318_v8 = vld [vmem:[%s2653_s16 + $0x378] sm:$0xff]  ;;  %v303_v13 = vld [vmem:[%s2653_s16 + $0x300] sm:$0xff]  ;;  %v1273_v37 = vmul.f32 %v915_v29, %v313_v63  ;;  %v1274_v38 = vmul.f32 %v915_v29, %v314_v0  ;;  %v1275_v43 = vmul.f32 %v915_v29, %v315_v5  ;;  %v925_v63 = vpop.permute.xlu1 %924  ;;  %v920_v0 = vpop.permute.xlu0 %919 }
  0xdf   : > { %1733 = vst [vmem:[%s2881_s25 + $0x1b0] sm:$0xff] %v1221_v23  ;;  %1734 = vst [vmem:[%s2881_s25 + $0x1b8] sm:$0xff] %v1222_v24  ;;  %v304_v14 = vld [vmem:[%s2653_s16 + $0x308] sm:$0xff]  ;;  %v305_v15 = vld [vmem:[%s2653_s16 + $0x310] sm:$0xff]  ;;  %v1276_v44 = vmul.f32 %v915_v29, %v316_v6  ;;  %v1277_v45 = vmul.f32 %v915_v29, %v317_v7  ;;  %v1278_v46 = vmul.f32 %v915_v29, %v318_v8 }
  0xe0   : > { %1751 = vst [vmem:[%s2881_s25 + $0x240] sm:$0xff] %v1239_v31  ;;  %1752 = vst [vmem:[%s2881_s25 + $0x248] sm:$0xff] %v1240_v32  ;;  %v306_v16 = vld [vmem:[%s2653_s16 + $0x318] sm:$0xff]  ;;  %v307_v21 = vld [vmem:[%s2653_s16 + $0x320] sm:$0xff]  ;;  %v1263_v51 = vmul.f32 %v910_v30, %v303_v13  ;;  %v1264_v52 = vmul.f32 %v910_v30, %v304_v14  ;;  %v1265_v53 = vmul.f32 %v910_v30, %v305_v15 }
  0xe1   : > { %1753 = vst [vmem:[%s2881_s25 + $0x250] sm:$0xff] %v1241_v33  ;;  %1754 = vst [vmem:[%s2881_s25 + $0x258] sm:$0xff] %v1242_v34  ;;  %v308_v22 = vld [vmem:[%s2653_s16 + $0x328] sm:$0xff]  ;;  %v309_v23 = vld [vmem:[%s2653_s16 + $0x330] sm:$0xff]  ;;  %v1266_v54 = vmul.f32 %v910_v30, %v306_v16  ;;  %v1267_v59 = vmul.f32 %v910_v30, %v307_v21 }
  0xe2   : > { %1755 = vst [vmem:[%s2881_s25 + $0x260] sm:$0xff] %v1243_v39  ;;  %1756 = vst [vmem:[%s2881_s25 + $0x268] sm:$0xff] %v1244_v40  ;;  %v310_v24 = vld [vmem:[%s2653_s16 + $0x338] sm:$0xff]  ;;  %v327_v31 = vld [vmem:[%s2653_s16 + $0x3c0] sm:$0xff]  ;;  %v1268_v60 = vmul.f32 %v910_v30, %v308_v22  ;;  %v1269_v61 = vmul.f32 %v910_v30, %v309_v23 }
  0xe3   : > { %1757 = vst [vmem:[%s2881_s25 + $0x270] sm:$0xff] %v1245_v41  ;;  %1758 = vst [vmem:[%s2881_s25 + $0x278] sm:$0xff] %v1246_v42  ;;  %v328_v32 = vld [vmem:[%s2653_s16 + $0x3c8] sm:$0xff]  ;;  %v329_v33 = vld [vmem:[%s2653_s16 + $0x3d0] sm:$0xff]  ;;  %v1270_v62 = vmul.f32 %v910_v30, %v310_v24  ;;  %v1287_v5 = vmul.f32 %v925_v63, %v327_v31 }
  0xe4   : > { %1743 = vst [vmem:[%s2881_s25 + $0x200] sm:$0xff] %v1231_v47  ;;  %1744 = vst [vmem:[%s2881_s25 + $0x208] sm:$0xff] %v1232_v48  ;;  %v330_v34 = vld [vmem:[%s2653_s16 + $0x3d8] sm:$0xff]  ;;  %v331_v39 = vld [vmem:[%s2653_s16 + $0x3e0] sm:$0xff]  ;;  %v1288_v6 = vmul.f32 %v925_v63, %v328_v32  ;;  %v1289_v7 = vmul.f32 %v925_v63, %v329_v33  ;;  %v935_v33 = vpop.permute.xlu1 %934 }
  0xe5   : > { %1745 = vst [vmem:[%s2881_s25 + $0x210] sm:$0xff] %v1233_v49  ;;  %1746 = vst [vmem:[%s2881_s25 + $0x218] sm:$0xff] %v1234_v50  ;;  %v332_v40 = vld [vmem:[%s2653_s16 + $0x3e8] sm:$0xff]  ;;  %v333_v41 = vld [vmem:[%s2653_s16 + $0x3f0] sm:$0xff]  ;;  %v1290_v8 = vmul.f32 %v925_v63, %v330_v34  ;;  %v1291_v13 = vmul.f32 %v925_v63, %v331_v39  ;;  %v930_v34 = vpop.permute.xlu0 %929 }
  0xe6   : > { %1747 = vst [vmem:[%s2881_s25 + $0x220] sm:$0xff] %v1235_v55  ;;  %1748 = vst [vmem:[%s2881_s25 + $0x228] sm:$0xff] %v1236_v56  ;;  %v334_v42 = vld [vmem:[%s2653_s16 + $0x3f8] sm:$0xff]  ;;  %v319_v47 = vld [vmem:[%s2653_s16 + $0x380] sm:$0xff]  ;;  %v1292_v14 = vmul.f32 %v925_v63, %v332_v40  ;;  %v1293_v15 = vmul.f32 %v925_v63, %v333_v41 }
  0xe7   : > { %1749 = vst [vmem:[%s2881_s25 + $0x230] sm:$0xff] %v1237_v57  ;;  %1750 = vst [vmem:[%s2881_s25 + $0x238] sm:$0xff] %v1238_v58  ;;  %v320_v48 = vld [vmem:[%s2653_s16 + $0x388] sm:$0xff]  ;;  %v321_v49 = vld [vmem:[%s2653_s16 + $0x390] sm:$0xff]  ;;  %v1294_v16 = vmul.f32 %v925_v63, %v334_v42  ;;  %v1279_v21 = vmul.f32 %v920_v0, %v319_v47 }
  0xe8   : > { %1767 = vst [vmem:[%s2881_s25 + $0x2c0] sm:$0xff] %v1255_v1  ;;  %1768 = vst [vmem:[%s2881_s25 + $0x2c8] sm:$0xff] %v1256_v2  ;;  %v322_v50 = vld [vmem:[%s2653_s16 + $0x398] sm:$0xff]  ;;  %v323_v55 = vld [vmem:[%s2653_s16 + $0x3a0] sm:$0xff]  ;;  %v1280_v22 = vmul.f32 %v920_v0, %v320_v48  ;;  %v1281_v23 = vmul.f32 %v920_v0, %v321_v49 }
  0xe9   : > { %1769 = vst [vmem:[%s2881_s25 + $0x2d0] sm:$0xff] %v1257_v3  ;;  %1770 = vst [vmem:[%s2881_s25 + $0x2d8] sm:$0xff] %v1258_v4  ;;  %v324_v56 = vld [vmem:[%s2653_s16 + $0x3a8] sm:$0xff]  ;;  %v325_v57 = vld [vmem:[%s2653_s16 + $0x3b0] sm:$0xff]  ;;  %v1282_v24 = vmul.f32 %v920_v0, %v322_v50  ;;  %v1283_v29 = vmul.f32 %v920_v0, %v323_v55 }
  0xea   : > { %1771 = vst [vmem:[%s2881_s25 + $0x2e0] sm:$0xff] %v1259_v9  ;;  %1772 = vst [vmem:[%s2881_s25 + $0x2e8] sm:$0xff] %v1260_v10  ;;  %v326_v58 = vld [vmem:[%s2653_s16 + $0x3b8] sm:$0xff]  ;;  %v343_v1 = vld [vmem:[%s2653_s16 + $0x440] sm:$0xff]  ;;  %v1284_v30 = vmul.f32 %v920_v0, %v324_v56  ;;  %v1285_v31 = vmul.f32 %v920_v0, %v325_v57 }
  0xeb   : > { %1773 = vst [vmem:[%s2881_s25 + $0x2f0] sm:$0xff] %v1261_v11  ;;  %1774 = vst [vmem:[%s2881_s25 + $0x2f8] sm:$0xff] %v1262_v12  ;;  %v344_v2 = vld [vmem:[%s2653_s16 + $0x448] sm:$0xff]  ;;  %v345_v3 = vld [vmem:[%s2653_s16 + $0x450] sm:$0xff]  ;;  %v1286_v32 = vmul.f32 %v920_v0, %v326_v58  ;;  %v1303_v39 = vmul.f32 %v935_v33, %v343_v1 }
  0xec   : > { %1759 = vst [vmem:[%s2881_s25 + $0x280] sm:$0xff] %v1247_v17  ;;  %1760 = vst [vmem:[%s2881_s25 + $0x288] sm:$0xff] %v1248_v18  ;;  %v346_v4 = vld [vmem:[%s2653_s16 + $0x458] sm:$0xff]  ;;  %v347_v9 = vld [vmem:[%s2653_s16 + $0x460] sm:$0xff]  ;;  %v1304_v40 = vmul.f32 %v935_v33, %v344_v2  ;;  %v1305_v41 = vmul.f32 %v935_v33, %v345_v3  ;;  %v945_v3 = vpop.permute.xlu1 %944 }
  0xed   : > { %1761 = vst [vmem:[%s2881_s25 + $0x290] sm:$0xff] %v1249_v19  ;;  %1762 = vst [vmem:[%s2881_s25 + $0x298] sm:$0xff] %v1250_v20  ;;  %v348_v10 = vld [vmem:[%s2653_s16 + $0x468] sm:$0xff]  ;;  %v349_v11 = vld [vmem:[%s2653_s16 + $0x470] sm:$0xff]  ;;  %v1306_v42 = vmul.f32 %v935_v33, %v346_v4  ;;  %v1307_v47 = vmul.f32 %v935_v33, %v347_v9  ;;  %v940_v4 = vpop.permute.xlu0 %939 }
  0xee   : > { %1763 = vst [vmem:[%s2881_s25 + $0x2a0] sm:$0xff] %v1251_v25  ;;  %1764 = vst [vmem:[%s2881_s25 + $0x2a8] sm:$0xff] %v1252_v26  ;;  %v350_v12 = vld [vmem:[%s2653_s16 + $0x478] sm:$0xff]  ;;  %v335_v17 = vld [vmem:[%s2653_s16 + $0x400] sm:$0xff]  ;;  %v1308_v48 = vmul.f32 %v935_v33, %v348_v10  ;;  %v1309_v49 = vmul.f32 %v935_v33, %v349_v11 }
  0xef   : > { %1765 = vst [vmem:[%s2881_s25 + $0x2b0] sm:$0xff] %v1253_v27  ;;  %1766 = vst [vmem:[%s2881_s25 + $0x2b8] sm:$0xff] %v1254_v28  ;;  %v336_v18 = vld [vmem:[%s2653_s16 + $0x408] sm:$0xff]  ;;  %v337_v19 = vld [vmem:[%s2653_s16 + $0x410] sm:$0xff]  ;;  %v1310_v50 = vmul.f32 %v935_v33, %v350_v12  ;;  %v1295_v55 = vmul.f32 %v930_v34, %v335_v17 }
  0xf0   : > { %1783 = vst [vmem:[%s2881_s25 + $0x340] sm:$0xff] %v1271_v35  ;;  %1784 = vst [vmem:[%s2881_s25 + $0x348] sm:$0xff] %v1272_v36  ;;  %v338_v20 = vld [vmem:[%s2653_s16 + $0x418] sm:$0xff]  ;;  %v339_v25 = vld [vmem:[%s2653_s16 + $0x420] sm:$0xff]  ;;  %v1296_v56 = vmul.f32 %v930_v34, %v336_v18  ;;  %v1297_v57 = vmul.f32 %v930_v34, %v337_v19 }
  0xf1   : > { %1785 = vst [vmem:[%s2881_s25 + $0x350] sm:$0xff] %v1273_v37  ;;  %1786 = vst [vmem:[%s2881_s25 + $0x358] sm:$0xff] %v1274_v38  ;;  %v340_v26 = vld [vmem:[%s2653_s16 + $0x428] sm:$0xff]  ;;  %v341_v27 = vld [vmem:[%s2653_s16 + $0x430] sm:$0xff]  ;;  %v1298_v58 = vmul.f32 %v930_v34, %v338_v20  ;;  %v1299_v63 = vmul.f32 %v930_v34, %v339_v25 }
  0xf2   : > { %1787 = vst [vmem:[%s2881_s25 + $0x360] sm:$0xff] %v1275_v43  ;;  %1788 = vst [vmem:[%s2881_s25 + $0x368] sm:$0xff] %v1276_v44  ;;  %v342_v28 = vld [vmem:[%s2653_s16 + $0x438] sm:$0xff]  ;;  %v359_v35 = vld [vmem:[%s2653_s16 + $0x4c0] sm:$0xff]  ;;  %v1300_v0 = vmul.f32 %v930_v34, %v340_v26  ;;  %v1301_v1 = vmul.f32 %v930_v34, %v341_v27 }
  0xf3   : > { %1789 = vst [vmem:[%s2881_s25 + $0x370] sm:$0xff] %v1277_v45  ;;  %1790 = vst [vmem:[%s2881_s25 + $0x378] sm:$0xff] %v1278_v46  ;;  %v360_v36 = vld [vmem:[%s2653_s16 + $0x4c8] sm:$0xff]  ;;  %v361_v37 = vld [vmem:[%s2653_s16 + $0x4d0] sm:$0xff]  ;;  %v1302_v2 = vmul.f32 %v930_v34, %v342_v28  ;;  %v1319_v9 = vmul.f32 %v945_v3, %v359_v35 }
  0xf4   : > { %1775 = vst [vmem:[%s2881_s25 + $0x300] sm:$0xff] %v1263_v51  ;;  %1776 = vst [vmem:[%s2881_s25 + $0x308] sm:$0xff] %v1264_v52  ;;  %v362_v38 = vld [vmem:[%s2653_s16 + $0x4d8] sm:$0xff]  ;;  %v363_v43 = vld [vmem:[%s2653_s16 + $0x4e0] sm:$0xff]  ;;  %v1320_v10 = vmul.f32 %v945_v3, %v360_v36  ;;  %v1321_v11 = vmul.f32 %v945_v3, %v361_v37  ;;  %v955_v37 = vpop.permute.xlu1 %954 }
  0xf5   : > { %1777 = vst [vmem:[%s2881_s25 + $0x310] sm:$0xff] %v1265_v53  ;;  %1778 = vst [vmem:[%s2881_s25 + $0x318] sm:$0xff] %v1266_v54  ;;  %v364_v44 = vld [vmem:[%s2653_s16 + $0x4e8] sm:$0xff]  ;;  %v365_v45 = vld [vmem:[%s2653_s16 + $0x4f0] sm:$0xff]  ;;  %v1322_v12 = vmul.f32 %v945_v3, %v362_v38  ;;  %v1323_v17 = vmul.f32 %v945_v3, %v363_v43  ;;  %v950_v38 = vpop.permute.xlu0 %949 }
  0xf6   : > { %1779 = vst [vmem:[%s2881_s25 + $0x320] sm:$0xff] %v1267_v59  ;;  %1780 = vst [vmem:[%s2881_s25 + $0x328] sm:$0xff] %v1268_v60  ;;  %v366_v46 = vld [vmem:[%s2653_s16 + $0x4f8] sm:$0xff]  ;;  %v351_v51 = vld [vmem:[%s2653_s16 + $0x480] sm:$0xff]  ;;  %v1324_v18 = vmul.f32 %v945_v3, %v364_v44  ;;  %v1325_v19 = vmul.f32 %v945_v3, %v365_v45 }
  0xf7   : > { %1781 = vst [vmem:[%s2881_s25 + $0x330] sm:$0xff] %v1269_v61  ;;  %1782 = vst [vmem:[%s2881_s25 + $0x338] sm:$0xff] %v1270_v62  ;;  %v352_v52 = vld [vmem:[%s2653_s16 + $0x488] sm:$0xff]  ;;  %v353_v53 = vld [vmem:[%s2653_s16 + $0x490] sm:$0xff]  ;;  %v1326_v20 = vmul.f32 %v945_v3, %v366_v46  ;;  %v1311_v25 = vmul.f32 %v940_v4, %v351_v51 }
  0xf8   : > { %1799 = vst [vmem:[%s2881_s25 + $0x3c0] sm:$0xff] %v1287_v5  ;;  %1800 = vst [vmem:[%s2881_s25 + $0x3c8] sm:$0xff] %v1288_v6  ;;  %v354_v54 = vld [vmem:[%s2653_s16 + $0x498] sm:$0xff]  ;;  %v355_v59 = vld [vmem:[%s2653_s16 + $0x4a0] sm:$0xff]  ;;  %v1312_v26 = vmul.f32 %v940_v4, %v352_v52  ;;  %v1313_v27 = vmul.f32 %v940_v4, %v353_v53 }
  0xf9   : > { %1801 = vst [vmem:[%s2881_s25 + $0x3d0] sm:$0xff] %v1289_v7  ;;  %1802 = vst [vmem:[%s2881_s25 + $0x3d8] sm:$0xff] %v1290_v8  ;;  %v356_v60 = vld [vmem:[%s2653_s16 + $0x4a8] sm:$0xff]  ;;  %v357_v61 = vld [vmem:[%s2653_s16 + $0x4b0] sm:$0xff]  ;;  %v1314_v28 = vmul.f32 %v940_v4, %v354_v54  ;;  %v1315_v33 = vmul.f32 %v940_v4, %v355_v59 }
  0xfa   : > { %1803 = vst [vmem:[%s2881_s25 + $0x3e0] sm:$0xff] %v1291_v13  ;;  %1804 = vst [vmem:[%s2881_s25 + $0x3e8] sm:$0xff] %v1292_v14  ;;  %v358_v62 = vld [vmem:[%s2653_s16 + $0x4b8] sm:$0xff]  ;;  %v375_v5 = vld [vmem:[%s2653_s16 + $0x540] sm:$0xff]  ;;  %v1316_v34 = vmul.f32 %v940_v4, %v356_v60  ;;  %v1317_v35 = vmul.f32 %v940_v4, %v357_v61 }
  0xfb   : > { %1805 = vst [vmem:[%s2881_s25 + $0x3f0] sm:$0xff] %v1293_v15  ;;  %1806 = vst [vmem:[%s2881_s25 + $0x3f8] sm:$0xff] %v1294_v16  ;;  %v376_v6 = vld [vmem:[%s2653_s16 + $0x548] sm:$0xff]  ;;  %v377_v7 = vld [vmem:[%s2653_s16 + $0x550] sm:$0xff]  ;;  %v1318_v36 = vmul.f32 %v940_v4, %v358_v62  ;;  %v1335_v43 = vmul.f32 %v955_v37, %v375_v5 }
  0xfc   : > { %1791 = vst [vmem:[%s2881_s25 + $0x380] sm:$0xff] %v1279_v21  ;;  %1792 = vst [vmem:[%s2881_s25 + $0x388] sm:$0xff] %v1280_v22  ;;  %v378_v8 = vld [vmem:[%s2653_s16 + $0x558] sm:$0xff]  ;;  %v379_v13 = vld [vmem:[%s2653_s16 + $0x560] sm:$0xff]  ;;  %v1336_v44 = vmul.f32 %v955_v37, %v376_v6  ;;  %v1337_v45 = vmul.f32 %v955_v37, %v377_v7  ;;  %v965_v7 = vpop.permute.xlu1 %964 }
  0xfd   : > { %1793 = vst [vmem:[%s2881_s25 + $0x390] sm:$0xff] %v1281_v23  ;;  %1794 = vst [vmem:[%s2881_s25 + $0x398] sm:$0xff] %v1282_v24  ;;  %v380_v14 = vld [vmem:[%s2653_s16 + $0x568] sm:$0xff]  ;;  %v381_v15 = vld [vmem:[%s2653_s16 + $0x570] sm:$0xff]  ;;  %v1338_v46 = vmul.f32 %v955_v37, %v378_v8  ;;  %v1339_v51 = vmul.f32 %v955_v37, %v379_v13  ;;  %v960_v8 = vpop.permute.xlu0 %959 }
  0xfe   : > { %1795 = vst [vmem:[%s2881_s25 + $0x3a0] sm:$0xff] %v1283_v29  ;;  %1796 = vst [vmem:[%s2881_s25 + $0x3a8] sm:$0xff] %v1284_v30  ;;  %v382_v16 = vld [vmem:[%s2653_s16 + $0x578] sm:$0xff]  ;;  %v367_v21 = vld [vmem:[%s2653_s16 + $0x500] sm:$0xff]  ;;  %v1340_v52 = vmul.f32 %v955_v37, %v380_v14  ;;  %v1341_v53 = vmul.f32 %v955_v37, %v381_v15 }
  0xff   : > { %1797 = vst [vmem:[%s2881_s25 + $0x3b0] sm:$0xff] %v1285_v31  ;;  %1798 = vst [vmem:[%s2881_s25 + $0x3b8] sm:$0xff] %v1286_v32  ;;  %v368_v22 = vld [vmem:[%s2653_s16 + $0x508] sm:$0xff]  ;;  %v369_v23 = vld [vmem:[%s2653_s16 + $0x510] sm:$0xff]  ;;  %v1342_v54 = vmul.f32 %v955_v37, %v382_v16  ;;  %v1327_v59 = vmul.f32 %v950_v38, %v367_v21 }
 0x100   : > { %1815 = vst [vmem:[%s2881_s25 + $0x440] sm:$0xff] %v1303_v39  ;;  %1816 = vst [vmem:[%s2881_s25 + $0x448] sm:$0xff] %v1304_v40  ;;  %v370_v24 = vld [vmem:[%s2653_s16 + $0x518] sm:$0xff]  ;;  %v371_v29 = vld [vmem:[%s2653_s16 + $0x520] sm:$0xff]  ;;  %v1328_v60 = vmul.f32 %v950_v38, %v368_v22  ;;  %v1329_v61 = vmul.f32 %v950_v38, %v369_v23 }
 0x101   : > { %1817 = vst [vmem:[%s2881_s25 + $0x450] sm:$0xff] %v1305_v41  ;;  %1818 = vst [vmem:[%s2881_s25 + $0x458] sm:$0xff] %v1306_v42  ;;  %v372_v30 = vld [vmem:[%s2653_s16 + $0x528] sm:$0xff]  ;;  %v373_v31 = vld [vmem:[%s2653_s16 + $0x530] sm:$0xff]  ;;  %v1330_v62 = vmul.f32 %v950_v38, %v370_v24  ;;  %v1331_v3 = vmul.f32 %v950_v38, %v371_v29 }
 0x102   : > { %1819 = vst [vmem:[%s2881_s25 + $0x460] sm:$0xff] %v1307_v47  ;;  %1820 = vst [vmem:[%s2881_s25 + $0x468] sm:$0xff] %v1308_v48  ;;  %v374_v32 = vld [vmem:[%s2653_s16 + $0x538] sm:$0xff]  ;;  %v391_v39 = vld [vmem:[%s2653_s16 + $0x5c0] sm:$0xff]  ;;  %v1332_v4 = vmul.f32 %v950_v38, %v372_v30  ;;  %v1333_v5 = vmul.f32 %v950_v38, %v373_v31 }
 0x103   : > { %1821 = vst [vmem:[%s2881_s25 + $0x470] sm:$0xff] %v1309_v49  ;;  %1822 = vst [vmem:[%s2881_s25 + $0x478] sm:$0xff] %v1310_v50  ;;  %v392_v40 = vld [vmem:[%s2653_s16 + $0x5c8] sm:$0xff]  ;;  %v393_v41 = vld [vmem:[%s2653_s16 + $0x5d0] sm:$0xff]  ;;  %v1334_v6 = vmul.f32 %v950_v38, %v374_v32  ;;  %v1351_v13 = vmul.f32 %v965_v7, %v391_v39 }
 0x104   : > { %1807 = vst [vmem:[%s2881_s25 + $0x400] sm:$0xff] %v1295_v55  ;;  %1808 = vst [vmem:[%s2881_s25 + $0x408] sm:$0xff] %v1296_v56  ;;  %v394_v42 = vld [vmem:[%s2653_s16 + $0x5d8] sm:$0xff]  ;;  %v395_v47 = vld [vmem:[%s2653_s16 + $0x5e0] sm:$0xff]  ;;  %v1352_v14 = vmul.f32 %v965_v7, %v392_v40  ;;  %v1353_v15 = vmul.f32 %v965_v7, %v393_v41  ;;  %v975_v41 = vpop.permute.xlu1 %974 }
 0x105   : > { %1809 = vst [vmem:[%s2881_s25 + $0x410] sm:$0xff] %v1297_v57  ;;  %1810 = vst [vmem:[%s2881_s25 + $0x418] sm:$0xff] %v1298_v58  ;;  %v396_v48 = vld [vmem:[%s2653_s16 + $0x5e8] sm:$0xff]  ;;  %v397_v49 = vld [vmem:[%s2653_s16 + $0x5f0] sm:$0xff]  ;;  %v1354_v16 = vmul.f32 %v965_v7, %v394_v42  ;;  %v1355_v21 = vmul.f32 %v965_v7, %v395_v47  ;;  %v970_v42 = vpop.permute.xlu0 %969 }
 0x106   : > { %1811 = vst [vmem:[%s2881_s25 + $0x420] sm:$0xff] %v1299_v63  ;;  %1812 = vst [vmem:[%s2881_s25 + $0x428] sm:$0xff] %v1300_v0  ;;  %v398_v50 = vld [vmem:[%s2653_s16 + $0x5f8] sm:$0xff]  ;;  %v383_v55 = vld [vmem:[%s2653_s16 + $0x580] sm:$0xff]  ;;  %v1356_v22 = vmul.f32 %v965_v7, %v396_v48  ;;  %v1357_v23 = vmul.f32 %v965_v7, %v397_v49 }
 0x107   : > { %1813 = vst [vmem:[%s2881_s25 + $0x430] sm:$0xff] %v1301_v1  ;;  %1814 = vst [vmem:[%s2881_s25 + $0x438] sm:$0xff] %v1302_v2  ;;  %v384_v56 = vld [vmem:[%s2653_s16 + $0x588] sm:$0xff]  ;;  %v385_v57 = vld [vmem:[%s2653_s16 + $0x590] sm:$0xff]  ;;  %v1358_v24 = vmul.f32 %v965_v7, %v398_v50  ;;  %v1343_v29 = vmul.f32 %v960_v8, %v383_v55 }
 0x108   : > { %1831 = vst [vmem:[%s2881_s25 + $0x4c0] sm:$0xff] %v1319_v9  ;;  %1832 = vst [vmem:[%s2881_s25 + $0x4c8] sm:$0xff] %v1320_v10  ;;  %v386_v58 = vld [vmem:[%s2653_s16 + $0x598] sm:$0xff]  ;;  %v387_v63 = vld [vmem:[%s2653_s16 + $0x5a0] sm:$0xff]  ;;  %v1344_v30 = vmul.f32 %v960_v8, %v384_v56  ;;  %v1345_v31 = vmul.f32 %v960_v8, %v385_v57 }
 0x109   : > { %1833 = vst [vmem:[%s2881_s25 + $0x4d0] sm:$0xff] %v1321_v11  ;;  %1834 = vst [vmem:[%s2881_s25 + $0x4d8] sm:$0xff] %v1322_v12  ;;  %v388_v0 = vld [vmem:[%s2653_s16 + $0x5a8] sm:$0xff]  ;;  %v389_v1 = vld [vmem:[%s2653_s16 + $0x5b0] sm:$0xff]  ;;  %v1346_v32 = vmul.f32 %v960_v8, %v386_v58  ;;  %v1347_v37 = vmul.f32 %v960_v8, %v387_v63 }
 0x10a   : > { %1835 = vst [vmem:[%s2881_s25 + $0x4e0] sm:$0xff] %v1323_v17  ;;  %1836 = vst [vmem:[%s2881_s25 + $0x4e8] sm:$0xff] %v1324_v18  ;;  %v390_v2 = vld [vmem:[%s2653_s16 + $0x5b8] sm:$0xff]  ;;  %v407_v9 = vld [vmem:[%s2653_s16 + $0x640] sm:$0xff]  ;;  %v1348_v38 = vmul.f32 %v960_v8, %v388_v0  ;;  %v1349_v39 = vmul.f32 %v960_v8, %v389_v1 }
 0x10b   : > { %1837 = vst [vmem:[%s2881_s25 + $0x4f0] sm:$0xff] %v1325_v19  ;;  %1838 = vst [vmem:[%s2881_s25 + $0x4f8] sm:$0xff] %v1326_v20  ;;  %v408_v10 = vld [vmem:[%s2653_s16 + $0x648] sm:$0xff]  ;;  %v409_v11 = vld [vmem:[%s2653_s16 + $0x650] sm:$0xff]  ;;  %v1350_v40 = vmul.f32 %v960_v8, %v390_v2  ;;  %v1367_v47 = vmul.f32 %v975_v41, %v407_v9 }
 0x10c   : > { %1823 = vst [vmem:[%s2881_s25 + $0x480] sm:$0xff] %v1311_v25  ;;  %1824 = vst [vmem:[%s2881_s25 + $0x488] sm:$0xff] %v1312_v26  ;;  %v410_v12 = vld [vmem:[%s2653_s16 + $0x658] sm:$0xff]  ;;  %v411_v17 = vld [vmem:[%s2653_s16 + $0x660] sm:$0xff]  ;;  %v1368_v48 = vmul.f32 %v975_v41, %v408_v10  ;;  %v1369_v49 = vmul.f32 %v975_v41, %v409_v11  ;;  %v985_v11 = vpop.permute.xlu1 %984 }
 0x10d   : > { %1825 = vst [vmem:[%s2881_s25 + $0x490] sm:$0xff] %v1313_v27  ;;  %1826 = vst [vmem:[%s2881_s25 + $0x498] sm:$0xff] %v1314_v28  ;;  %v412_v18 = vld [vmem:[%s2653_s16 + $0x668] sm:$0xff]  ;;  %v413_v19 = vld [vmem:[%s2653_s16 + $0x670] sm:$0xff]  ;;  %v1370_v50 = vmul.f32 %v975_v41, %v410_v12  ;;  %v1371_v55 = vmul.f32 %v975_v41, %v411_v17  ;;  %v980_v12 = vpop.permute.xlu0 %979 }
 0x10e   : > { %1827 = vst [vmem:[%s2881_s25 + $0x4a0] sm:$0xff] %v1315_v33  ;;  %1828 = vst [vmem:[%s2881_s25 + $0x4a8] sm:$0xff] %v1316_v34  ;;  %v414_v20 = vld [vmem:[%s2653_s16 + $0x678] sm:$0xff]  ;;  %v399_v25 = vld [vmem:[%s2653_s16 + $0x600] sm:$0xff]  ;;  %v1372_v56 = vmul.f32 %v975_v41, %v412_v18  ;;  %v1373_v57 = vmul.f32 %v975_v41, %v413_v19 }
 0x10f   : > { %1829 = vst [vmem:[%s2881_s25 + $0x4b0] sm:$0xff] %v1317_v35  ;;  %1830 = vst [vmem:[%s2881_s25 + $0x4b8] sm:$0xff] %v1318_v36  ;;  %v400_v26 = vld [vmem:[%s2653_s16 + $0x608] sm:$0xff]  ;;  %v401_v27 = vld [vmem:[%s2653_s16 + $0x610] sm:$0xff]  ;;  %v1374_v58 = vmul.f32 %v975_v41, %v414_v20  ;;  %v1359_v63 = vmul.f32 %v970_v42, %v399_v25 }
 0x110   : > { %1847 = vst [vmem:[%s2881_s25 + $0x540] sm:$0xff] %v1335_v43  ;;  %1848 = vst [vmem:[%s2881_s25 + $0x548] sm:$0xff] %v1336_v44  ;;  %v402_v28 = vld [vmem:[%s2653_s16 + $0x618] sm:$0xff]  ;;  %v403_v33 = vld [vmem:[%s2653_s16 + $0x620] sm:$0xff]  ;;  %v1360_v0 = vmul.f32 %v970_v42, %v400_v26  ;;  %v1361_v1 = vmul.f32 %v970_v42, %v401_v27 }
 0x111   : > { %1849 = vst [vmem:[%s2881_s25 + $0x550] sm:$0xff] %v1337_v45  ;;  %1850 = vst [vmem:[%s2881_s25 + $0x558] sm:$0xff] %v1338_v46  ;;  %v404_v34 = vld [vmem:[%s2653_s16 + $0x628] sm:$0xff]  ;;  %v405_v35 = vld [vmem:[%s2653_s16 + $0x630] sm:$0xff]  ;;  %v1362_v2 = vmul.f32 %v970_v42, %v402_v28  ;;  %v1363_v7 = vmul.f32 %v970_v42, %v403_v33 }
 0x112   : > { %1851 = vst [vmem:[%s2881_s25 + $0x560] sm:$0xff] %v1339_v51  ;;  %1852 = vst [vmem:[%s2881_s25 + $0x568] sm:$0xff] %v1340_v52  ;;  %v406_v36 = vld [vmem:[%s2653_s16 + $0x638] sm:$0xff]  ;;  %v423_v43 = vld [vmem:[%s2653_s16 + $0x6c0] sm:$0xff]  ;;  %v1364_v8 = vmul.f32 %v970_v42, %v404_v34  ;;  %v1365_v9 = vmul.f32 %v970_v42, %v405_v35 }
 0x113   : > { %1853 = vst [vmem:[%s2881_s25 + $0x570] sm:$0xff] %v1341_v53  ;;  %1854 = vst [vmem:[%s2881_s25 + $0x578] sm:$0xff] %v1342_v54  ;;  %v424_v44 = vld [vmem:[%s2653_s16 + $0x6c8] sm:$0xff]  ;;  %v425_v45 = vld [vmem:[%s2653_s16 + $0x6d0] sm:$0xff]  ;;  %v1366_v10 = vmul.f32 %v970_v42, %v406_v36  ;;  %v1383_v17 = vmul.f32 %v985_v11, %v423_v43 }
 0x114   : > { %1839 = vst [vmem:[%s2881_s25 + $0x500] sm:$0xff] %v1327_v59  ;;  %1840 = vst [vmem:[%s2881_s25 + $0x508] sm:$0xff] %v1328_v60  ;;  %v426_v46 = vld [vmem:[%s2653_s16 + $0x6d8] sm:$0xff]  ;;  %v427_v51 = vld [vmem:[%s2653_s16 + $0x6e0] sm:$0xff]  ;;  %v1384_v18 = vmul.f32 %v985_v11, %v424_v44  ;;  %v1385_v19 = vmul.f32 %v985_v11, %v425_v45  ;;  %v995_v45 = vpop.permute.xlu1 %994 }
 0x115   : > { %1841 = vst [vmem:[%s2881_s25 + $0x510] sm:$0xff] %v1329_v61  ;;  %1842 = vst [vmem:[%s2881_s25 + $0x518] sm:$0xff] %v1330_v62  ;;  %v428_v52 = vld [vmem:[%s2653_s16 + $0x6e8] sm:$0xff]  ;;  %v429_v53 = vld [vmem:[%s2653_s16 + $0x6f0] sm:$0xff]  ;;  %v1386_v20 = vmul.f32 %v985_v11, %v426_v46  ;;  %v1387_v25 = vmul.f32 %v985_v11, %v427_v51  ;;  %v990_v46 = vpop.permute.xlu0 %989 }
 0x116   : > { %1843 = vst [vmem:[%s2881_s25 + $0x520] sm:$0xff] %v1331_v3  ;;  %1844 = vst [vmem:[%s2881_s25 + $0x528] sm:$0xff] %v1332_v4  ;;  %v430_v54 = vld [vmem:[%s2653_s16 + $0x6f8] sm:$0xff]  ;;  %v415_v59 = vld [vmem:[%s2653_s16 + $0x680] sm:$0xff]  ;;  %v1388_v26 = vmul.f32 %v985_v11, %v428_v52  ;;  %v1389_v27 = vmul.f32 %v985_v11, %v429_v53 }
 0x117   : > { %1845 = vst [vmem:[%s2881_s25 + $0x530] sm:$0xff] %v1333_v5  ;;  %1846 = vst [vmem:[%s2881_s25 + $0x538] sm:$0xff] %v1334_v6  ;;  %v416_v60 = vld [vmem:[%s2653_s16 + $0x688] sm:$0xff]  ;;  %v417_v61 = vld [vmem:[%s2653_s16 + $0x690] sm:$0xff]  ;;  %v1390_v28 = vmul.f32 %v985_v11, %v430_v54  ;;  %v1375_v33 = vmul.f32 %v980_v12, %v415_v59 }
 0x118   : > { %1863 = vst [vmem:[%s2881_s25 + $0x5c0] sm:$0xff] %v1351_v13  ;;  %1864 = vst [vmem:[%s2881_s25 + $0x5c8] sm:$0xff] %v1352_v14  ;;  %v418_v62 = vld [vmem:[%s2653_s16 + $0x698] sm:$0xff]  ;;  %v419_v3 = vld [vmem:[%s2653_s16 + $0x6a0] sm:$0xff]  ;;  %v1376_v34 = vmul.f32 %v980_v12, %v416_v60  ;;  %v1377_v35 = vmul.f32 %v980_v12, %v417_v61 }
 0x119   : > { %1865 = vst [vmem:[%s2881_s25 + $0x5d0] sm:$0xff] %v1353_v15  ;;  %1866 = vst [vmem:[%s2881_s25 + $0x5d8] sm:$0xff] %v1354_v16  ;;  %v420_v4 = vld [vmem:[%s2653_s16 + $0x6a8] sm:$0xff]  ;;  %v421_v5 = vld [vmem:[%s2653_s16 + $0x6b0] sm:$0xff]  ;;  %v1378_v36 = vmul.f32 %v980_v12, %v418_v62  ;;  %v1379_v41 = vmul.f32 %v980_v12, %v419_v3 }
 0x11a   : > { %1867 = vst [vmem:[%s2881_s25 + $0x5e0] sm:$0xff] %v1355_v21  ;;  %1868 = vst [vmem:[%s2881_s25 + $0x5e8] sm:$0xff] %v1356_v22  ;;  %v422_v6 = vld [vmem:[%s2653_s16 + $0x6b8] sm:$0xff]  ;;  %v439_v13 = vld [vmem:[%s2653_s16 + $0x740] sm:$0xff]  ;;  %v1380_v42 = vmul.f32 %v980_v12, %v420_v4  ;;  %v1381_v43 = vmul.f32 %v980_v12, %v421_v5 }
 0x11b   : > { %1869 = vst [vmem:[%s2881_s25 + $0x5f0] sm:$0xff] %v1357_v23  ;;  %1870 = vst [vmem:[%s2881_s25 + $0x5f8] sm:$0xff] %v1358_v24  ;;  %v440_v14 = vld [vmem:[%s2653_s16 + $0x748] sm:$0xff]  ;;  %v441_v15 = vld [vmem:[%s2653_s16 + $0x750] sm:$0xff]  ;;  %v1382_v44 = vmul.f32 %v980_v12, %v422_v6  ;;  %v1399_v51 = vmul.f32 %v995_v45, %v439_v13 }
 0x11c   : > { %1855 = vst [vmem:[%s2881_s25 + $0x580] sm:$0xff] %v1343_v29  ;;  %1856 = vst [vmem:[%s2881_s25 + $0x588] sm:$0xff] %v1344_v30  ;;  %v442_v16 = vld [vmem:[%s2653_s16 + $0x758] sm:$0xff]  ;;  %v443_v21 = vld [vmem:[%s2653_s16 + $0x760] sm:$0xff]  ;;  %v1400_v52 = vmul.f32 %v995_v45, %v440_v14  ;;  %v1401_v53 = vmul.f32 %v995_v45, %v441_v15  ;;  %v1005_v15 = vpop.permute.xlu1 %1004 }
 0x11d   : > { %1857 = vst [vmem:[%s2881_s25 + $0x590] sm:$0xff] %v1345_v31  ;;  %1858 = vst [vmem:[%s2881_s25 + $0x598] sm:$0xff] %v1346_v32  ;;  %v444_v22 = vld [vmem:[%s2653_s16 + $0x768] sm:$0xff]  ;;  %v445_v23 = vld [vmem:[%s2653_s16 + $0x770] sm:$0xff]  ;;  %v1402_v54 = vmul.f32 %v995_v45, %v442_v16  ;;  %v1403_v59 = vmul.f32 %v995_v45, %v443_v21  ;;  %v1000_v16 = vpop.permute.xlu0 %999 }
 0x11e   : > { %1859 = vst [vmem:[%s2881_s25 + $0x5a0] sm:$0xff] %v1347_v37  ;;  %1860 = vst [vmem:[%s2881_s25 + $0x5a8] sm:$0xff] %v1348_v38  ;;  %v446_v24 = vld [vmem:[%s2653_s16 + $0x778] sm:$0xff]  ;;  %v431_v29 = vld [vmem:[%s2653_s16 + $0x700] sm:$0xff]  ;;  %v1404_v60 = vmul.f32 %v995_v45, %v444_v22  ;;  %v1405_v61 = vmul.f32 %v995_v45, %v445_v23 }
 0x11f   : > { %1861 = vst [vmem:[%s2881_s25 + $0x5b0] sm:$0xff] %v1349_v39  ;;  %1862 = vst [vmem:[%s2881_s25 + $0x5b8] sm:$0xff] %v1350_v40  ;;  %v432_v30 = vld [vmem:[%s2653_s16 + $0x708] sm:$0xff]  ;;  %v433_v31 = vld [vmem:[%s2653_s16 + $0x710] sm:$0xff]  ;;  %v1406_v62 = vmul.f32 %v995_v45, %v446_v24  ;;  %v1391_v3 = vmul.f32 %v990_v46, %v431_v29 }
 0x120   : > { %1879 = vst [vmem:[%s2881_s25 + $0x640] sm:$0xff] %v1367_v47  ;;  %1880 = vst [vmem:[%s2881_s25 + $0x648] sm:$0xff] %v1368_v48  ;;  %v434_v32 = vld [vmem:[%s2653_s16 + $0x718] sm:$0xff]  ;;  %v435_v37 = vld [vmem:[%s2653_s16 + $0x720] sm:$0xff]  ;;  %v1392_v4 = vmul.f32 %v990_v46, %v432_v30  ;;  %v1393_v5 = vmul.f32 %v990_v46, %v433_v31 }
 0x121   : > { %1881 = vst [vmem:[%s2881_s25 + $0x650] sm:$0xff] %v1369_v49  ;;  %1882 = vst [vmem:[%s2881_s25 + $0x658] sm:$0xff] %v1370_v50  ;;  %v436_v38 = vld [vmem:[%s2653_s16 + $0x728] sm:$0xff]  ;;  %v437_v39 = vld [vmem:[%s2653_s16 + $0x730] sm:$0xff]  ;;  %v1394_v6 = vmul.f32 %v990_v46, %v434_v32  ;;  %v1395_v11 = vmul.f32 %v990_v46, %v435_v37 }
 0x122   : > { %1883 = vst [vmem:[%s2881_s25 + $0x660] sm:$0xff] %v1371_v55  ;;  %1884 = vst [vmem:[%s2881_s25 + $0x668] sm:$0xff] %v1372_v56  ;;  %v438_v40 = vld [vmem:[%s2653_s16 + $0x738] sm:$0xff]  ;;  %v455_v47 = vld [vmem:[%s2653_s16 + $0x7c0] sm:$0xff]  ;;  %v1396_v12 = vmul.f32 %v990_v46, %v436_v38  ;;  %v1397_v13 = vmul.f32 %v990_v46, %v437_v39 }
 0x123   : > { %1885 = vst [vmem:[%s2881_s25 + $0x670] sm:$0xff] %v1373_v57  ;;  %1886 = vst [vmem:[%s2881_s25 + $0x678] sm:$0xff] %v1374_v58  ;;  %v456_v48 = vld [vmem:[%s2653_s16 + $0x7c8] sm:$0xff]  ;;  %v457_v49 = vld [vmem:[%s2653_s16 + $0x7d0] sm:$0xff]  ;;  %v1398_v14 = vmul.f32 %v990_v46, %v438_v40  ;;  %v1415_v21 = vmul.f32 %v1005_v15, %v455_v47 }
 0x124   : > { %1871 = vst [vmem:[%s2881_s25 + $0x600] sm:$0xff] %v1359_v63  ;;  %1872 = vst [vmem:[%s2881_s25 + $0x608] sm:$0xff] %v1360_v0  ;;  %v458_v50 = vld [vmem:[%s2653_s16 + $0x7d8] sm:$0xff]  ;;  %v459_v55 = vld [vmem:[%s2653_s16 + $0x7e0] sm:$0xff]  ;;  %v1416_v22 = vmul.f32 %v1005_v15, %v456_v48  ;;  %v1417_v23 = vmul.f32 %v1005_v15, %v457_v49  ;;  %v1015_v49 = vpop.permute.xlu1 %1014 }
 0x125   : > { %1873 = vst [vmem:[%s2881_s25 + $0x610] sm:$0xff] %v1361_v1  ;;  %1874 = vst [vmem:[%s2881_s25 + $0x618] sm:$0xff] %v1362_v2  ;;  %v460_v56 = vld [vmem:[%s2653_s16 + $0x7e8] sm:$0xff]  ;;  %v461_v57 = vld [vmem:[%s2653_s16 + $0x7f0] sm:$0xff]  ;;  %v1418_v24 = vmul.f32 %v1005_v15, %v458_v50  ;;  %v1419_v29 = vmul.f32 %v1005_v15, %v459_v55  ;;  %v1010_v50 = vpop.permute.xlu0 %1009 }
 0x126   : > { %1875 = vst [vmem:[%s2881_s25 + $0x620] sm:$0xff] %v1363_v7  ;;  %1876 = vst [vmem:[%s2881_s25 + $0x628] sm:$0xff] %v1364_v8  ;;  %v462_v58 = vld [vmem:[%s2653_s16 + $0x7f8] sm:$0xff]  ;;  %v447_v63 = vld [vmem:[%s2653_s16 + $0x780] sm:$0xff]  ;;  %v1420_v30 = vmul.f32 %v1005_v15, %v460_v56  ;;  %v1421_v31 = vmul.f32 %v1005_v15, %v461_v57 }
 0x127   : > { %1877 = vst [vmem:[%s2881_s25 + $0x630] sm:$0xff] %v1365_v9  ;;  %1878 = vst [vmem:[%s2881_s25 + $0x638] sm:$0xff] %v1366_v10  ;;  %v448_v0 = vld [vmem:[%s2653_s16 + $0x788] sm:$0xff]  ;;  %v449_v1 = vld [vmem:[%s2653_s16 + $0x790] sm:$0xff]  ;;  %v1422_v32 = vmul.f32 %v1005_v15, %v462_v58  ;;  %v1407_v37 = vmul.f32 %v1000_v16, %v447_v63 }
 0x128   : > { %1895 = vst [vmem:[%s2881_s25 + $0x6c0] sm:$0xff] %v1383_v17  ;;  %1896 = vst [vmem:[%s2881_s25 + $0x6c8] sm:$0xff] %v1384_v18  ;;  %v450_v2 = vld [vmem:[%s2653_s16 + $0x798] sm:$0xff]  ;;  %v451_v7 = vld [vmem:[%s2653_s16 + $0x7a0] sm:$0xff]  ;;  %v1408_v38 = vmul.f32 %v1000_v16, %v448_v0  ;;  %v1409_v39 = vmul.f32 %v1000_v16, %v449_v1 }
 0x129   : > { %1897 = vst [vmem:[%s2881_s25 + $0x6d0] sm:$0xff] %v1385_v19  ;;  %1898 = vst [vmem:[%s2881_s25 + $0x6d8] sm:$0xff] %v1386_v20  ;;  %v452_v8 = vld [vmem:[%s2653_s16 + $0x7a8] sm:$0xff]  ;;  %v453_v9 = vld [vmem:[%s2653_s16 + $0x7b0] sm:$0xff]  ;;  %v1410_v40 = vmul.f32 %v1000_v16, %v450_v2  ;;  %v1411_v45 = vmul.f32 %v1000_v16, %v451_v7 }
 0x12a   : > { %1899 = vst [vmem:[%s2881_s25 + $0x6e0] sm:$0xff] %v1387_v25  ;;  %1900 = vst [vmem:[%s2881_s25 + $0x6e8] sm:$0xff] %v1388_v26  ;;  %v454_v10 = vld [vmem:[%s2653_s16 + $0x7b8] sm:$0xff]  ;;  %v471_v17 = vld [vmem:[%s2653_s16 + $0x840] sm:$0xff]  ;;  %v1412_v46 = vmul.f32 %v1000_v16, %v452_v8  ;;  %v1413_v47 = vmul.f32 %v1000_v16, %v453_v9 }
 0x12b   : > { %1901 = vst [vmem:[%s2881_s25 + $0x6f0] sm:$0xff] %v1389_v27  ;;  %1902 = vst [vmem:[%s2881_s25 + $0x6f8] sm:$0xff] %v1390_v28  ;;  %v472_v18 = vld [vmem:[%s2653_s16 + $0x848] sm:$0xff]  ;;  %v473_v19 = vld [vmem:[%s2653_s16 + $0x850] sm:$0xff]  ;;  %v1414_v48 = vmul.f32 %v1000_v16, %v454_v10  ;;  %v1431_v55 = vmul.f32 %v1015_v49, %v471_v17 }
 0x12c   : > { %1887 = vst [vmem:[%s2881_s25 + $0x680] sm:$0xff] %v1375_v33  ;;  %1888 = vst [vmem:[%s2881_s25 + $0x688] sm:$0xff] %v1376_v34  ;;  %v474_v20 = vld [vmem:[%s2653_s16 + $0x858] sm:$0xff]  ;;  %v475_v25 = vld [vmem:[%s2653_s16 + $0x860] sm:$0xff]  ;;  %v1432_v56 = vmul.f32 %v1015_v49, %v472_v18  ;;  %v1433_v57 = vmul.f32 %v1015_v49, %v473_v19  ;;  %v1025_v19 = vpop.permute.xlu1 %1024 }
 0x12d   : > { %1889 = vst [vmem:[%s2881_s25 + $0x690] sm:$0xff] %v1377_v35  ;;  %1890 = vst [vmem:[%s2881_s25 + $0x698] sm:$0xff] %v1378_v36  ;;  %v476_v26 = vld [vmem:[%s2653_s16 + $0x868] sm:$0xff]  ;;  %v477_v27 = vld [vmem:[%s2653_s16 + $0x870] sm:$0xff]  ;;  %v1434_v58 = vmul.f32 %v1015_v49, %v474_v20  ;;  %v1435_v63 = vmul.f32 %v1015_v49, %v475_v25  ;;  %v1020_v20 = vpop.permute.xlu0 %1019 }
 0x12e   : > { %1891 = vst [vmem:[%s2881_s25 + $0x6a0] sm:$0xff] %v1379_v41  ;;  %1892 = vst [vmem:[%s2881_s25 + $0x6a8] sm:$0xff] %v1380_v42  ;;  %v478_v28 = vld [vmem:[%s2653_s16 + $0x878] sm:$0xff]  ;;  %v463_v33 = vld [vmem:[%s2653_s16 + $0x800] sm:$0xff]  ;;  %v1436_v0 = vmul.f32 %v1015_v49, %v476_v26  ;;  %v1437_v1 = vmul.f32 %v1015_v49, %v477_v27 }
 0x12f   : > { %1893 = vst [vmem:[%s2881_s25 + $0x6b0] sm:$0xff] %v1381_v43  ;;  %1894 = vst [vmem:[%s2881_s25 + $0x6b8] sm:$0xff] %v1382_v44  ;;  %v464_v34 = vld [vmem:[%s2653_s16 + $0x808] sm:$0xff]  ;;  %v465_v35 = vld [vmem:[%s2653_s16 + $0x810] sm:$0xff]  ;;  %v1438_v2 = vmul.f32 %v1015_v49, %v478_v28  ;;  %v1423_v7 = vmul.f32 %v1010_v50, %v463_v33 }
 0x130   : > { %1911 = vst [vmem:[%s2881_s25 + $0x740] sm:$0xff] %v1399_v51  ;;  %1912 = vst [vmem:[%s2881_s25 + $0x748] sm:$0xff] %v1400_v52  ;;  %v466_v36 = vld [vmem:[%s2653_s16 + $0x818] sm:$0xff]  ;;  %v467_v41 = vld [vmem:[%s2653_s16 + $0x820] sm:$0xff]  ;;  %v1424_v8 = vmul.f32 %v1010_v50, %v464_v34  ;;  %v1425_v9 = vmul.f32 %v1010_v50, %v465_v35 }
 0x131   : > { %1913 = vst [vmem:[%s2881_s25 + $0x750] sm:$0xff] %v1401_v53  ;;  %1914 = vst [vmem:[%s2881_s25 + $0x758] sm:$0xff] %v1402_v54  ;;  %v468_v42 = vld [vmem:[%s2653_s16 + $0x828] sm:$0xff]  ;;  %v469_v43 = vld [vmem:[%s2653_s16 + $0x830] sm:$0xff]  ;;  %v1426_v10 = vmul.f32 %v1010_v50, %v466_v36  ;;  %v1427_v15 = vmul.f32 %v1010_v50, %v467_v41 }
 0x132   : > { %1915 = vst [vmem:[%s2881_s25 + $0x760] sm:$0xff] %v1403_v59  ;;  %1916 = vst [vmem:[%s2881_s25 + $0x768] sm:$0xff] %v1404_v60  ;;  %v470_v44 = vld [vmem:[%s2653_s16 + $0x838] sm:$0xff]  ;;  %v487_v51 = vld [vmem:[%s2653_s16 + $0x8c0] sm:$0xff]  ;;  %v1428_v16 = vmul.f32 %v1010_v50, %v468_v42  ;;  %v1429_v17 = vmul.f32 %v1010_v50, %v469_v43 }
 0x133   : > { %1917 = vst [vmem:[%s2881_s25 + $0x770] sm:$0xff] %v1405_v61  ;;  %1918 = vst [vmem:[%s2881_s25 + $0x778] sm:$0xff] %v1406_v62  ;;  %v488_v52 = vld [vmem:[%s2653_s16 + $0x8c8] sm:$0xff]  ;;  %v489_v53 = vld [vmem:[%s2653_s16 + $0x8d0] sm:$0xff]  ;;  %v1430_v18 = vmul.f32 %v1010_v50, %v470_v44  ;;  %v1447_v25 = vmul.f32 %v1025_v19, %v487_v51 }
 0x134   : > { %1903 = vst [vmem:[%s2881_s25 + $0x700] sm:$0xff] %v1391_v3  ;;  %1904 = vst [vmem:[%s2881_s25 + $0x708] sm:$0xff] %v1392_v4  ;;  %v490_v54 = vld [vmem:[%s2653_s16 + $0x8d8] sm:$0xff]  ;;  %v491_v59 = vld [vmem:[%s2653_s16 + $0x8e0] sm:$0xff]  ;;  %v1448_v26 = vmul.f32 %v1025_v19, %v488_v52  ;;  %v1449_v27 = vmul.f32 %v1025_v19, %v489_v53  ;;  %v1035_v53 = vpop.permute.xlu1 %1034 }
 0x135   : > { %1905 = vst [vmem:[%s2881_s25 + $0x710] sm:$0xff] %v1393_v5  ;;  %1906 = vst [vmem:[%s2881_s25 + $0x718] sm:$0xff] %v1394_v6  ;;  %v492_v60 = vld [vmem:[%s2653_s16 + $0x8e8] sm:$0xff]  ;;  %v493_v61 = vld [vmem:[%s2653_s16 + $0x8f0] sm:$0xff]  ;;  %v1450_v28 = vmul.f32 %v1025_v19, %v490_v54  ;;  %v1451_v33 = vmul.f32 %v1025_v19, %v491_v59  ;;  %v1030_v54 = vpop.permute.xlu0 %1029 }
 0x136   : > { %1907 = vst [vmem:[%s2881_s25 + $0x720] sm:$0xff] %v1395_v11  ;;  %1908 = vst [vmem:[%s2881_s25 + $0x728] sm:$0xff] %v1396_v12  ;;  %v494_v62 = vld [vmem:[%s2653_s16 + $0x8f8] sm:$0xff]  ;;  %v479_v3 = vld [vmem:[%s2653_s16 + $0x880] sm:$0xff]  ;;  %v1452_v34 = vmul.f32 %v1025_v19, %v492_v60  ;;  %v1453_v35 = vmul.f32 %v1025_v19, %v493_v61 }
 0x137   : > { %1909 = vst [vmem:[%s2881_s25 + $0x730] sm:$0xff] %v1397_v13  ;;  %1910 = vst [vmem:[%s2881_s25 + $0x738] sm:$0xff] %v1398_v14  ;;  %v480_v4 = vld [vmem:[%s2653_s16 + $0x888] sm:$0xff]  ;;  %v481_v5 = vld [vmem:[%s2653_s16 + $0x890] sm:$0xff]  ;;  %v1454_v36 = vmul.f32 %v1025_v19, %v494_v62  ;;  %v1439_v41 = vmul.f32 %v1020_v20, %v479_v3 }
 0x138   : > { %1927 = vst [vmem:[%s2881_s25 + $0x7c0] sm:$0xff] %v1415_v21  ;;  %1928 = vst [vmem:[%s2881_s25 + $0x7c8] sm:$0xff] %v1416_v22  ;;  %v482_v6 = vld [vmem:[%s2653_s16 + $0x898] sm:$0xff]  ;;  %v483_v11 = vld [vmem:[%s2653_s16 + $0x8a0] sm:$0xff]  ;;  %v1440_v42 = vmul.f32 %v1020_v20, %v480_v4  ;;  %v1441_v43 = vmul.f32 %v1020_v20, %v481_v5 }
 0x139   : > { %1929 = vst [vmem:[%s2881_s25 + $0x7d0] sm:$0xff] %v1417_v23  ;;  %1930 = vst [vmem:[%s2881_s25 + $0x7d8] sm:$0xff] %v1418_v24  ;;  %v484_v12 = vld [vmem:[%s2653_s16 + $0x8a8] sm:$0xff]  ;;  %v485_v13 = vld [vmem:[%s2653_s16 + $0x8b0] sm:$0xff]  ;;  %v1442_v44 = vmul.f32 %v1020_v20, %v482_v6  ;;  %v1443_v49 = vmul.f32 %v1020_v20, %v483_v11 }
 0x13a   : > { %1931 = vst [vmem:[%s2881_s25 + $0x7e0] sm:$0xff] %v1419_v29  ;;  %1932 = vst [vmem:[%s2881_s25 + $0x7e8] sm:$0xff] %v1420_v30  ;;  %v486_v14 = vld [vmem:[%s2653_s16 + $0x8b8] sm:$0xff]  ;;  %v503_v21 = vld [vmem:[%s2653_s16 + $0x940] sm:$0xff]  ;;  %v1444_v50 = vmul.f32 %v1020_v20, %v484_v12  ;;  %v1445_v51 = vmul.f32 %v1020_v20, %v485_v13 }
 0x13b   : > { %1933 = vst [vmem:[%s2881_s25 + $0x7f0] sm:$0xff] %v1421_v31  ;;  %1934 = vst [vmem:[%s2881_s25 + $0x7f8] sm:$0xff] %v1422_v32  ;;  %v504_v22 = vld [vmem:[%s2653_s16 + $0x948] sm:$0xff]  ;;  %v505_v23 = vld [vmem:[%s2653_s16 + $0x950] sm:$0xff]  ;;  %v1446_v52 = vmul.f32 %v1020_v20, %v486_v14  ;;  %v1463_v59 = vmul.f32 %v1035_v53, %v503_v21 }
 0x13c   : > { %1919 = vst [vmem:[%s2881_s25 + $0x780] sm:$0xff] %v1407_v37  ;;  %1920 = vst [vmem:[%s2881_s25 + $0x788] sm:$0xff] %v1408_v38  ;;  %v506_v24 = vld [vmem:[%s2653_s16 + $0x958] sm:$0xff]  ;;  %v507_v29 = vld [vmem:[%s2653_s16 + $0x960] sm:$0xff]  ;;  %v1464_v60 = vmul.f32 %v1035_v53, %v504_v22  ;;  %v1465_v61 = vmul.f32 %v1035_v53, %v505_v23  ;;  %v1045_v23 = vpop.permute.xlu1 %1044 }
 0x13d   : > { %1921 = vst [vmem:[%s2881_s25 + $0x790] sm:$0xff] %v1409_v39  ;;  %1922 = vst [vmem:[%s2881_s25 + $0x798] sm:$0xff] %v1410_v40  ;;  %v508_v30 = vld [vmem:[%s2653_s16 + $0x968] sm:$0xff]  ;;  %v509_v31 = vld [vmem:[%s2653_s16 + $0x970] sm:$0xff]  ;;  %v1466_v62 = vmul.f32 %v1035_v53, %v506_v24  ;;  %v1467_v3 = vmul.f32 %v1035_v53, %v507_v29  ;;  %v1040_v24 = vpop.permute.xlu0 %1039 }
 0x13e   : > { %1923 = vst [vmem:[%s2881_s25 + $0x7a0] sm:$0xff] %v1411_v45  ;;  %1924 = vst [vmem:[%s2881_s25 + $0x7a8] sm:$0xff] %v1412_v46  ;;  %v510_v32 = vld [vmem:[%s2653_s16 + $0x978] sm:$0xff]  ;;  %v495_v37 = vld [vmem:[%s2653_s16 + $0x900] sm:$0xff]  ;;  %v1468_v4 = vmul.f32 %v1035_v53, %v508_v30  ;;  %v1469_v5 = vmul.f32 %v1035_v53, %v509_v31 }
 0x13f   : > { %1925 = vst [vmem:[%s2881_s25 + $0x7b0] sm:$0xff] %v1413_v47  ;;  %1926 = vst [vmem:[%s2881_s25 + $0x7b8] sm:$0xff] %v1414_v48  ;;  %v496_v38 = vld [vmem:[%s2653_s16 + $0x908] sm:$0xff]  ;;  %v497_v39 = vld [vmem:[%s2653_s16 + $0x910] sm:$0xff]  ;;  %v1470_v6 = vmul.f32 %v1035_v53, %v510_v32  ;;  %v1455_v11 = vmul.f32 %v1030_v54, %v495_v37 }
 0x140   : > { %1943 = vst [vmem:[%s2881_s25 + $0x840] sm:$0xff] %v1431_v55  ;;  %1944 = vst [vmem:[%s2881_s25 + $0x848] sm:$0xff] %v1432_v56  ;;  %v498_v40 = vld [vmem:[%s2653_s16 + $0x918] sm:$0xff]  ;;  %v499_v45 = vld [vmem:[%s2653_s16 + $0x920] sm:$0xff]  ;;  %v1456_v12 = vmul.f32 %v1030_v54, %v496_v38  ;;  %v1457_v13 = vmul.f32 %v1030_v54, %v497_v39 }
 0x141   : > { %1945 = vst [vmem:[%s2881_s25 + $0x850] sm:$0xff] %v1433_v57  ;;  %1946 = vst [vmem:[%s2881_s25 + $0x858] sm:$0xff] %v1434_v58  ;;  %v500_v46 = vld [vmem:[%s2653_s16 + $0x928] sm:$0xff]  ;;  %v501_v47 = vld [vmem:[%s2653_s16 + $0x930] sm:$0xff]  ;;  %v1458_v14 = vmul.f32 %v1030_v54, %v498_v40  ;;  %v1459_v19 = vmul.f32 %v1030_v54, %v499_v45 }
 0x142   : > { %1947 = vst [vmem:[%s2881_s25 + $0x860] sm:$0xff] %v1435_v63  ;;  %1948 = vst [vmem:[%s2881_s25 + $0x868] sm:$0xff] %v1436_v0  ;;  %v502_v48 = vld [vmem:[%s2653_s16 + $0x938] sm:$0xff]  ;;  %v519_v55 = vld [vmem:[%s2653_s16 + $0x9c0] sm:$0xff]  ;;  %v1460_v20 = vmul.f32 %v1030_v54, %v500_v46  ;;  %v1461_v21 = vmul.f32 %v1030_v54, %v501_v47 }
 0x143   : > { %1949 = vst [vmem:[%s2881_s25 + $0x870] sm:$0xff] %v1437_v1  ;;  %1950 = vst [vmem:[%s2881_s25 + $0x878] sm:$0xff] %v1438_v2  ;;  %v520_v56 = vld [vmem:[%s2653_s16 + $0x9c8] sm:$0xff]  ;;  %v521_v57 = vld [vmem:[%s2653_s16 + $0x9d0] sm:$0xff]  ;;  %v1462_v22 = vmul.f32 %v1030_v54, %v502_v48  ;;  %v1479_v29 = vmul.f32 %v1045_v23, %v519_v55 }
 0x144   : > { %1935 = vst [vmem:[%s2881_s25 + $0x800] sm:$0xff] %v1423_v7  ;;  %1936 = vst [vmem:[%s2881_s25 + $0x808] sm:$0xff] %v1424_v8  ;;  %v522_v58 = vld [vmem:[%s2653_s16 + $0x9d8] sm:$0xff]  ;;  %v523_v63 = vld [vmem:[%s2653_s16 + $0x9e0] sm:$0xff]  ;;  %v1480_v30 = vmul.f32 %v1045_v23, %v520_v56  ;;  %v1481_v31 = vmul.f32 %v1045_v23, %v521_v57  ;;  %v1055_v57 = vpop.permute.xlu1 %1054 }
 0x145   : > { %1937 = vst [vmem:[%s2881_s25 + $0x810] sm:$0xff] %v1425_v9  ;;  %1938 = vst [vmem:[%s2881_s25 + $0x818] sm:$0xff] %v1426_v10  ;;  %v524_v0 = vld [vmem:[%s2653_s16 + $0x9e8] sm:$0xff]  ;;  %v525_v1 = vld [vmem:[%s2653_s16 + $0x9f0] sm:$0xff]  ;;  %v1482_v32 = vmul.f32 %v1045_v23, %v522_v58  ;;  %v1483_v37 = vmul.f32 %v1045_v23, %v523_v63  ;;  %v1050_v58 = vpop.permute.xlu0 %1049 }
 0x146   : > { %1939 = vst [vmem:[%s2881_s25 + $0x820] sm:$0xff] %v1427_v15  ;;  %1940 = vst [vmem:[%s2881_s25 + $0x828] sm:$0xff] %v1428_v16  ;;  %v526_v2 = vld [vmem:[%s2653_s16 + $0x9f8] sm:$0xff]  ;;  %v511_v7 = vld [vmem:[%s2653_s16 + $0x980] sm:$0xff]  ;;  %v1484_v38 = vmul.f32 %v1045_v23, %v524_v0  ;;  %v1485_v39 = vmul.f32 %v1045_v23, %v525_v1 }
 0x147   : > { %1941 = vst [vmem:[%s2881_s25 + $0x830] sm:$0xff] %v1429_v17  ;;  %1942 = vst [vmem:[%s2881_s25 + $0x838] sm:$0xff] %v1430_v18  ;;  %v512_v8 = vld [vmem:[%s2653_s16 + $0x988] sm:$0xff]  ;;  %v513_v9 = vld [vmem:[%s2653_s16 + $0x990] sm:$0xff]  ;;  %v1486_v40 = vmul.f32 %v1045_v23, %v526_v2  ;;  %v1471_v45 = vmul.f32 %v1040_v24, %v511_v7 }
 0x148   : > { %1959 = vst [vmem:[%s2881_s25 + $0x8c0] sm:$0xff] %v1447_v25  ;;  %1960 = vst [vmem:[%s2881_s25 + $0x8c8] sm:$0xff] %v1448_v26  ;;  %v514_v10 = vld [vmem:[%s2653_s16 + $0x998] sm:$0xff]  ;;  %v515_v15 = vld [vmem:[%s2653_s16 + $0x9a0] sm:$0xff]  ;;  %v1472_v46 = vmul.f32 %v1040_v24, %v512_v8  ;;  %v1473_v47 = vmul.f32 %v1040_v24, %v513_v9 }
 0x149   : > { %1961 = vst [vmem:[%s2881_s25 + $0x8d0] sm:$0xff] %v1449_v27  ;;  %1962 = vst [vmem:[%s2881_s25 + $0x8d8] sm:$0xff] %v1450_v28  ;;  %v516_v16 = vld [vmem:[%s2653_s16 + $0x9a8] sm:$0xff]  ;;  %v517_v17 = vld [vmem:[%s2653_s16 + $0x9b0] sm:$0xff]  ;;  %v1474_v48 = vmul.f32 %v1040_v24, %v514_v10  ;;  %v1475_v53 = vmul.f32 %v1040_v24, %v515_v15 }
 0x14a   : > { %1963 = vst [vmem:[%s2881_s25 + $0x8e0] sm:$0xff] %v1451_v33  ;;  %1964 = vst [vmem:[%s2881_s25 + $0x8e8] sm:$0xff] %v1452_v34  ;;  %v518_v18 = vld [vmem:[%s2653_s16 + $0x9b8] sm:$0xff]  ;;  %v535_v25 = vld [vmem:[%s2653_s16 + $0xa40] sm:$0xff]  ;;  %v1476_v54 = vmul.f32 %v1040_v24, %v516_v16  ;;  %v1477_v55 = vmul.f32 %v1040_v24, %v517_v17 }
 0x14b   : > { %1965 = vst [vmem:[%s2881_s25 + $0x8f0] sm:$0xff] %v1453_v35  ;;  %1966 = vst [vmem:[%s2881_s25 + $0x8f8] sm:$0xff] %v1454_v36  ;;  %v536_v26 = vld [vmem:[%s2653_s16 + $0xa48] sm:$0xff]  ;;  %v537_v27 = vld [vmem:[%s2653_s16 + $0xa50] sm:$0xff]  ;;  %v1478_v56 = vmul.f32 %v1040_v24, %v518_v18  ;;  %v1495_v63 = vmul.f32 %v1055_v57, %v535_v25 }
 0x14c   : > { %1951 = vst [vmem:[%s2881_s25 + $0x880] sm:$0xff] %v1439_v41  ;;  %1952 = vst [vmem:[%s2881_s25 + $0x888] sm:$0xff] %v1440_v42  ;;  %v538_v28 = vld [vmem:[%s2653_s16 + $0xa58] sm:$0xff]  ;;  %v539_v33 = vld [vmem:[%s2653_s16 + $0xa60] sm:$0xff]  ;;  %v1496_v0 = vmul.f32 %v1055_v57, %v536_v26  ;;  %v1497_v1 = vmul.f32 %v1055_v57, %v537_v27  ;;  %v1065_v27 = vpop.permute.xlu1 %1064 }
 0x14d   : > { %1953 = vst [vmem:[%s2881_s25 + $0x890] sm:$0xff] %v1441_v43  ;;  %1954 = vst [vmem:[%s2881_s25 + $0x898] sm:$0xff] %v1442_v44  ;;  %v540_v34 = vld [vmem:[%s2653_s16 + $0xa68] sm:$0xff]  ;;  %v541_v35 = vld [vmem:[%s2653_s16 + $0xa70] sm:$0xff]  ;;  %v1498_v2 = vmul.f32 %v1055_v57, %v538_v28  ;;  %v1499_v7 = vmul.f32 %v1055_v57, %v539_v33  ;;  %v1060_v28 = vpop.permute.xlu0 %1059 }
 0x14e   : > { %1955 = vst [vmem:[%s2881_s25 + $0x8a0] sm:$0xff] %v1443_v49  ;;  %1956 = vst [vmem:[%s2881_s25 + $0x8a8] sm:$0xff] %v1444_v50  ;;  %v542_v36 = vld [vmem:[%s2653_s16 + $0xa78] sm:$0xff]  ;;  %v527_v41 = vld [vmem:[%s2653_s16 + $0xa00] sm:$0xff]  ;;  %v1500_v8 = vmul.f32 %v1055_v57, %v540_v34  ;;  %v1501_v9 = vmul.f32 %v1055_v57, %v541_v35 }
 0x14f   : > { %1957 = vst [vmem:[%s2881_s25 + $0x8b0] sm:$0xff] %v1445_v51  ;;  %1958 = vst [vmem:[%s2881_s25 + $0x8b8] sm:$0xff] %v1446_v52  ;;  %v528_v42 = vld [vmem:[%s2653_s16 + $0xa08] sm:$0xff]  ;;  %v529_v43 = vld [vmem:[%s2653_s16 + $0xa10] sm:$0xff]  ;;  %v1502_v10 = vmul.f32 %v1055_v57, %v542_v36  ;;  %v1487_v15 = vmul.f32 %v1050_v58, %v527_v41 }
 0x150   : > { %1975 = vst [vmem:[%s2881_s25 + $0x940] sm:$0xff] %v1463_v59  ;;  %1976 = vst [vmem:[%s2881_s25 + $0x948] sm:$0xff] %v1464_v60  ;;  %v530_v44 = vld [vmem:[%s2653_s16 + $0xa18] sm:$0xff]  ;;  %v531_v49 = vld [vmem:[%s2653_s16 + $0xa20] sm:$0xff]  ;;  %v1488_v16 = vmul.f32 %v1050_v58, %v528_v42  ;;  %v1489_v17 = vmul.f32 %v1050_v58, %v529_v43 }
 0x151   : > { %1977 = vst [vmem:[%s2881_s25 + $0x950] sm:$0xff] %v1465_v61  ;;  %1978 = vst [vmem:[%s2881_s25 + $0x958] sm:$0xff] %v1466_v62  ;;  %v532_v50 = vld [vmem:[%s2653_s16 + $0xa28] sm:$0xff]  ;;  %v533_v51 = vld [vmem:[%s2653_s16 + $0xa30] sm:$0xff]  ;;  %v1490_v18 = vmul.f32 %v1050_v58, %v530_v44  ;;  %v1491_v23 = vmul.f32 %v1050_v58, %v531_v49 }
 0x152   : > { %1979 = vst [vmem:[%s2881_s25 + $0x960] sm:$0xff] %v1467_v3  ;;  %1980 = vst [vmem:[%s2881_s25 + $0x968] sm:$0xff] %v1468_v4  ;;  %v534_v52 = vld [vmem:[%s2653_s16 + $0xa38] sm:$0xff]  ;;  %v551_v59 = vld [vmem:[%s2653_s16 + $0xac0] sm:$0xff]  ;;  %v1492_v24 = vmul.f32 %v1050_v58, %v532_v50  ;;  %v1493_v25 = vmul.f32 %v1050_v58, %v533_v51 }
 0x153   : > { %1981 = vst [vmem:[%s2881_s25 + $0x970] sm:$0xff] %v1469_v5  ;;  %1982 = vst [vmem:[%s2881_s25 + $0x978] sm:$0xff] %v1470_v6  ;;  %v552_v60 = vld [vmem:[%s2653_s16 + $0xac8] sm:$0xff]  ;;  %v553_v61 = vld [vmem:[%s2653_s16 + $0xad0] sm:$0xff]  ;;  %v1494_v26 = vmul.f32 %v1050_v58, %v534_v52  ;;  %v1511_v33 = vmul.f32 %v1065_v27, %v551_v59 }
 0x154   : > { %1967 = vst [vmem:[%s2881_s25 + $0x900] sm:$0xff] %v1455_v11  ;;  %1968 = vst [vmem:[%s2881_s25 + $0x908] sm:$0xff] %v1456_v12  ;;  %v554_v62 = vld [vmem:[%s2653_s16 + $0xad8] sm:$0xff]  ;;  %v555_v3 = vld [vmem:[%s2653_s16 + $0xae0] sm:$0xff]  ;;  %v1512_v34 = vmul.f32 %v1065_v27, %v552_v60  ;;  %v1513_v35 = vmul.f32 %v1065_v27, %v553_v61  ;;  %v1075_v61 = vpop.permute.xlu1 %1074 }
 0x155   : > { %1969 = vst [vmem:[%s2881_s25 + $0x910] sm:$0xff] %v1457_v13  ;;  %1970 = vst [vmem:[%s2881_s25 + $0x918] sm:$0xff] %v1458_v14  ;;  %v556_v4 = vld [vmem:[%s2653_s16 + $0xae8] sm:$0xff]  ;;  %v557_v5 = vld [vmem:[%s2653_s16 + $0xaf0] sm:$0xff]  ;;  %v1514_v36 = vmul.f32 %v1065_v27, %v554_v62  ;;  %v1515_v41 = vmul.f32 %v1065_v27, %v555_v3  ;;  %v1070_v62 = vpop.permute.xlu0 %1069 }
 0x156   : > { %1971 = vst [vmem:[%s2881_s25 + $0x920] sm:$0xff] %v1459_v19  ;;  %1972 = vst [vmem:[%s2881_s25 + $0x928] sm:$0xff] %v1460_v20  ;;  %v558_v6 = vld [vmem:[%s2653_s16 + $0xaf8] sm:$0xff]  ;;  %v543_v11 = vld [vmem:[%s2653_s16 + $0xa80] sm:$0xff]  ;;  %v1516_v42 = vmul.f32 %v1065_v27, %v556_v4  ;;  %v1517_v43 = vmul.f32 %v1065_v27, %v557_v5 }
 0x157   : > { %1973 = vst [vmem:[%s2881_s25 + $0x930] sm:$0xff] %v1461_v21  ;;  %1974 = vst [vmem:[%s2881_s25 + $0x938] sm:$0xff] %v1462_v22  ;;  %v544_v12 = vld [vmem:[%s2653_s16 + $0xa88] sm:$0xff]  ;;  %v545_v13 = vld [vmem:[%s2653_s16 + $0xa90] sm:$0xff]  ;;  %v1518_v44 = vmul.f32 %v1065_v27, %v558_v6  ;;  %v1503_v49 = vmul.f32 %v1060_v28, %v543_v11 }
 0x158   : > { %1991 = vst [vmem:[%s2881_s25 + $0x9c0] sm:$0xff] %v1479_v29  ;;  %1992 = vst [vmem:[%s2881_s25 + $0x9c8] sm:$0xff] %v1480_v30  ;;  %v546_v14 = vld [vmem:[%s2653_s16 + $0xa98] sm:$0xff]  ;;  %v547_v19 = vld [vmem:[%s2653_s16 + $0xaa0] sm:$0xff]  ;;  %v1504_v50 = vmul.f32 %v1060_v28, %v544_v12  ;;  %v1505_v51 = vmul.f32 %v1060_v28, %v545_v13 }
 0x159   : > { %1993 = vst [vmem:[%s2881_s25 + $0x9d0] sm:$0xff] %v1481_v31  ;;  %1994 = vst [vmem:[%s2881_s25 + $0x9d8] sm:$0xff] %v1482_v32  ;;  %v548_v20 = vld [vmem:[%s2653_s16 + $0xaa8] sm:$0xff]  ;;  %v549_v21 = vld [vmem:[%s2653_s16 + $0xab0] sm:$0xff]  ;;  %v1506_v52 = vmul.f32 %v1060_v28, %v546_v14  ;;  %v1507_v57 = vmul.f32 %v1060_v28, %v547_v19 }
 0x15a   : > { %1995 = vst [vmem:[%s2881_s25 + $0x9e0] sm:$0xff] %v1483_v37  ;;  %1996 = vst [vmem:[%s2881_s25 + $0x9e8] sm:$0xff] %v1484_v38  ;;  %v550_v22 = vld [vmem:[%s2653_s16 + $0xab8] sm:$0xff]  ;;  %v567_v29 = vld [vmem:[%s2653_s16 + $0xb40] sm:$0xff]  ;;  %v1508_v58 = vmul.f32 %v1060_v28, %v548_v20  ;;  %v1509_v59 = vmul.f32 %v1060_v28, %v549_v21 }
 0x15b   : > { %1997 = vst [vmem:[%s2881_s25 + $0x9f0] sm:$0xff] %v1485_v39  ;;  %1998 = vst [vmem:[%s2881_s25 + $0x9f8] sm:$0xff] %v1486_v40  ;;  %v568_v30 = vld [vmem:[%s2653_s16 + $0xb48] sm:$0xff]  ;;  %v569_v31 = vld [vmem:[%s2653_s16 + $0xb50] sm:$0xff]  ;;  %v1510_v60 = vmul.f32 %v1060_v28, %v550_v22  ;;  %v1527_v3 = vmul.f32 %v1075_v61, %v567_v29 }
 0x15c   : > { %1983 = vst [vmem:[%s2881_s25 + $0x980] sm:$0xff] %v1471_v45  ;;  %1984 = vst [vmem:[%s2881_s25 + $0x988] sm:$0xff] %v1472_v46  ;;  %v570_v32 = vld [vmem:[%s2653_s16 + $0xb58] sm:$0xff]  ;;  %v571_v37 = vld [vmem:[%s2653_s16 + $0xb60] sm:$0xff]  ;;  %v1528_v4 = vmul.f32 %v1075_v61, %v568_v30  ;;  %v1529_v5 = vmul.f32 %v1075_v61, %v569_v31  ;;  %v1085_v31 = vpop.permute.xlu1 %1084 }
 0x15d   : > { %1985 = vst [vmem:[%s2881_s25 + $0x990] sm:$0xff] %v1473_v47  ;;  %1986 = vst [vmem:[%s2881_s25 + $0x998] sm:$0xff] %v1474_v48  ;;  %v572_v38 = vld [vmem:[%s2653_s16 + $0xb68] sm:$0xff]  ;;  %v573_v39 = vld [vmem:[%s2653_s16 + $0xb70] sm:$0xff]  ;;  %v1530_v6 = vmul.f32 %v1075_v61, %v570_v32  ;;  %v1531_v11 = vmul.f32 %v1075_v61, %v571_v37  ;;  %v1080_v32 = vpop.permute.xlu0 %1079 }
 0x15e   : > { %1987 = vst [vmem:[%s2881_s25 + $0x9a0] sm:$0xff] %v1475_v53  ;;  %1988 = vst [vmem:[%s2881_s25 + $0x9a8] sm:$0xff] %v1476_v54  ;;  %v574_v40 = vld [vmem:[%s2653_s16 + $0xb78] sm:$0xff]  ;;  %v559_v45 = vld [vmem:[%s2653_s16 + $0xb00] sm:$0xff]  ;;  %v1532_v12 = vmul.f32 %v1075_v61, %v572_v38  ;;  %v1533_v13 = vmul.f32 %v1075_v61, %v573_v39 }
 0x15f   : > { %1989 = vst [vmem:[%s2881_s25 + $0x9b0] sm:$0xff] %v1477_v55  ;;  %1990 = vst [vmem:[%s2881_s25 + $0x9b8] sm:$0xff] %v1478_v56  ;;  %v560_v46 = vld [vmem:[%s2653_s16 + $0xb08] sm:$0xff]  ;;  %v561_v47 = vld [vmem:[%s2653_s16 + $0xb10] sm:$0xff]  ;;  %v1534_v14 = vmul.f32 %v1075_v61, %v574_v40  ;;  %v1519_v19 = vmul.f32 %v1070_v62, %v559_v45 }
 0x160   : > { %2007 = vst [vmem:[%s2881_s25 + $0xa40] sm:$0xff] %v1495_v63  ;;  %2008 = vst [vmem:[%s2881_s25 + $0xa48] sm:$0xff] %v1496_v0  ;;  %v562_v48 = vld [vmem:[%s2653_s16 + $0xb18] sm:$0xff]  ;;  %v563_v53 = vld [vmem:[%s2653_s16 + $0xb20] sm:$0xff]  ;;  %v1520_v20 = vmul.f32 %v1070_v62, %v560_v46  ;;  %v1521_v21 = vmul.f32 %v1070_v62, %v561_v47 }
 0x161   : > { %2009 = vst [vmem:[%s2881_s25 + $0xa50] sm:$0xff] %v1497_v1  ;;  %2010 = vst [vmem:[%s2881_s25 + $0xa58] sm:$0xff] %v1498_v2  ;;  %v564_v54 = vld [vmem:[%s2653_s16 + $0xb28] sm:$0xff]  ;;  %v565_v55 = vld [vmem:[%s2653_s16 + $0xb30] sm:$0xff]  ;;  %v1522_v22 = vmul.f32 %v1070_v62, %v562_v48  ;;  %v1523_v27 = vmul.f32 %v1070_v62, %v563_v53 }
 0x162   : > { %2011 = vst [vmem:[%s2881_s25 + $0xa60] sm:$0xff] %v1499_v7  ;;  %2012 = vst [vmem:[%s2881_s25 + $0xa68] sm:$0xff] %v1500_v8  ;;  %v566_v56 = vld [vmem:[%s2653_s16 + $0xb38] sm:$0xff]  ;;  %v583_v63 = vld [vmem:[%s2653_s16 + $0xbc0] sm:$0xff]  ;;  %v1524_v28 = vmul.f32 %v1070_v62, %v564_v54  ;;  %v1525_v29 = vmul.f32 %v1070_v62, %v565_v55 }
 0x163   : > { %2013 = vst [vmem:[%s2881_s25 + $0xa70] sm:$0xff] %v1501_v9  ;;  %2014 = vst [vmem:[%s2881_s25 + $0xa78] sm:$0xff] %v1502_v10  ;;  %v584_v0 = vld [vmem:[%s2653_s16 + $0xbc8] sm:$0xff]  ;;  %v585_v1 = vld [vmem:[%s2653_s16 + $0xbd0] sm:$0xff]  ;;  %v1526_v30 = vmul.f32 %v1070_v62, %v566_v56  ;;  %v1543_v37 = vmul.f32 %v1085_v31, %v583_v63 }
 0x164   : > { %1999 = vst [vmem:[%s2881_s25 + $0xa00] sm:$0xff] %v1487_v15  ;;  %2000 = vst [vmem:[%s2881_s25 + $0xa08] sm:$0xff] %v1488_v16  ;;  %v586_v2 = vld [vmem:[%s2653_s16 + $0xbd8] sm:$0xff]  ;;  %v587_v7 = vld [vmem:[%s2653_s16 + $0xbe0] sm:$0xff]  ;;  %v1544_v38 = vmul.f32 %v1085_v31, %v584_v0  ;;  %v1545_v39 = vmul.f32 %v1085_v31, %v585_v1  ;;  %v1095_v1 = vpop.permute.xlu1 %1094 }
 0x165   : > { %2001 = vst [vmem:[%s2881_s25 + $0xa10] sm:$0xff] %v1489_v17  ;;  %2002 = vst [vmem:[%s2881_s25 + $0xa18] sm:$0xff] %v1490_v18  ;;  %v588_v8 = vld [vmem:[%s2653_s16 + $0xbe8] sm:$0xff]  ;;  %v589_v9 = vld [vmem:[%s2653_s16 + $0xbf0] sm:$0xff]  ;;  %v1546_v40 = vmul.f32 %v1085_v31, %v586_v2  ;;  %v1547_v45 = vmul.f32 %v1085_v31, %v587_v7  ;;  %v1090_v2 = vpop.permute.xlu0 %1089 }
 0x166   : > { %2003 = vst [vmem:[%s2881_s25 + $0xa20] sm:$0xff] %v1491_v23  ;;  %2004 = vst [vmem:[%s2881_s25 + $0xa28] sm:$0xff] %v1492_v24  ;;  %v590_v10 = vld [vmem:[%s2653_s16 + $0xbf8] sm:$0xff]  ;;  %v575_v15 = vld [vmem:[%s2653_s16 + $0xb80] sm:$0xff]  ;;  %v1548_v46 = vmul.f32 %v1085_v31, %v588_v8  ;;  %v1549_v47 = vmul.f32 %v1085_v31, %v589_v9 }
 0x167   : > { %2005 = vst [vmem:[%s2881_s25 + $0xa30] sm:$0xff] %v1493_v25  ;;  %2006 = vst [vmem:[%s2881_s25 + $0xa38] sm:$0xff] %v1494_v26  ;;  %v576_v16 = vld [vmem:[%s2653_s16 + $0xb88] sm:$0xff]  ;;  %v577_v17 = vld [vmem:[%s2653_s16 + $0xb90] sm:$0xff]  ;;  %v1550_v48 = vmul.f32 %v1085_v31, %v590_v10  ;;  %v1535_v53 = vmul.f32 %v1080_v32, %v575_v15 }
 0x168   : > { %2023 = vst [vmem:[%s2881_s25 + $0xac0] sm:$0xff] %v1511_v33  ;;  %2024 = vst [vmem:[%s2881_s25 + $0xac8] sm:$0xff] %v1512_v34  ;;  %v578_v18 = vld [vmem:[%s2653_s16 + $0xb98] sm:$0xff]  ;;  %v579_v23 = vld [vmem:[%s2653_s16 + $0xba0] sm:$0xff]  ;;  %v1536_v54 = vmul.f32 %v1080_v32, %v576_v16  ;;  %v1537_v55 = vmul.f32 %v1080_v32, %v577_v17 }
 0x169   : > { %2025 = vst [vmem:[%s2881_s25 + $0xad0] sm:$0xff] %v1513_v35  ;;  %2026 = vst [vmem:[%s2881_s25 + $0xad8] sm:$0xff] %v1514_v36  ;;  %v580_v24 = vld [vmem:[%s2653_s16 + $0xba8] sm:$0xff]  ;;  %v581_v25 = vld [vmem:[%s2653_s16 + $0xbb0] sm:$0xff]  ;;  %v1538_v56 = vmul.f32 %v1080_v32, %v578_v18  ;;  %v1539_v61 = vmul.f32 %v1080_v32, %v579_v23 }
 0x16a   : > { %2027 = vst [vmem:[%s2881_s25 + $0xae0] sm:$0xff] %v1515_v41  ;;  %2028 = vst [vmem:[%s2881_s25 + $0xae8] sm:$0xff] %v1516_v42  ;;  %v582_v26 = vld [vmem:[%s2653_s16 + $0xbb8] sm:$0xff]  ;;  %v599_v33 = vld [vmem:[%s2653_s16 + $0xc40] sm:$0xff]  ;;  %v1540_v62 = vmul.f32 %v1080_v32, %v580_v24  ;;  %v1541_v63 = vmul.f32 %v1080_v32, %v581_v25 }
 0x16b   : > { %2029 = vst [vmem:[%s2881_s25 + $0xaf0] sm:$0xff] %v1517_v43  ;;  %2030 = vst [vmem:[%s2881_s25 + $0xaf8] sm:$0xff] %v1518_v44  ;;  %v600_v34 = vld [vmem:[%s2653_s16 + $0xc48] sm:$0xff]  ;;  %v601_v35 = vld [vmem:[%s2653_s16 + $0xc50] sm:$0xff]  ;;  %v1542_v0 = vmul.f32 %v1080_v32, %v582_v26  ;;  %v1559_v7 = vmul.f32 %v1095_v1, %v599_v33 }
 0x16c   : > { %2015 = vst [vmem:[%s2881_s25 + $0xa80] sm:$0xff] %v1503_v49  ;;  %2016 = vst [vmem:[%s2881_s25 + $0xa88] sm:$0xff] %v1504_v50  ;;  %v602_v36 = vld [vmem:[%s2653_s16 + $0xc58] sm:$0xff]  ;;  %v603_v41 = vld [vmem:[%s2653_s16 + $0xc60] sm:$0xff]  ;;  %v1560_v8 = vmul.f32 %v1095_v1, %v600_v34  ;;  %v1561_v9 = vmul.f32 %v1095_v1, %v601_v35  ;;  %v1105_v35 = vpop.permute.xlu1 %1104 }
 0x16d   : > { %2017 = vst [vmem:[%s2881_s25 + $0xa90] sm:$0xff] %v1505_v51  ;;  %2018 = vst [vmem:[%s2881_s25 + $0xa98] sm:$0xff] %v1506_v52  ;;  %v604_v42 = vld [vmem:[%s2653_s16 + $0xc68] sm:$0xff]  ;;  %v605_v43 = vld [vmem:[%s2653_s16 + $0xc70] sm:$0xff]  ;;  %v1562_v10 = vmul.f32 %v1095_v1, %v602_v36  ;;  %v1563_v15 = vmul.f32 %v1095_v1, %v603_v41  ;;  %v1100_v36 = vpop.permute.xlu0 %1099 }
 0x16e   : > { %2019 = vst [vmem:[%s2881_s25 + $0xaa0] sm:$0xff] %v1507_v57  ;;  %2020 = vst [vmem:[%s2881_s25 + $0xaa8] sm:$0xff] %v1508_v58  ;;  %v606_v44 = vld [vmem:[%s2653_s16 + $0xc78] sm:$0xff]  ;;  %v591_v49 = vld [vmem:[%s2653_s16 + $0xc00] sm:$0xff]  ;;  %v1564_v16 = vmul.f32 %v1095_v1, %v604_v42  ;;  %v1565_v17 = vmul.f32 %v1095_v1, %v605_v43 }
 0x16f   : > { %2021 = vst [vmem:[%s2881_s25 + $0xab0] sm:$0xff] %v1509_v59  ;;  %2022 = vst [vmem:[%s2881_s25 + $0xab8] sm:$0xff] %v1510_v60  ;;  %v592_v50 = vld [vmem:[%s2653_s16 + $0xc08] sm:$0xff]  ;;  %v593_v51 = vld [vmem:[%s2653_s16 + $0xc10] sm:$0xff]  ;;  %v1566_v18 = vmul.f32 %v1095_v1, %v606_v44  ;;  %v1551_v23 = vmul.f32 %v1090_v2, %v591_v49 }
 0x170   : > { %2039 = vst [vmem:[%s2881_s25 + $0xb40] sm:$0xff] %v1527_v3  ;;  %2040 = vst [vmem:[%s2881_s25 + $0xb48] sm:$0xff] %v1528_v4  ;;  %v594_v52 = vld [vmem:[%s2653_s16 + $0xc18] sm:$0xff]  ;;  %v595_v57 = vld [vmem:[%s2653_s16 + $0xc20] sm:$0xff]  ;;  %v1552_v24 = vmul.f32 %v1090_v2, %v592_v50  ;;  %v1553_v25 = vmul.f32 %v1090_v2, %v593_v51 }
 0x171   : > { %2041 = vst [vmem:[%s2881_s25 + $0xb50] sm:$0xff] %v1529_v5  ;;  %2042 = vst [vmem:[%s2881_s25 + $0xb58] sm:$0xff] %v1530_v6  ;;  %v596_v58 = vld [vmem:[%s2653_s16 + $0xc28] sm:$0xff]  ;;  %v597_v59 = vld [vmem:[%s2653_s16 + $0xc30] sm:$0xff]  ;;  %v1554_v26 = vmul.f32 %v1090_v2, %v594_v52  ;;  %v1555_v31 = vmul.f32 %v1090_v2, %v595_v57 }
 0x172   : > { %2043 = vst [vmem:[%s2881_s25 + $0xb60] sm:$0xff] %v1531_v11  ;;  %2044 = vst [vmem:[%s2881_s25 + $0xb68] sm:$0xff] %v1532_v12  ;;  %v598_v60 = vld [vmem:[%s2653_s16 + $0xc38] sm:$0xff]  ;;  %v615_v3 = vld [vmem:[%s2653_s16 + $0xcc0] sm:$0xff]  ;;  %v1556_v32 = vmul.f32 %v1090_v2, %v596_v58  ;;  %v1557_v33 = vmul.f32 %v1090_v2, %v597_v59 }
 0x173   : > { %2045 = vst [vmem:[%s2881_s25 + $0xb70] sm:$0xff] %v1533_v13  ;;  %2046 = vst [vmem:[%s2881_s25 + $0xb78] sm:$0xff] %v1534_v14  ;;  %v616_v4 = vld [vmem:[%s2653_s16 + $0xcc8] sm:$0xff]  ;;  %v617_v5 = vld [vmem:[%s2653_s16 + $0xcd0] sm:$0xff]  ;;  %v1558_v34 = vmul.f32 %v1090_v2, %v598_v60  ;;  %v1575_v41 = vmul.f32 %v1105_v35, %v615_v3 }
 0x174   : > { %2031 = vst [vmem:[%s2881_s25 + $0xb00] sm:$0xff] %v1519_v19  ;;  %2032 = vst [vmem:[%s2881_s25 + $0xb08] sm:$0xff] %v1520_v20  ;;  %v618_v6 = vld [vmem:[%s2653_s16 + $0xcd8] sm:$0xff]  ;;  %v619_v11 = vld [vmem:[%s2653_s16 + $0xce0] sm:$0xff]  ;;  %v1576_v42 = vmul.f32 %v1105_v35, %v616_v4  ;;  %v1577_v43 = vmul.f32 %v1105_v35, %v617_v5  ;;  %v1115_v5 = vpop.permute.xlu1 %1114 }
 0x175   : > { %2033 = vst [vmem:[%s2881_s25 + $0xb10] sm:$0xff] %v1521_v21  ;;  %2034 = vst [vmem:[%s2881_s25 + $0xb18] sm:$0xff] %v1522_v22  ;;  %v620_v12 = vld [vmem:[%s2653_s16 + $0xce8] sm:$0xff]  ;;  %v621_v13 = vld [vmem:[%s2653_s16 + $0xcf0] sm:$0xff]  ;;  %v1578_v44 = vmul.f32 %v1105_v35, %v618_v6  ;;  %v1579_v49 = vmul.f32 %v1105_v35, %v619_v11  ;;  %v1110_v6 = vpop.permute.xlu0 %1109 }
 0x176   : > { %2035 = vst [vmem:[%s2881_s25 + $0xb20] sm:$0xff] %v1523_v27  ;;  %2036 = vst [vmem:[%s2881_s25 + $0xb28] sm:$0xff] %v1524_v28  ;;  %v622_v14 = vld [vmem:[%s2653_s16 + $0xcf8] sm:$0xff]  ;;  %v607_v19 = vld [vmem:[%s2653_s16 + $0xc80] sm:$0xff]  ;;  %v1580_v50 = vmul.f32 %v1105_v35, %v620_v12  ;;  %v1581_v51 = vmul.f32 %v1105_v35, %v621_v13 }
 0x177   : > { %2037 = vst [vmem:[%s2881_s25 + $0xb30] sm:$0xff] %v1525_v29  ;;  %2038 = vst [vmem:[%s2881_s25 + $0xb38] sm:$0xff] %v1526_v30  ;;  %v608_v20 = vld [vmem:[%s2653_s16 + $0xc88] sm:$0xff]  ;;  %v609_v21 = vld [vmem:[%s2653_s16 + $0xc90] sm:$0xff]  ;;  %v1582_v52 = vmul.f32 %v1105_v35, %v622_v14  ;;  %v1567_v57 = vmul.f32 %v1100_v36, %v607_v19 }
 0x178   : > { %2055 = vst [vmem:[%s2881_s25 + $0xbc0] sm:$0xff] %v1543_v37  ;;  %2056 = vst [vmem:[%s2881_s25 + $0xbc8] sm:$0xff] %v1544_v38  ;;  %v610_v22 = vld [vmem:[%s2653_s16 + $0xc98] sm:$0xff]  ;;  %v611_v27 = vld [vmem:[%s2653_s16 + $0xca0] sm:$0xff]  ;;  %v1568_v58 = vmul.f32 %v1100_v36, %v608_v20  ;;  %v1569_v59 = vmul.f32 %v1100_v36, %v609_v21 }
 0x179   : > { %2057 = vst [vmem:[%s2881_s25 + $0xbd0] sm:$0xff] %v1545_v39  ;;  %2058 = vst [vmem:[%s2881_s25 + $0xbd8] sm:$0xff] %v1546_v40  ;;  %v612_v28 = vld [vmem:[%s2653_s16 + $0xca8] sm:$0xff]  ;;  %v613_v29 = vld [vmem:[%s2653_s16 + $0xcb0] sm:$0xff]  ;;  %v1570_v60 = vmul.f32 %v1100_v36, %v610_v22  ;;  %v1571_v1 = vmul.f32 %v1100_v36, %v611_v27 }
 0x17a   : > { %2059 = vst [vmem:[%s2881_s25 + $0xbe0] sm:$0xff] %v1547_v45  ;;  %2060 = vst [vmem:[%s2881_s25 + $0xbe8] sm:$0xff] %v1548_v46  ;;  %v614_v30 = vld [vmem:[%s2653_s16 + $0xcb8] sm:$0xff]  ;;  %v631_v37 = vld [vmem:[%s2653_s16 + $0xd40] sm:$0xff]  ;;  %v1572_v2 = vmul.f32 %v1100_v36, %v612_v28  ;;  %v1573_v3 = vmul.f32 %v1100_v36, %v613_v29 }
 0x17b   : > { %2061 = vst [vmem:[%s2881_s25 + $0xbf0] sm:$0xff] %v1549_v47  ;;  %2062 = vst [vmem:[%s2881_s25 + $0xbf8] sm:$0xff] %v1550_v48  ;;  %v632_v38 = vld [vmem:[%s2653_s16 + $0xd48] sm:$0xff]  ;;  %v633_v39 = vld [vmem:[%s2653_s16 + $0xd50] sm:$0xff]  ;;  %v1574_v4 = vmul.f32 %v1100_v36, %v614_v30  ;;  %v1591_v11 = vmul.f32 %v1115_v5, %v631_v37 }
 0x17c   : > { %2047 = vst [vmem:[%s2881_s25 + $0xb80] sm:$0xff] %v1535_v53  ;;  %2048 = vst [vmem:[%s2881_s25 + $0xb88] sm:$0xff] %v1536_v54  ;;  %v634_v40 = vld [vmem:[%s2653_s16 + $0xd58] sm:$0xff]  ;;  %v635_v45 = vld [vmem:[%s2653_s16 + $0xd60] sm:$0xff]  ;;  %v1592_v12 = vmul.f32 %v1115_v5, %v632_v38  ;;  %v1593_v13 = vmul.f32 %v1115_v5, %v633_v39  ;;  %v1125_v39 = vpop.permute.xlu1 %1124 }
 0x17d   : > { %2049 = vst [vmem:[%s2881_s25 + $0xb90] sm:$0xff] %v1537_v55  ;;  %2050 = vst [vmem:[%s2881_s25 + $0xb98] sm:$0xff] %v1538_v56  ;;  %v636_v46 = vld [vmem:[%s2653_s16 + $0xd68] sm:$0xff]  ;;  %v637_v47 = vld [vmem:[%s2653_s16 + $0xd70] sm:$0xff]  ;;  %v1594_v14 = vmul.f32 %v1115_v5, %v634_v40  ;;  %v1595_v19 = vmul.f32 %v1115_v5, %v635_v45  ;;  %v1120_v40 = vpop.permute.xlu0 %1119 }
 0x17e   : > { %2051 = vst [vmem:[%s2881_s25 + $0xba0] sm:$0xff] %v1539_v61  ;;  %2052 = vst [vmem:[%s2881_s25 + $0xba8] sm:$0xff] %v1540_v62  ;;  %v638_v48 = vld [vmem:[%s2653_s16 + $0xd78] sm:$0xff]  ;;  %v623_v53 = vld [vmem:[%s2653_s16 + $0xd00] sm:$0xff]  ;;  %v1596_v20 = vmul.f32 %v1115_v5, %v636_v46  ;;  %v1597_v21 = vmul.f32 %v1115_v5, %v637_v47 }
 0x17f   : > { %2053 = vst [vmem:[%s2881_s25 + $0xbb0] sm:$0xff] %v1541_v63  ;;  %2054 = vst [vmem:[%s2881_s25 + $0xbb8] sm:$0xff] %v1542_v0  ;;  %v624_v54 = vld [vmem:[%s2653_s16 + $0xd08] sm:$0xff]  ;;  %v625_v55 = vld [vmem:[%s2653_s16 + $0xd10] sm:$0xff]  ;;  %v1598_v22 = vmul.f32 %v1115_v5, %v638_v48  ;;  %v1583_v27 = vmul.f32 %v1110_v6, %v623_v53 }
 0x180   : > { %2071 = vst [vmem:[%s2881_s25 + $0xc40] sm:$0xff] %v1559_v7  ;;  %2072 = vst [vmem:[%s2881_s25 + $0xc48] sm:$0xff] %v1560_v8  ;;  %v626_v56 = vld [vmem:[%s2653_s16 + $0xd18] sm:$0xff]  ;;  %v627_v61 = vld [vmem:[%s2653_s16 + $0xd20] sm:$0xff]  ;;  %v1584_v28 = vmul.f32 %v1110_v6, %v624_v54  ;;  %v1585_v29 = vmul.f32 %v1110_v6, %v625_v55 }
 0x181   : > { %2073 = vst [vmem:[%s2881_s25 + $0xc50] sm:$0xff] %v1561_v9  ;;  %2074 = vst [vmem:[%s2881_s25 + $0xc58] sm:$0xff] %v1562_v10  ;;  %v628_v62 = vld [vmem:[%s2653_s16 + $0xd28] sm:$0xff]  ;;  %v629_v63 = vld [vmem:[%s2653_s16 + $0xd30] sm:$0xff]  ;;  %v1586_v30 = vmul.f32 %v1110_v6, %v626_v56  ;;  %v1587_v35 = vmul.f32 %v1110_v6, %v627_v61 }
 0x182   : > { %2075 = vst [vmem:[%s2881_s25 + $0xc60] sm:$0xff] %v1563_v15  ;;  %2076 = vst [vmem:[%s2881_s25 + $0xc68] sm:$0xff] %v1564_v16  ;;  %v630_v0 = vld [vmem:[%s2653_s16 + $0xd38] sm:$0xff]  ;;  %v647_v7 = vld [vmem:[%s2653_s16 + $0xdc0] sm:$0xff]  ;;  %v1588_v36 = vmul.f32 %v1110_v6, %v628_v62  ;;  %v1589_v37 = vmul.f32 %v1110_v6, %v629_v63 }
 0x183   : > { %2077 = vst [vmem:[%s2881_s25 + $0xc70] sm:$0xff] %v1565_v17  ;;  %2078 = vst [vmem:[%s2881_s25 + $0xc78] sm:$0xff] %v1566_v18  ;;  %v648_v8 = vld [vmem:[%s2653_s16 + $0xdc8] sm:$0xff]  ;;  %v649_v9 = vld [vmem:[%s2653_s16 + $0xdd0] sm:$0xff]  ;;  %v1590_v38 = vmul.f32 %v1110_v6, %v630_v0  ;;  %v1607_v45 = vmul.f32 %v1125_v39, %v647_v7 }
 0x184   : > { %2063 = vst [vmem:[%s2881_s25 + $0xc00] sm:$0xff] %v1551_v23  ;;  %2064 = vst [vmem:[%s2881_s25 + $0xc08] sm:$0xff] %v1552_v24  ;;  %v650_v10 = vld [vmem:[%s2653_s16 + $0xdd8] sm:$0xff]  ;;  %v651_v15 = vld [vmem:[%s2653_s16 + $0xde0] sm:$0xff]  ;;  %v1608_v46 = vmul.f32 %v1125_v39, %v648_v8  ;;  %v1609_v47 = vmul.f32 %v1125_v39, %v649_v9  ;;  %v1135_v9 = vpop.permute.xlu1 %1134 }
 0x185   : > { %2065 = vst [vmem:[%s2881_s25 + $0xc10] sm:$0xff] %v1553_v25  ;;  %2066 = vst [vmem:[%s2881_s25 + $0xc18] sm:$0xff] %v1554_v26  ;;  %v652_v16 = vld [vmem:[%s2653_s16 + $0xde8] sm:$0xff]  ;;  %v653_v17 = vld [vmem:[%s2653_s16 + $0xdf0] sm:$0xff]  ;;  %v1610_v48 = vmul.f32 %v1125_v39, %v650_v10  ;;  %v1611_v53 = vmul.f32 %v1125_v39, %v651_v15  ;;  %v1130_v10 = vpop.permute.xlu0 %1129 }
 0x186   : > { %2067 = vst [vmem:[%s2881_s25 + $0xc20] sm:$0xff] %v1555_v31  ;;  %2068 = vst [vmem:[%s2881_s25 + $0xc28] sm:$0xff] %v1556_v32  ;;  %v654_v18 = vld [vmem:[%s2653_s16 + $0xdf8] sm:$0xff]  ;;  %v639_v23 = vld [vmem:[%s2653_s16 + $0xd80] sm:$0xff]  ;;  %v1612_v54 = vmul.f32 %v1125_v39, %v652_v16  ;;  %v1613_v55 = vmul.f32 %v1125_v39, %v653_v17 }
 0x187   : > { %2069 = vst [vmem:[%s2881_s25 + $0xc30] sm:$0xff] %v1557_v33  ;;  %2070 = vst [vmem:[%s2881_s25 + $0xc38] sm:$0xff] %v1558_v34  ;;  %v640_v24 = vld [vmem:[%s2653_s16 + $0xd88] sm:$0xff]  ;;  %v641_v25 = vld [vmem:[%s2653_s16 + $0xd90] sm:$0xff]  ;;  %v1614_v56 = vmul.f32 %v1125_v39, %v654_v18  ;;  %v1599_v61 = vmul.f32 %v1120_v40, %v639_v23 }
 0x188   : > { %2087 = vst [vmem:[%s2881_s25 + $0xcc0] sm:$0xff] %v1575_v41  ;;  %2088 = vst [vmem:[%s2881_s25 + $0xcc8] sm:$0xff] %v1576_v42  ;;  %v642_v26 = vld [vmem:[%s2653_s16 + $0xd98] sm:$0xff]  ;;  %v643_v31 = vld [vmem:[%s2653_s16 + $0xda0] sm:$0xff]  ;;  %v1600_v62 = vmul.f32 %v1120_v40, %v640_v24  ;;  %v1601_v63 = vmul.f32 %v1120_v40, %v641_v25 }
 0x189   : > { %2089 = vst [vmem:[%s2881_s25 + $0xcd0] sm:$0xff] %v1577_v43  ;;  %2090 = vst [vmem:[%s2881_s25 + $0xcd8] sm:$0xff] %v1578_v44  ;;  %v644_v32 = vld [vmem:[%s2653_s16 + $0xda8] sm:$0xff]  ;;  %v645_v33 = vld [vmem:[%s2653_s16 + $0xdb0] sm:$0xff]  ;;  %v1602_v0 = vmul.f32 %v1120_v40, %v642_v26  ;;  %v1603_v5 = vmul.f32 %v1120_v40, %v643_v31 }
 0x18a   : > { %2091 = vst [vmem:[%s2881_s25 + $0xce0] sm:$0xff] %v1579_v49  ;;  %2092 = vst [vmem:[%s2881_s25 + $0xce8] sm:$0xff] %v1580_v50  ;;  %v646_v34 = vld [vmem:[%s2653_s16 + $0xdb8] sm:$0xff]  ;;  %v663_v41 = vld [vmem:[%s2653_s16 + $0xe40] sm:$0xff]  ;;  %v1604_v6 = vmul.f32 %v1120_v40, %v644_v32  ;;  %v1605_v7 = vmul.f32 %v1120_v40, %v645_v33 }
 0x18b   : > { %2093 = vst [vmem:[%s2881_s25 + $0xcf0] sm:$0xff] %v1581_v51  ;;  %2094 = vst [vmem:[%s2881_s25 + $0xcf8] sm:$0xff] %v1582_v52  ;;  %v664_v42 = vld [vmem:[%s2653_s16 + $0xe48] sm:$0xff]  ;;  %v665_v43 = vld [vmem:[%s2653_s16 + $0xe50] sm:$0xff]  ;;  %v1606_v8 = vmul.f32 %v1120_v40, %v646_v34  ;;  %v1623_v15 = vmul.f32 %v1135_v9, %v663_v41 }
 0x18c   : > { %2079 = vst [vmem:[%s2881_s25 + $0xc80] sm:$0xff] %v1567_v57  ;;  %2080 = vst [vmem:[%s2881_s25 + $0xc88] sm:$0xff] %v1568_v58  ;;  %v666_v44 = vld [vmem:[%s2653_s16 + $0xe58] sm:$0xff]  ;;  %v667_v49 = vld [vmem:[%s2653_s16 + $0xe60] sm:$0xff]  ;;  %v1624_v16 = vmul.f32 %v1135_v9, %v664_v42  ;;  %v1625_v17 = vmul.f32 %v1135_v9, %v665_v43  ;;  %v1145_v43 = vpop.permute.xlu1 %1144 }
 0x18d   : > { %2081 = vst [vmem:[%s2881_s25 + $0xc90] sm:$0xff] %v1569_v59  ;;  %2082 = vst [vmem:[%s2881_s25 + $0xc98] sm:$0xff] %v1570_v60  ;;  %v668_v50 = vld [vmem:[%s2653_s16 + $0xe68] sm:$0xff]  ;;  %v669_v51 = vld [vmem:[%s2653_s16 + $0xe70] sm:$0xff]  ;;  %v1626_v18 = vmul.f32 %v1135_v9, %v666_v44  ;;  %v1627_v23 = vmul.f32 %v1135_v9, %v667_v49  ;;  %v1140_v44 = vpop.permute.xlu0 %1139 }
 0x18e   : > { %2083 = vst [vmem:[%s2881_s25 + $0xca0] sm:$0xff] %v1571_v1  ;;  %2084 = vst [vmem:[%s2881_s25 + $0xca8] sm:$0xff] %v1572_v2  ;;  %v670_v52 = vld [vmem:[%s2653_s16 + $0xe78] sm:$0xff]  ;;  %v655_v57 = vld [vmem:[%s2653_s16 + $0xe00] sm:$0xff]  ;;  %v1628_v24 = vmul.f32 %v1135_v9, %v668_v50  ;;  %v1629_v25 = vmul.f32 %v1135_v9, %v669_v51 }
 0x18f   : > { %2085 = vst [vmem:[%s2881_s25 + $0xcb0] sm:$0xff] %v1573_v3  ;;  %2086 = vst [vmem:[%s2881_s25 + $0xcb8] sm:$0xff] %v1574_v4  ;;  %v656_v58 = vld [vmem:[%s2653_s16 + $0xe08] sm:$0xff]  ;;  %v657_v59 = vld [vmem:[%s2653_s16 + $0xe10] sm:$0xff]  ;;  %v1630_v26 = vmul.f32 %v1135_v9, %v670_v52  ;;  %v1615_v31 = vmul.f32 %v1130_v10, %v655_v57 }
 0x190   : > { %2103 = vst [vmem:[%s2881_s25 + $0xd40] sm:$0xff] %v1591_v11  ;;  %2104 = vst [vmem:[%s2881_s25 + $0xd48] sm:$0xff] %v1592_v12  ;;  %v658_v60 = vld [vmem:[%s2653_s16 + $0xe18] sm:$0xff]  ;;  %v659_v1 = vld [vmem:[%s2653_s16 + $0xe20] sm:$0xff]  ;;  %v1616_v32 = vmul.f32 %v1130_v10, %v656_v58  ;;  %v1617_v33 = vmul.f32 %v1130_v10, %v657_v59 }
 0x191   : > { %2105 = vst [vmem:[%s2881_s25 + $0xd50] sm:$0xff] %v1593_v13  ;;  %2106 = vst [vmem:[%s2881_s25 + $0xd58] sm:$0xff] %v1594_v14  ;;  %v660_v2 = vld [vmem:[%s2653_s16 + $0xe28] sm:$0xff]  ;;  %v661_v3 = vld [vmem:[%s2653_s16 + $0xe30] sm:$0xff]  ;;  %v1618_v34 = vmul.f32 %v1130_v10, %v658_v60  ;;  %v1619_v39 = vmul.f32 %v1130_v10, %v659_v1 }
 0x192   : > { %2107 = vst [vmem:[%s2881_s25 + $0xd60] sm:$0xff] %v1595_v19  ;;  %2108 = vst [vmem:[%s2881_s25 + $0xd68] sm:$0xff] %v1596_v20  ;;  %v662_v4 = vld [vmem:[%s2653_s16 + $0xe38] sm:$0xff]  ;;  %v679_v11 = vld [vmem:[%s2653_s16 + $0xec0] sm:$0xff]  ;;  %v1620_v40 = vmul.f32 %v1130_v10, %v660_v2  ;;  %v1621_v41 = vmul.f32 %v1130_v10, %v661_v3 }
 0x193   : > { %2109 = vst [vmem:[%s2881_s25 + $0xd70] sm:$0xff] %v1597_v21  ;;  %2110 = vst [vmem:[%s2881_s25 + $0xd78] sm:$0xff] %v1598_v22  ;;  %v680_v12 = vld [vmem:[%s2653_s16 + $0xec8] sm:$0xff]  ;;  %v681_v13 = vld [vmem:[%s2653_s16 + $0xed0] sm:$0xff]  ;;  %v1622_v42 = vmul.f32 %v1130_v10, %v662_v4  ;;  %v1639_v49 = vmul.f32 %v1145_v43, %v679_v11  ;;  %v1155_v11 = vpop.permute.xlu1 %1154 }
 0x194   : > { %2095 = vst [vmem:[%s2881_s25 + $0xd00] sm:$0xff] %v1583_v27  ;;  %2096 = vst [vmem:[%s2881_s25 + $0xd08] sm:$0xff] %v1584_v28  ;;  %v682_v14 = vld [vmem:[%s2653_s16 + $0xed8] sm:$0xff]  ;;  %v683_v19 = vld [vmem:[%s2653_s16 + $0xee0] sm:$0xff]  ;;  %v1640_v50 = vmul.f32 %v1145_v43, %v680_v12  ;;  %v1641_v51 = vmul.f32 %v1145_v43, %v681_v13  ;;  %v1150_v12 = vpop.permute.xlu0 %1149 }
 0x195   : > { %2097 = vst [vmem:[%s2881_s25 + $0xd10] sm:$0xff] %v1585_v29  ;;  %2098 = vst [vmem:[%s2881_s25 + $0xd18] sm:$0xff] %v1586_v30  ;;  %v684_v20 = vld [vmem:[%s2653_s16 + $0xee8] sm:$0xff]  ;;  %v685_v21 = vld [vmem:[%s2653_s16 + $0xef0] sm:$0xff]  ;;  %v1642_v52 = vmul.f32 %v1145_v43, %v682_v14  ;;  %v1643_v57 = vmul.f32 %v1145_v43, %v683_v19 }
 0x196   : > { %2099 = vst [vmem:[%s2881_s25 + $0xd20] sm:$0xff] %v1587_v35  ;;  %2100 = vst [vmem:[%s2881_s25 + $0xd28] sm:$0xff] %v1588_v36  ;;  %v686_v22 = vld [vmem:[%s2653_s16 + $0xef8] sm:$0xff]  ;;  %v671_v27 = vld [vmem:[%s2653_s16 + $0xe80] sm:$0xff]  ;;  %v1644_v58 = vmul.f32 %v1145_v43, %v684_v20  ;;  %v1645_v59 = vmul.f32 %v1145_v43, %v685_v21 }
 0x197   : > { %2101 = vst [vmem:[%s2881_s25 + $0xd30] sm:$0xff] %v1589_v37  ;;  %2102 = vst [vmem:[%s2881_s25 + $0xd38] sm:$0xff] %v1590_v38  ;;  %v672_v28 = vld [vmem:[%s2653_s16 + $0xe88] sm:$0xff]  ;;  %v673_v29 = vld [vmem:[%s2653_s16 + $0xe90] sm:$0xff]  ;;  %v1646_v60 = vmul.f32 %v1145_v43, %v686_v22 }
 0x198   : > { %2119 = vst [vmem:[%s2881_s25 + $0xdc0] sm:$0xff] %v1607_v45  ;;  %2120 = vst [vmem:[%s2881_s25 + $0xdc8] sm:$0xff] %v1608_v46  ;;  %v674_v30 = vld [vmem:[%s2653_s16 + $0xe98] sm:$0xff]  ;;  %v675_v35 = vld [vmem:[%s2653_s16 + $0xea0] sm:$0xff]  ;;  %v1632_v1 = vmul.f32 %v1140_v44, %v672_v28  ;;  %v1633_v2 = vmul.f32 %v1140_v44, %v673_v29 }
 0x199   : > { %2121 = vst [vmem:[%s2881_s25 + $0xdd0] sm:$0xff] %v1609_v47  ;;  %2122 = vst [vmem:[%s2881_s25 + $0xdd8] sm:$0xff] %v1610_v48  ;;  %v676_v36 = vld [vmem:[%s2653_s16 + $0xea8] sm:$0xff]  ;;  %v677_v37 = vld [vmem:[%s2653_s16 + $0xeb0] sm:$0xff]  ;;  %v1634_v3 = vmul.f32 %v1140_v44, %v674_v30 }
 0x19a   : > { %2123 = vst [vmem:[%s2881_s25 + $0xde0] sm:$0xff] %v1611_v53  ;;  %2124 = vst [vmem:[%s2881_s25 + $0xde8] sm:$0xff] %v1612_v54  ;;  %v678_v38 = vld [vmem:[%s2653_s16 + $0xeb8] sm:$0xff]  ;;  %v695_v45 = vld [vmem:[%s2653_s16 + $0xf40] sm:$0xff]  ;;  %v1637_v9 = vmul.f32 %v1140_v44, %v677_v37 }
 0x19b   : > { %2125 = vst [vmem:[%s2881_s25 + $0xdf0] sm:$0xff] %v1613_v55  ;;  %2126 = vst [vmem:[%s2881_s25 + $0xdf8] sm:$0xff] %v1614_v56  ;;  %v696_v46 = vld [vmem:[%s2653_s16 + $0xf48] sm:$0xff]  ;;  %v697_v47 = vld [vmem:[%s2653_s16 + $0xf50] sm:$0xff]  ;;  %v1638_v10 = vmul.f32 %v1140_v44, %v678_v38 }
 0x19c   : > { %2111 = vst [vmem:[%s2881_s25 + $0xd80] sm:$0xff] %v1599_v61  ;;  %2112 = vst [vmem:[%s2881_s25 + $0xd88] sm:$0xff] %v1600_v62  ;;  %v698_v48 = vld [vmem:[%s2653_s16 + $0xf58] sm:$0xff]  ;;  %v699_v53 = vld [vmem:[%s2653_s16 + $0xf60] sm:$0xff] }
 0x19d   : > { %2113 = vst [vmem:[%s2881_s25 + $0xd90] sm:$0xff] %v1601_v63  ;;  %2114 = vst [vmem:[%s2881_s25 + $0xd98] sm:$0xff] %v1602_v0  ;;  %v700_v54 = vld [vmem:[%s2653_s16 + $0xf68] sm:$0xff]  ;;  %v701_v55 = vld [vmem:[%s2653_s16 + $0xf70] sm:$0xff]  ;;  %v1631_v0 = vmul.f32 %v1140_v44, %v671_v27  ;;  %v1658_v19 = vmul.f32 %v1155_v11, %v698_v48 }
 0x19e   : > { %2115 = vst [vmem:[%s2881_s25 + $0xda0] sm:$0xff] %v1603_v5  ;;  %2116 = vst [vmem:[%s2881_s25 + $0xda8] sm:$0xff] %v1604_v6  ;;  %v702_v56 = vld [vmem:[%s2653_s16 + $0xf78] sm:$0xff]  ;;  %v687_v61 = vld [vmem:[%s2653_s16 + $0xf00] sm:$0xff] }
 0x19f   : > { %2117 = vst [vmem:[%s2881_s25 + $0xdb0] sm:$0xff] %v1605_v7  ;;  %2118 = vst [vmem:[%s2881_s25 + $0xdb8] sm:$0xff] %v1606_v8  ;;  %v688_v62 = vld [vmem:[%s2653_s16 + $0xf08] sm:$0xff]  ;;  %v689_v63 = vld [vmem:[%s2653_s16 + $0xf10] sm:$0xff]  ;;  %v1635_v7 = vmul.f32 %v1140_v44, %v675_v35  ;;  %v1636_v8 = vmul.f32 %v1140_v44, %v676_v36  ;;  %v1647_v30 = vmul.f32 %v1150_v12, %v687_v61 }
 0x1a0   : > { %2135 = vst [vmem:[%s2881_s25 + $0xe40] sm:$0xff] %v1623_v15  ;;  %2136 = vst [vmem:[%s2881_s25 + $0xe48] sm:$0xff] %v1624_v16  ;;  %v690_v4 = vld [vmem:[%s2653_s16 + $0xf18] sm:$0xff]  ;;  %v691_v5 = vld [vmem:[%s2653_s16 + $0xf20] sm:$0xff]  ;;  %v1655_v16 = vmul.f32 %v1155_v11, %v695_v45 }
 0x1a1   : > { %2137 = vst [vmem:[%s2881_s25 + $0xe50] sm:$0xff] %v1625_v17  ;;  %2138 = vst [vmem:[%s2881_s25 + $0xe58] sm:$0xff] %v1626_v18  ;;  %v692_v6 = vld [vmem:[%s2653_s16 + $0xf28] sm:$0xff]  ;;  %v693_v13 = vld [vmem:[%s2653_s16 + $0xf30] sm:$0xff]  ;;  %v1656_v17 = vmul.f32 %v1155_v11, %v696_v46  ;;  %v1657_v18 = vmul.f32 %v1155_v11, %v697_v47  ;;  %v1651_v37 = vmul.f32 %v1150_v12, %v691_v5 }
 0x1a2   : > { %2139 = vst [vmem:[%s2881_s25 + $0xe60] sm:$0xff] %v1627_v23  ;;  %2140 = vst [vmem:[%s2881_s25 + $0xe68] sm:$0xff] %v1628_v24  ;;  %v694_v14 = vld [vmem:[%s2653_s16 + $0xf38] sm:$0xff]  ;;  %v711_v15 = vld [vmem:[%s2653_s16 + $0xfc0] sm:$0xff]  ;;  %v1659_v23 = vmul.f32 %v1155_v11, %v699_v53  ;;  %v1660_v24 = vmul.f32 %v1155_v11, %v700_v54  ;;  %v1652_v38 = vmul.f32 %v1150_v12, %v692_v6 }
 0x1a3   : > { %2141 = vst [vmem:[%s2881_s25 + $0xe70] sm:$0xff] %v1629_v25  ;;  %2142 = vst [vmem:[%s2881_s25 + $0xe78] sm:$0xff] %v1630_v26  ;;  %v712_v20 = vld [vmem:[%s2653_s16 + $0xfc8] sm:$0xff]  ;;  %v713_v21 = vld [vmem:[%s2653_s16 + $0xfd0] sm:$0xff]  ;;  %v1661_v25 = vmul.f32 %v1155_v11, %v701_v55  ;;  %v1662_v26 = vmul.f32 %v1155_v11, %v702_v56 }
 0x1a4   : > { %2127 = vst [vmem:[%s2881_s25 + $0xe00] sm:$0xff] %v1615_v31  ;;  %2128 = vst [vmem:[%s2881_s25 + $0xe08] sm:$0xff] %v1616_v32  ;;  %v714_v22 = vld [vmem:[%s2653_s16 + $0xfd8] sm:$0xff]  ;;  %v715_v27 = vld [vmem:[%s2653_s16 + $0xfe0] sm:$0xff]  ;;  %v1648_v31 = vmul.f32 %v1150_v12, %v688_v62  ;;  %v1649_v32 = vmul.f32 %v1150_v12, %v689_v63 }
 0x1a5   : > { %2129 = vst [vmem:[%s2881_s25 + $0xe10] sm:$0xff] %v1617_v33  ;;  %2130 = vst [vmem:[%s2881_s25 + $0xe18] sm:$0xff] %v1618_v34  ;;  %v716_v28 = vld [vmem:[%s2653_s16 + $0xfe8] sm:$0xff]  ;;  %v717_v29 = vld [vmem:[%s2653_s16 + $0xff0] sm:$0xff]  ;;  %v1650_v33 = vmul.f32 %v1150_v12, %v690_v4 }
 0x1a6   : > { %2131 = vst [vmem:[%s2881_s25 + $0xe20] sm:$0xff] %v1619_v39  ;;  %2132 = vst [vmem:[%s2881_s25 + $0xe28] sm:$0xff] %v1620_v40  ;;  %v718_v34 = vld [vmem:[%s2653_s16 + $0xff8] sm:$0xff]  ;;  %v703_v35 = vld [vmem:[%s2653_s16 + $0xf80] sm:$0xff]  ;;  %v1653_v39 = vmul.f32 %v1150_v12, %v693_v13  ;;  %v1654_v40 = vmul.f32 %v1150_v12, %v694_v14 }
 0x1a7   : > { %2133 = vst [vmem:[%s2881_s25 + $0xe30] sm:$0xff] %v1621_v41  ;;  %2134 = vst [vmem:[%s2881_s25 + $0xe38] sm:$0xff] %v1622_v42  ;;  %v704_v36 = vld [vmem:[%s2653_s16 + $0xf88] sm:$0xff]  ;;  %v1165_v41 = vpop.permute.xlu1 %1164  ;;  %v1160_v42 = vpop.permute.xlu0 %1159  ;;  %v705_v43 = vld [vmem:[%s2653_s16 + $0xf90] sm:$0xff] }
 0x1a8   : > { %2151 = vst [vmem:[%s2881_s25 + $0xec0] sm:$0xff] %v1639_v49  ;;  %2152 = vst [vmem:[%s2881_s25 + $0xec8] sm:$0xff] %v1640_v50  ;;  %v706_v44 = vld [vmem:[%s2653_s16 + $0xf98] sm:$0xff]  ;;  %v707_v45 = vld [vmem:[%s2653_s16 + $0xfa0] sm:$0xff]  ;;  %v1671_v46 = vmul.f32 %v1165_v41, %v711_v15  ;;  %v1672_v47 = vmul.f32 %v1165_v41, %v712_v20  ;;  %v1673_v48 = vmul.f32 %v1165_v41, %v713_v21 }
 0x1a9   : > { %2153 = vst [vmem:[%s2881_s25 + $0xed0] sm:$0xff] %v1641_v51  ;;  %2154 = vst [vmem:[%s2881_s25 + $0xed8] sm:$0xff] %v1642_v52  ;;  %v1674_v49 = vmul.f32 %v1165_v41, %v714_v22  ;;  %v708_v50 = vld [vmem:[%s2653_s16 + $0xfa8] sm:$0xff]  ;;  %v709_v51 = vld [vmem:[%s2653_s16 + $0xfb0] sm:$0xff]  ;;  %v1675_v53 = vmul.f32 %v1165_v41, %v715_v27  ;;  %v1676_v54 = vmul.f32 %v1165_v41, %v716_v28 }
 0x1aa   : > { %2155 = vst [vmem:[%s2881_s25 + $0xee0] sm:$0xff] %v1643_v57  ;;  %2156 = vst [vmem:[%s2881_s25 + $0xee8] sm:$0xff] %v1644_v58  ;;  %v710_v52 = vld [vmem:[%s2653_s16 + $0xfb8] sm:$0xff]  ;;  %v1677_v55 = vmul.f32 %v1165_v41, %v717_v29  ;;  %v1678_v56 = vmul.f32 %v1165_v41, %v718_v34  ;;  %v1663_v57 = vmul.f32 %v1160_v42, %v703_v35  ;;  %s2429_s16 = scalar_lea.vmem %s3876_s26, 65536 }
 0x1ab   : > { %2157 = vst [vmem:[%s2881_s25 + $0xef0] sm:$0xff] %v1645_v59  ;;  %2158 = vst [vmem:[%s2881_s25 + $0xef8] sm:$0xff] %v1646_v60  ;;  %v1664_v58 = vmul.f32 %v1160_v42, %v704_v36  ;;  %v1665_v59 = vmul.f32 %v1160_v42, %v705_v43  ;;  %v1666_v60 = vmul.f32 %v1160_v42, %v706_v44  ;;  %p2430_p8 = scmp.ne.s32.totalorder %s3876_s26, %s2429_s16  ;;  %p2437_p13 = scmp.lt.s32.totalorder %s2435_s30, %s2429_s16 }
 0x1ac   : > { %2143 = vst [vmem:[%s2881_s25 + $0xe80] sm:$0xff] %v1631_v0  ;;  %2144 = vst [vmem:[%s2881_s25 + $0xe88] sm:$0xff] %v1632_v1  ;;  %v1667_v61 = vmul.f32 %v1160_v42, %v707_v45  ;;  %v1668_v62 = vmul.f32 %v1160_v42, %v708_v50  ;;  %v1669_v63 = vmul.f32 %v1160_v42, %v709_v51 }
 0x1ad   : > { %2145 = vst [vmem:[%s2881_s25 + $0xe90] sm:$0xff] %v1633_v2  ;;  %2146 = vst [vmem:[%s2881_s25 + $0xe98] sm:$0xff] %v1634_v3  ;;  %v1670_v0 = vmul.f32 %v1160_v42, %v710_v52  ;;  %p2431_p11 = pnand %p2430_p8, %p3946_p9  ;;  %p2438_p1 = por %p2437_p13, %p2436_p10 }
 0x1ae   : > { %2147 = vst [vmem:[%s2881_s25 + $0xea0] sm:$0xff] %v1635_v7  ;;  %2148 = vst [vmem:[%s2881_s25 + $0xea8] sm:$0xff] %v1636_v8 }
 0x1af   : > { %2149 = vst [vmem:[%s2881_s25 + $0xeb0] sm:$0xff] %v1637_v9  ;;  %2150 = vst [vmem:[%s2881_s25 + $0xeb8] sm:$0xff] %v1638_v10  ;;  %p2432_p0 = pneg %p2431_p11 }
 0x1b0   : > { %2167 = vst [vmem:[%s2881_s25 + $0xf40] sm:$0xff] %v1655_v16  ;;  %2168 = vst [vmem:[%s2881_s25 + $0xf48] sm:$0xff] %v1656_v17 }
 0x1b1   : > { %2169 = vst [vmem:[%s2881_s25 + $0xf50] sm:$0xff] %v1657_v18  ;;  %2170 = vst [vmem:[%s2881_s25 + $0xf58] sm:$0xff] %v1658_v19  ;;  %p2439_p3 = pnand %p2438_p1, %p2432_p0 }
 0x1b2   : > { %2171 = vst [vmem:[%s2881_s25 + $0xf60] sm:$0xff] %v1659_v23  ;;  %2172 = vst [vmem:[%s2881_s25 + $0xf68] sm:$0xff] %v1660_v24 }
 0x1b3   : > { %2173 = vst [vmem:[%s2881_s25 + $0xf70] sm:$0xff] %v1661_v25  ;;  %2174 = vst [vmem:[%s2881_s25 + $0xf78] sm:$0xff] %v1662_v26 }
 0x1b4   : > { %2159 = vst [vmem:[%s2881_s25 + $0xf00] sm:$0xff] %v1647_v30  ;;  %2160 = vst [vmem:[%s2881_s25 + $0xf08] sm:$0xff] %v1648_v31 }
 0x1b5   : > { %2161 = vst [vmem:[%s2881_s25 + $0xf10] sm:$0xff] %v1649_v32  ;;  %2162 = vst [vmem:[%s2881_s25 + $0xf18] sm:$0xff] %v1650_v33 }
 0x1b6   : > { %2163 = vst [vmem:[%s2881_s25 + $0xf20] sm:$0xff] %v1651_v37  ;;  %2164 = vst [vmem:[%s2881_s25 + $0xf28] sm:$0xff] %v1652_v38 }
 0x1b7   : > { %2165 = vst [vmem:[%s2881_s25 + $0xf30] sm:$0xff] %v1653_v39  ;;  %2166 = vst [vmem:[%s2881_s25 + $0xf38] sm:$0xff] %v1654_v40 }
 0x1b8   : > { %2183 = vst [vmem:[%s2881_s25 + $0xfc0] sm:$0xff] %v1671_v46  ;;  %2184 = vst [vmem:[%s2881_s25 + $0xfc8] sm:$0xff] %v1672_v47 }
 0x1b9   : > { %2185 = vst [vmem:[%s2881_s25 + $0xfd0] sm:$0xff] %v1673_v48  ;;  %2186 = vst [vmem:[%s2881_s25 + $0xfd8] sm:$0xff] %v1674_v49 }
 0x1ba   : > { %2187 = vst [vmem:[%s2881_s25 + $0xfe0] sm:$0xff] %v1675_v53  ;;  %2188 = vst [vmem:[%s2881_s25 + $0xfe8] sm:$0xff] %v1676_v54 }
 0x1bb   : > { %2189 = vst [vmem:[%s2881_s25 + $0xff0] sm:$0xff] %v1677_v55  ;;  %2190 = vst [vmem:[%s2881_s25 + $0xff8] sm:$0xff] %v1678_v56 }
 0x1bc   : > { %2175 = vst [vmem:[%s2881_s25 + $0xf80] sm:$0xff] %v1663_v57  ;;  %2176 = vst [vmem:[%s2881_s25 + $0xf88] sm:$0xff] %v1664_v58 }
 0x1bd   : > { %2177 = vst [vmem:[%s2881_s25 + $0xf90] sm:$0xff] %v1665_v59  ;;  %2178 = vst [vmem:[%s2881_s25 + $0xf98] sm:$0xff] %v1666_v60 }
 0x1be   : > { %2179 = vst [vmem:[%s2881_s25 + $0xfa0] sm:$0xff] %v1667_v61  ;;  %2180 = vst [vmem:[%s2881_s25 + $0xfa8] sm:$0xff] %v1668_v62 }
 0x1bf   : > { %2181 = vst [vmem:[%s2881_s25 + $0xfb0] sm:$0xff] %v1669_v63  ;;  %2182 = vst [vmem:[%s2881_s25 + $0xfb8] sm:$0xff] %v1670_v0 }
 0x1c0   : > { %2442 = shalt.err (!%p2439_p3)
}
 0x1c1   : > { %s2443_s4 = scalar_lea.hbm %s3870_s29, 65536  ;;  %s2447_s18 = scalar_lea.hbm %s3939_s2, 131072 }
 0x1c2   : > { %p2444_p4 = scmp.ne.s32.totalorder %s3870_s29, %s2443_s4  ;;  %p2448_p12 = scmp.lt.u32.totalorder %s3870_s29, %s3939_s2 }
 0x1c3   : > { %p2449_p2 = scmp.lt.u32.totalorder %s2447_s18, %s2443_s4  ;;  %p2451_p8 = scmp.lt.u32.totalorder %s2443_s4, %s3870_s29 }
 0x1c4   : > { %p2445_p6 = pnand %p2444_p4, %p3946_p9 }
 0x1c5   : > { %p2450_p5 = por %p2449_p2, %p2448_p12 }
 0x1c6   : > { %p2446_p7 = pneg %p2445_p6 }
 0x1c7   : > { %p2452_p11 = por %p2451_p8, %p2450_p5 }
 0x1c9   : > { %p2453_p0 = pnand %p2452_p11, %p2446_p7 }
 0x1cb   : > { %2456 = shalt.err (!%p2453_p0)
}
 0x1cc   : > { %s2519_s21 = smov 1024   ;;  %s2520_s25 = smov 2048  }
 0x1cd   : > { %s2521_s8 = smov 64  }
 0x1ce   : > { %2330 = dma.vmem_to_hbm [thread:$0]  (%p3946_p9), %s3876_s26, 65536, %s3870_s29, %s2192_s12, %s2519_s21, %s2520_s25, %s2521_s8  }
 0x1cf PF: > { %s2223_s27 = sand.u32 1, %s2491_s9   ;;  %p3947_p10 = scmp.ne.s32.totalorder %s3944_s24, 0 }
 0x1d0   : > { %p3948_p13 = scmp.ge.s32.totalorder %s2511_s14, 2  ;;  %s2224_s28 = scalar_lea.sflag [#allocation4], %s2223_s27 }
 0x1d2   : > { %p2337_p1 = pnand %p3948_p13, %p3947_p10 }
 0x1d4   : > { %2486 = dma.done.wait (!%p2337_p1), %s2224_s28, 65536  }
 0x1d5   : > { %2488 = vsyncadd (!%p2337_p1), %s2224_s28, 4294901760  ;;  %s18_s14 = sadd.s32 1, %s2511_s14   ;;  %s3949_s9 = smov %s2495_s10 }
 0x1d6   : > { %p15_p3 = scmp.ge.s32.totalorder %s18_s14, 4   ;;  %s3950_s10 = smov %s2499_s11 }
 0x1d7   : > { %s3951_s11 = smov %s2593_s23  ;;  %s3952_s12 = smov %s2507_s13 }
 0x1d8   : > { %s3953_s13 = smov %s3955_s17  ;;  %17 = sbr.rel (!%p15_p3) target bundleno = 6 (0x6), region = 76 }
 0x1df   :  { %2229 = vsyncpa [#allocation3], 1 }
 0x1e0   :  { %2231 = vsyncpa [#allocation3 + $0x1], 1 }
 0x1e1   :  { %2232 = vsyncpa [#allocation4], 1 }
 0x1e2   :  { %2234 = vsyncpa [#allocation4 + $0x1], 1 }

</bundles_post_ra>
